<compile_context>
chip_gen: v5e
topology: v5e:2x2
jax: 0.10.0
libtpu: 0.0.40
codegen_flags: <defaults>
</compile_context>

<pallas_src>
import functools
import numpy as np
import jax
import jax.numpy as jnp
from jax.experimental import pallas as pl
from jax.experimental.pallas import tpu as pltpu

IN_CHANNELS = 16      # module default in_channels
HEAD_CHANNELS = 8     # each scale head outputs 8 channels
NUM_SCALES = 4
EPS = 1e-5            # InstanceNorm2d eps


# ----------------------------------------------------------------------------- glue

def adaptive_pool_matrix(in_size, out_size):
    """Row-stochastic matrix P [out, in] s.t. P @ v == adaptive_avg_pool1d(v)."""
    P = np.zeros((out_size, in_size), dtype=np.float32)
    for i in range(out_size):
        start = (i * in_size) // out_size
        end = -((-(i + 1) * in_size) // out_size)  # ceil((i+1)*in/out)
        P[i, start:end] = 1.0 / float(end - start)
    return P


def bilinear_matrix(out_size, in_size):
    """Matrix U [out, in] s.t. U @ v == bilinear upsample (align_corners=False)."""
    U = np.zeros((out_size, in_size), dtype=np.float32)
    scale = in_size / out_size
    for i in range(out_size):
        src = (i + 0.5) * scale - 0.5
        if src < 0.0:
            src = 0.0
        i0 = min(int(np.floor(src)), in_size - 1)
        i1 = min(i0 + 1, in_size - 1)
        w1 = src - i0
        U[i, i0] += 1.0 - w1
        U[i, i1] += w1
    return U


def init_params(key, in_channels=IN_CHANNELS):
    ks = jax.random.split(key, 10)
    s = 0.1
    return dict(
        w1=jax.random.normal(ks[0], (NUM_SCALES, HEAD_CHANNELS, in_channels), jnp.float32) * s,
        b1=jax.random.normal(ks[1], (NUM_SCALES, HEAD_CHANNELS, 1), jnp.float32) * s,
        we1=jax.random.normal(ks[2], (16, NUM_SCALES * HEAD_CHANNELS), jnp.float32) * s,
        be1=jax.random.normal(ks[3], (16, 1), jnp.float32) * s,
        we2=jax.random.normal(ks[4], (NUM_SCALES, 16), jnp.float32) * s,
        be2=jax.random.normal(ks[5], (NUM_SCALES, 1), jnp.float32) * s,
        wt1=jax.random.normal(ks[6], (16, NUM_SCALES * HEAD_CHANNELS), jnp.float32) * s,
        bt1=jax.random.normal(ks[7], (16, 1), jnp.float32) * s,
        wt2=jax.random.normal(ks[8], (3, 16), jnp.float32) * s,
        bt2=jax.random.normal(ks[9], (3, 1), jnp.float32) * s,
    )


# ----------------------------------------------------------------------------- kernel

def _kernel(scale_sizes, H, W, min_hw,
            x_ref, *refs):
    O = HEAD_CHANNELS
    HW = H * W
    mat_refs = refs[:5 * NUM_SCALES]
    (w1_ref, b1_ref, h1_ref, h1b_ref, h2_ref, h2b_ref) = refs[5 * NUM_SCALES:5 * NUM_SCALES + 6]
    wfeat_ref, sw_ref, tad_ref = refs[5 * NUM_SCALES + 6:]

    # packed 1x1 convs of all 4 scale heads: [4*O, C] @ [C, H*W]  (bf16 in, f32 acc).
    # conv commutes with the (linear) adaptive pooling, so pooling only sees 8 channels.
    xb = x_ref[0].astype(jnp.bfloat16)                                   # [C, HW]
    z = jnp.dot(w1_ref[...], xb, preferred_element_type=jnp.float32) + b1_ref[...]
    z3 = z.reshape(NUM_SCALES * O, H, W).astype(jnp.bfloat16)            # [4*O, H, W]

    # ---- pass 1: pooled + InstanceNorm + ReLU features (small) and exact global means
    ys = []
    gcols = []
    for i in range(NUM_SCALES):
        s = scale_sizes[i]
        pwtb, phb, uwtb, uhb, gflat = mat_refs[5 * i:5 * i + 5]
        zi = z3[O * i:O * (i + 1)]                                       # [O, H, W] bf16
        # adaptive_avg_pool2d(., (s, s)) as two channel-batched matmuls
        t = jnp.einsum('chw,cwv->chv', zi, pwtb[...],
                       preferred_element_type=jnp.float32)               # [O, H, s]
        pooled = jnp.einsum('cah,chv->cav', phb[...], t.astype(jnp.bfloat16),
                            preferred_element_type=jnp.float32)          # [O, s, s]
        p2 = pooled.reshape(O, s * s)
        # InstanceNorm2d (no affine, biased variance) + ReLU
        mu = jnp.mean(p2, axis=1, keepdims=True)
        var = jnp.mean(jnp.square(p2 - mu), axis=1, keepdims=True)
        y2 = jnp.maximum((p2 - mu) * jax.lax.rsqrt(var + EPS), 0.0)      # [O, s*s]
        # exact spatial mean of the upsampled feature, computed on the small pooled map
        gcols.append(jnp.sum(y2 * gflat[...], axis=1, keepdims=True))    # [O, 1]
        ys.append(y2.reshape(O, s, s).astype(jnp.bfloat16))

    g = jnp.concatenate(gcols, axis=0)                                   # [4*O, 1]

    # ---- packed MLP heads: rows 0:4 of o7 -> softmax scale weights, rows 4:7 -> sigmoid
    z1 = jnp.maximum(jnp.dot(h1_ref[...], g, preferred_element_type=jnp.float32)
                     + h1b_ref[...], 0.0)                                # [32, 1]
    o7 = jnp.dot(h2_ref[...], z1, preferred_element_type=jnp.float32) + h2b_ref[...]
    logits = o7[0:NUM_SCALES]                                            # [4, 1]
    m = jnp.max(logits, axis=0, keepdims=True)
    e = jnp.exp(logits - m)
    wts = e / jnp.sum(e, axis=0, keepdims=True)                          # [4, 1]

    raw = jax.nn.sigmoid(o7[NUM_SCALES:NUM_SCALES + 3])                  # [3, 1]
    min_tad = 5.0 + raw[0:1] * 10.0
    avg_tad = 15.0 + raw[1:2] * (min_hw * 0.3)
    max_tad = avg_tad + raw[2:3] * (min_hw * 0.1)
    tad = jnp.concatenate([min_tad, avg_tad, max_tad], axis=0)           # [3, 1]

    # ---- pass 2: upsample each scale and accumulate wt_i * feat_i (one live full-res buf)
    acc = jnp.zeros((O, H, W), jnp.float32)
    for i in range(NUM_SCALES):
        pwtb, phb, uwtb, uhb, gflat = mat_refs[5 * i:5 * i + 5]
        yw = jnp.einsum('cav,cvw->caw', ys[i], uwtb[...],
                        preferred_element_type=jnp.float32)              # [O, s, W]
        feat = jnp.einsum('cha,caw->chw', uhb[...], yw.astype(jnp.bfloat16),
                          preferred_element_type=jnp.float32)            # [O, H, W]
        acc = acc + feat * wts[i:i + 1, 0:1]

    wfeat_ref[0] = acc.reshape(O, HW)                                    # lane-dense store
    sw_ref[0] = wts
    tad_ref[0] = tad


# ----------------------------------------------------------------------------- wrapper

def multiscale_attention_pallas(x, params):
    B, C, H, W = x.shape
    # TODO(synk): the PyTorch forward builds a *freshly random* 1x1 adapter Conv2d when
    # C != in_channels; that runtime module creation has no static-parameter equivalent,
    # so this implementation requires C == in_channels.
    assert C == IN_CHANNELS
    O = HEAD_CHANNELS
    HW = H * W
    min_hw = min(H, W)
    scale_sizes = tuple(max(int(min_hw * r), 4) for r in (0.1, 0.25, 0.5, 0.75))

    # Per-scale pooling / upsampling operators, pre-broadcast over the O head channels so
    # the kernel uses channel-batched matmuls; bf16 for full MXU rate.
    mats = []
    for s in scale_sizes:
        Ph = adaptive_pool_matrix(H, s)                      # [s, H]
        Pw = adaptive_pool_matrix(W, s)                      # [s, W]
        Uh = bilinear_matrix(H, s)                           # [H, s]
        Uw = bilinear_matrix(W, s)                           # [W, s]
        pwtb = np.broadcast_to(Pw.T[None], (O, W, s))
        phb = np.broadcast_to(Ph[None], (O, s, H))
        uwtb = np.broadcast_to(Uw.T[None], (O, s, W))
        uhb = np.broadcast_to(Uh[None], (O, H, s))
        # exact spatial-mean-after-upsample operator applied to the pooled map
        gflat = (Uh.mean(axis=0)[:, None] * Uw.mean(axis=0)[None, :]).reshape(1, s * s)
        mats += [jnp.asarray(pwtb, jnp.bfloat16), jnp.asarray(phb, jnp.bfloat16),
                 jnp.asarray(uwtb, jnp.bfloat16), jnp.asarray(uhb, jnp.bfloat16),
                 jnp.asarray(gflat, jnp.float32)]

    # packed parameters
    w1all = params['w1'].reshape(NUM_SCALES * O, C).astype(jnp.bfloat16)        # [32, C]
    b1all = params['b1'].reshape(NUM_SCALES * O, 1)                             # [32, 1]
    h1 = jnp.concatenate([params['we1'], params['wt1']], axis=0)                # [32, 32]
    h1b = jnp.concatenate([params['be1'], params['bt1']], axis=0)               # [32, 1]
    h2 = jnp.concatenate(
        [jnp.concatenate([params['we2'], jnp.zeros((NUM_SCALES, 16), jnp.float32)], axis=1),
         jnp.concatenate([jnp.zeros((3, 16), jnp.float32), params['wt2']], axis=1)],
        axis=0)                                                                  # [7, 32]
    h2b = jnp.concatenate([params['be2'], params['bt2']], axis=0)               # [7, 1]
    plist = [w1all, b1all, h1, h1b, h2, h2b]

    x2 = x.reshape(B, C, HW)                                 # lane-dense input slab

    kernel = functools.partial(_kernel, scale_sizes, H, W, float(min_hw))

    in_specs = [pl.BlockSpec((1, C, HW), lambda b: (b, 0, 0))]
    for a in mats + plist:
        in_specs.append(pl.BlockSpec(a.shape, lambda b, n=a.ndim: (0,) * n))

    out_shape = (
        jax.ShapeDtypeStruct((B, O, HW), jnp.float32),
        jax.ShapeDtypeStruct((B, NUM_SCALES, 1), jnp.float32),
        jax.ShapeDtypeStruct((B, 3, 1), jnp.float32),
    )
    out_specs = (
        pl.BlockSpec((1, O, HW), lambda b: (b, 0, 0)),
        pl.BlockSpec((1, NUM_SCALES, 1), lambda b: (b, 0, 0)),
        pl.BlockSpec((1, 3, 1), lambda b: (b, 0, 0)),
    )

    weighted, sw, tad = pl.pallas_call(
        kernel,
        out_shape=out_shape,
        grid=(B,),
        in_specs=in_specs,
        out_specs=out_specs,
        compiler_params=pltpu.CompilerParams(
            dimension_semantics=("parallel",),
            vmem_limit_bytes=64 * 1024 * 1024),
    )(x2, *mats, *plist)

    return (weighted.reshape(B, O, H, W),
            sw.reshape(B, NUM_SCALES, 1, 1),
            tad.reshape(B, 3, 1, 1))


# ----------------------------------------------------------------------------- reference

def reference(x, params):
    B, C, H, W = x.shape
    min_hw = min(H, W)
    scale_sizes = [max(int(min_hw * r), 4) for r in (0.1, 0.25, 0.5, 0.75)]
    feats = []
    for i, s in enumerate(scale_sizes):
        Ph = jnp.asarray(adaptive_pool_matrix(H, s))
        Pw = jnp.asarray(adaptive_pool_matrix(W, s))
        Uh = jnp.asarray(bilinear_matrix(H, s))
        Uw = jnp.asarray(bilinear_matrix(W, s))
        pooled = jnp.einsum('ah,vw,bchw->bcav', Ph, Pw, x, precision='highest')
        y = jnp.einsum('oc,bcav->boav', params['w1'][i], pooled, precision='highest') \
            + params['b1'][i].reshape(1, HEAD_CHANNELS, 1, 1)
        mu = jnp.mean(y, axis=(2, 3), keepdims=True)
        var = jnp.mean((y - mu) ** 2, axis=(2, 3), keepdims=True)
        y = jax.nn.relu((y - mu) / jnp.sqrt(var + EPS))
        feats.append(jnp.einsum('ha,wv,boav->bohw', Uh, Uw, y, precision='highest'))
    multi = jnp.concatenate(feats, axis=1)
    g = jnp.mean(multi, axis=(2, 3))                                       # [B, 32]
    z = jax.nn.relu(g @ params['we1'].T + params['be1'].reshape(1, -1))
    wts = jax.nn.softmax(z @ params['we2'].T + params['be2'].reshape(1, -1), axis=1)
    zt = jax.nn.relu(g @ params['wt1'].T + params['bt1'].reshape(1, -1))
    raw = jax.nn.sigmoid(zt @ params['wt2'].T + params['bt2'].reshape(1, -1))
    min_tad = 5.0 + raw[:, 0:1] * 10.0
    avg_tad = 15.0 + raw[:, 1:2] * (min_hw * 0.3)
    max_tad = avg_tad + raw[:, 2:3] * (min_hw * 0.1)
    tad = jnp.concatenate([min_tad, avg_tad, max_tad], axis=1)
    weighted = sum(feats[i] * wts[:, i].reshape(B, 1, 1, 1) for i in range(NUM_SCALES))
    return weighted, wts.reshape(B, NUM_SCALES, 1, 1), tad.reshape(B, 3, 1, 1)


# ----------------------------------------------------------------------------- main

if __name__ == "__main__":
    key = jax.random.PRNGKey(0)
    kx, kp = jax.random.split(key)
    B, C, H, W = 2, IN_CHANNELS, 16, 16
    x = jax.random.normal(kx, (B, C, H, W), jnp.float32)
    params = init_params(kp)

    weighted, sw, tad = multiscale_attention_pallas(x, params)
    jax.block_until_ready((weighted, sw, tad))

    assert weighted.shape == (B, HEAD_CHANNELS, H, W)
    assert sw.shape == (B, NUM_SCALES, 1, 1)
    assert tad.shape == (B, 3, 1, 1)

    ref_w, ref_sw, ref_tad = reference(x, params)
    # kernel runs its data matmuls in bf16 with f32 accumulation -> 2e-2 tolerance
    assert np.allclose(np.asarray(weighted), np.asarray(ref_w), rtol=2e-2, atol=2e-2)
    assert np.allclose(np.asarray(sw), np.asarray(ref_sw), rtol=2e-2, atol=2e-2)
    assert np.allclose(np.asarray(tad), np.asarray(ref_tad), rtol=2e-2, atol=2e-2)

    print("KERNEL_OK")
</pallas_src>

<mosaic_0001>
module attributes {stable_mosaic.version = 11 : i64} {
  func.func @_kernel(%arg0: i32, %arg1: memref<1x16x256xf32, #tpu.memory_space<vmem>>, %arg2: memref<8x16x4xbf16, #tpu.memory_space<vmem>>, %arg3: memref<8x4x16xbf16, #tpu.memory_space<vmem>>, %arg4: memref<8x4x16xbf16, #tpu.memory_space<vmem>>, %arg5: memref<8x16x4xbf16, #tpu.memory_space<vmem>>, %arg6: memref<1x16xf32, #tpu.memory_space<vmem>>, %arg7: memref<8x16x4xbf16, #tpu.memory_space<vmem>>, %arg8: memref<8x4x16xbf16, #tpu.memory_space<vmem>>, %arg9: memref<8x4x16xbf16, #tpu.memory_space<vmem>>, %arg10: memref<8x16x4xbf16, #tpu.memory_space<vmem>>, %arg11: memref<1x16xf32, #tpu.memory_space<vmem>>, %arg12: memref<8x16x8xbf16, #tpu.memory_space<vmem>>, %arg13: memref<8x8x16xbf16, #tpu.memory_space<vmem>>, %arg14: memref<8x8x16xbf16, #tpu.memory_space<vmem>>, %arg15: memref<8x16x8xbf16, #tpu.memory_space<vmem>>, %arg16: memref<1x64xf32, #tpu.memory_space<vmem>>, %arg17: memref<8x16x12xbf16, #tpu.memory_space<vmem>>, %arg18: memref<8x12x16xbf16, #tpu.memory_space<vmem>>, %arg19: memref<8x12x16xbf16, #tpu.memory_space<vmem>>, %arg20: memref<8x16x12xbf16, #tpu.memory_space<vmem>>, %arg21: memref<1x144xf32, #tpu.memory_space<vmem>>, %arg22: memref<32x16xbf16, #tpu.memory_space<vmem>>, %arg23: memref<32x1xf32, #tpu.memory_space<vmem>>, %arg24: memref<32x32xf32, #tpu.memory_space<vmem>>, %arg25: memref<32x1xf32, #tpu.memory_space<vmem>>, %arg26: memref<7x32xf32, #tpu.memory_space<vmem>>, %arg27: memref<7x1xf32, #tpu.memory_space<vmem>>, %arg28: memref<1x8x256xf32, #tpu.memory_space<vmem>>, %arg29: memref<1x4x1xf32, #tpu.memory_space<vmem>>, %arg30: memref<1x3x1xf32, #tpu.memory_space<vmem>>) attributes {dimension_semantics = [#tpu.dimension_semantics<parallel>], iteration_bounds = array<i64: 2>, scalar_prefetch = 0 : i64, scratch_operands = 0 : i64, tpu.core_type = #tpu.core_type<tc>, window_params = [{transform_indices = @transform_0, window_bounds = array<i64: 1, 16, 256>}, {pipeline_mode = #tpu.pipeline_mode<synchronous>, transform_indices = @transform_1, window_bounds = array<i64: 8, 16, 4>}, {pipeline_mode = #tpu.pipeline_mode<synchronous>, transform_indices = @transform_2, window_bounds = array<i64: 8, 4, 16>}, {pipeline_mode = #tpu.pipeline_mode<synchronous>, transform_indices = @transform_3, window_bounds = array<i64: 8, 4, 16>}, {pipeline_mode = #tpu.pipeline_mode<synchronous>, transform_indices = @transform_4, window_bounds = array<i64: 8, 16, 4>}, {pipeline_mode = #tpu.pipeline_mode<synchronous>, transform_indices = @transform_5, window_bounds = array<i64: 1, 16>}, {pipeline_mode = #tpu.pipeline_mode<synchronous>, transform_indices = @transform_6, window_bounds = array<i64: 8, 16, 4>}, {pipeline_mode = #tpu.pipeline_mode<synchronous>, transform_indices = @transform_7, window_bounds = array<i64: 8, 4, 16>}, {pipeline_mode = #tpu.pipeline_mode<synchronous>, transform_indices = @transform_8, window_bounds = array<i64: 8, 4, 16>}, {pipeline_mode = #tpu.pipeline_mode<synchronous>, transform_indices = @transform_9, window_bounds = array<i64: 8, 16, 4>}, {pipeline_mode = #tpu.pipeline_mode<synchronous>, transform_indices = @transform_10, window_bounds = array<i64: 1, 16>}, {pipeline_mode = #tpu.pipeline_mode<synchronous>, transform_indices = @transform_11, window_bounds = array<i64: 8, 16, 8>}, {pipeline_mode = #tpu.pipeline_mode<synchronous>, transform_indices = @transform_12, window_bounds = array<i64: 8, 8, 16>}, {pipeline_mode = #tpu.pipeline_mode<synchronous>, transform_indices = @transform_13, window_bounds = array<i64: 8, 8, 16>}, {pipeline_mode = #tpu.pipeline_mode<synchronous>, transform_indices = @transform_14, window_bounds = array<i64: 8, 16, 8>}, {pipeline_mode = #tpu.pipeline_mode<synchronous>, transform_indices = @transform_15, window_bounds = array<i64: 1, 64>}, {pipeline_mode = #tpu.pipeline_mode<synchronous>, transform_indices = @transform_16, window_bounds = array<i64: 8, 16, 12>}, {pipeline_mode = #tpu.pipeline_mode<synchronous>, transform_indices = @transform_17, window_bounds = array<i64: 8, 12, 16>}, {pipeline_mode = #tpu.pipeline_mode<synchronous>, transform_indices = @transform_18, window_bounds = array<i64: 8, 12, 16>}, {pipeline_mode = #tpu.pipeline_mode<synchronous>, transform_indices = @transform_19, window_bounds = array<i64: 8, 16, 12>}, {pipeline_mode = #tpu.pipeline_mode<synchronous>, transform_indices = @transform_20, window_bounds = array<i64: 1, 144>}, {pipeline_mode = #tpu.pipeline_mode<synchronous>, transform_indices = @transform_21, window_bounds = array<i64: 32, 16>}, {pipeline_mode = #tpu.pipeline_mode<synchronous>, transform_indices = @transform_22, window_bounds = array<i64: 32, 1>}, {pipeline_mode = #tpu.pipeline_mode<synchronous>, transform_indices = @transform_23, window_bounds = array<i64: 32, 32>}, {pipeline_mode = #tpu.pipeline_mode<synchronous>, transform_indices = @transform_24, window_bounds = array<i64: 32, 1>}, {pipeline_mode = #tpu.pipeline_mode<synchronous>, transform_indices = @transform_25, window_bounds = array<i64: 7, 32>}, {pipeline_mode = #tpu.pipeline_mode<synchronous>, transform_indices = @transform_26, window_bounds = array<i64: 7, 1>}, {transform_indices = @transform_27, window_bounds = array<i64: 1, 8, 256>}, {transform_indices = @transform_28, window_bounds = array<i64: 1, 4, 1>}, {transform_indices = @transform_29, window_bounds = array<i64: 1, 3, 1>}]} {
    %c0 = arith.constant 0 : index
    %c0_0 = arith.constant 0 : index
    %c0_1 = arith.constant 0 : index
    %0 = vector.load %arg1[%c0, %c0_0, %c0_1] : memref<1x16x256xf32, #tpu.memory_space<vmem>>, vector<1x16x256xf32>
    %1 = vector.shape_cast %0 : vector<1x16x256xf32> to vector<16x256xf32>
    %2 = arith.truncf %1 : vector<16x256xf32> to vector<16x256xbf16>
    %c0_2 = arith.constant 0 : index
    %c0_3 = arith.constant 0 : index
    %3 = vector.load %arg22[%c0_2, %c0_3] : memref<32x16xbf16, #tpu.memory_space<vmem>>, vector<32x16xbf16>
    %cst = arith.constant dense<0.000000e+00> : vector<32x256xf32>
    %4 = tpu.matmul %3, %2, %cst {dimension_numbers = #tpu.dot_dimension_numbers<[1], [0], [0], [1], [0, 0, 1, 1], [], []>} : vector<32x16xbf16>, vector<16x256xbf16>, vector<32x256xf32> -> vector<32x256xf32>
    %c0_4 = arith.constant 0 : index
    %c0_5 = arith.constant 0 : index
    %5 = vector.load %arg23[%c0_4, %c0_5] : memref<32x1xf32, #tpu.memory_space<vmem>>, vector<32x1xf32>
    %6 = vector.broadcast %5 : vector<32x1xf32> to vector<32x256xf32>
    %7 = arith.addf %4, %6 : vector<32x256xf32>
    %8 = vector.shape_cast %7 : vector<32x256xf32> to vector<32x16x16xf32>
    %9 = arith.truncf %8 : vector<32x16x16xf32> to vector<32x16x16xbf16>
    %10 = vector.extract_strided_slice %9 {offsets = [0, 0, 0], sizes = [8, 16, 16], strides = [1, 1, 1]} : vector<32x16x16xbf16> to vector<8x16x16xbf16>
    %c0_6 = arith.constant 0 : index
    %c0_7 = arith.constant 0 : index
    %c0_8 = arith.constant 0 : index
    %11 = vector.load %arg2[%c0_6, %c0_7, %c0_8] : memref<8x16x4xbf16, #tpu.memory_space<vmem>>, vector<8x16x4xbf16>
    "tpu.trace_start"() <{level = 10 : i32, message = "chw,cwv->chv"}> : () -> ()
    %cst_9 = arith.constant dense<0.000000e+00> : vector<8x16x4xf32>
    %12 = tpu.matmul %10, %11, %cst_9 {dimension_numbers = #tpu.dot_dimension_numbers<[2], [1], [1], [2], [0, 0, 0, 1, 1, 2], [0], [0]>} : vector<8x16x16xbf16>, vector<8x16x4xbf16>, vector<8x16x4xf32> -> vector<8x16x4xf32>
    "tpu.trace_stop"() : () -> ()
    %c0_10 = arith.constant 0 : index
    %c0_11 = arith.constant 0 : index
    %c0_12 = arith.constant 0 : index
    %13 = vector.load %arg3[%c0_10, %c0_11, %c0_12] : memref<8x4x16xbf16, #tpu.memory_space<vmem>>, vector<8x4x16xbf16>
    %14 = arith.truncf %12 : vector<8x16x4xf32> to vector<8x16x4xbf16>
    "tpu.trace_start"() <{level = 10 : i32, message = "cah,chv->cav"}> : () -> ()
    %cst_13 = arith.constant dense<0.000000e+00> : vector<8x4x4xf32>
    %15 = tpu.matmul %13, %14, %cst_13 {dimension_numbers = #tpu.dot_dimension_numbers<[2], [1], [1], [2], [0, 0, 0, 1, 1, 2], [0], [0]>} : vector<8x4x16xbf16>, vector<8x16x4xbf16>, vector<8x4x4xf32> -> vector<8x4x4xf32>
    "tpu.trace_stop"() : () -> ()
    %16 = vector.shape_cast %15 : vector<8x4x4xf32> to vector<8x16xf32>
    %cst_14 = arith.constant dense<0.000000e+00> : vector<8xf32>
    %17 = vector.multi_reduction <add>, %16, %cst_14 [1] : vector<8x16xf32> to vector<8xf32>
    %18 = vector.shape_cast %17 : vector<8xf32> to vector<8x1xf32>
    %cst_15 = arith.constant 1.600000e+01 : f32
    %19 = vector.broadcast %cst_15 : f32 to vector<8x1xf32>
    %20 = arith.divf %18, %19 : vector<8x1xf32>
    %21 = vector.broadcast %20 : vector<8x1xf32> to vector<8x16xf32>
    %22 = arith.subf %16, %21 : vector<8x16xf32>
    %23 = arith.mulf %22, %22 : vector<8x16xf32>
    %cst_16 = arith.constant dense<0.000000e+00> : vector<8xf32>
    %24 = vector.multi_reduction <add>, %23, %cst_16 [1] : vector<8x16xf32> to vector<8xf32>
    %25 = vector.shape_cast %24 : vector<8xf32> to vector<8x1xf32>
    %cst_17 = arith.constant 1.600000e+01 : f32
    %26 = vector.broadcast %cst_17 : f32 to vector<8x1xf32>
    %27 = arith.divf %25, %26 : vector<8x1xf32>
    %28 = vector.broadcast %20 : vector<8x1xf32> to vector<8x16xf32>
    %29 = arith.subf %16, %28 : vector<8x16xf32>
    %cst_18 = arith.constant 9.99999974E-6 : f32
    %30 = vector.broadcast %cst_18 : f32 to vector<8x1xf32>
    %31 = arith.addf %27, %30 : vector<8x1xf32>
    %32 = math.rsqrt %31 : vector<8x1xf32>
    %33 = vector.broadcast %32 : vector<8x1xf32> to vector<8x16xf32>
    %34 = arith.mulf %29, %33 : vector<8x16xf32>
    %cst_19 = arith.constant 0.000000e+00 : f32
    %35 = vector.broadcast %cst_19 : f32 to vector<8x16xf32>
    %36 = arith.maximumf %34, %35 : vector<8x16xf32>
    %c0_20 = arith.constant 0 : index
    %c0_21 = arith.constant 0 : index
    %37 = vector.load %arg6[%c0_20, %c0_21] : memref<1x16xf32, #tpu.memory_space<vmem>>, vector<1x16xf32>
    %38 = vector.broadcast %37 : vector<1x16xf32> to vector<8x16xf32>
    %39 = arith.mulf %36, %38 : vector<8x16xf32>
    %cst_22 = arith.constant dense<0.000000e+00> : vector<8xf32>
    %40 = vector.multi_reduction <add>, %39, %cst_22 [1] : vector<8x16xf32> to vector<8xf32>
    %41 = vector.shape_cast %40 : vector<8xf32> to vector<8x1xf32>
    %42 = vector.shape_cast %36 : vector<8x16xf32> to vector<8x4x4xf32>
    %43 = arith.truncf %42 : vector<8x4x4xf32> to vector<8x4x4xbf16>
    %44 = vector.extract_strided_slice %9 {offsets = [8, 0, 0], sizes = [8, 16, 16], strides = [1, 1, 1]} : vector<32x16x16xbf16> to vector<8x16x16xbf16>
    %c0_23 = arith.constant 0 : index
    %c0_24 = arith.constant 0 : index
    %c0_25 = arith.constant 0 : index
    %45 = vector.load %arg7[%c0_23, %c0_24, %c0_25] : memref<8x16x4xbf16, #tpu.memory_space<vmem>>, vector<8x16x4xbf16>
    "tpu.trace_start"() <{level = 10 : i32, message = "chw,cwv->chv"}> : () -> ()
    %cst_26 = arith.constant dense<0.000000e+00> : vector<8x16x4xf32>
    %46 = tpu.matmul %44, %45, %cst_26 {dimension_numbers = #tpu.dot_dimension_numbers<[2], [1], [1], [2], [0, 0, 0, 1, 1, 2], [0], [0]>} : vector<8x16x16xbf16>, vector<8x16x4xbf16>, vector<8x16x4xf32> -> vector<8x16x4xf32>
    "tpu.trace_stop"() : () -> ()
    %c0_27 = arith.constant 0 : index
    %c0_28 = arith.constant 0 : index
    %c0_29 = arith.constant 0 : index
    %47 = vector.load %arg8[%c0_27, %c0_28, %c0_29] : memref<8x4x16xbf16, #tpu.memory_space<vmem>>, vector<8x4x16xbf16>
    %48 = arith.truncf %46 : vector<8x16x4xf32> to vector<8x16x4xbf16>
    "tpu.trace_start"() <{level = 10 : i32, message = "cah,chv->cav"}> : () -> ()
    %cst_30 = arith.constant dense<0.000000e+00> : vector<8x4x4xf32>
    %49 = tpu.matmul %47, %48, %cst_30 {dimension_numbers = #tpu.dot_dimension_numbers<[2], [1], [1], [2], [0, 0, 0, 1, 1, 2], [0], [0]>} : vector<8x4x16xbf16>, vector<8x16x4xbf16>, vector<8x4x4xf32> -> vector<8x4x4xf32>
    "tpu.trace_stop"() : () -> ()
    %50 = vector.shape_cast %49 : vector<8x4x4xf32> to vector<8x16xf32>
    %cst_31 = arith.constant dense<0.000000e+00> : vector<8xf32>
    %51 = vector.multi_reduction <add>, %50, %cst_31 [1] : vector<8x16xf32> to vector<8xf32>
    %52 = vector.shape_cast %51 : vector<8xf32> to vector<8x1xf32>
    %cst_32 = arith.constant 1.600000e+01 : f32
    %53 = vector.broadcast %cst_32 : f32 to vector<8x1xf32>
    %54 = arith.divf %52, %53 : vector<8x1xf32>
    %55 = vector.broadcast %54 : vector<8x1xf32> to vector<8x16xf32>
    %56 = arith.subf %50, %55 : vector<8x16xf32>
    %57 = arith.mulf %56, %56 : vector<8x16xf32>
    %cst_33 = arith.constant dense<0.000000e+00> : vector<8xf32>
    %58 = vector.multi_reduction <add>, %57, %cst_33 [1] : vector<8x16xf32> to vector<8xf32>
    %59 = vector.shape_cast %58 : vector<8xf32> to vector<8x1xf32>
    %cst_34 = arith.constant 1.600000e+01 : f32
    %60 = vector.broadcast %cst_34 : f32 to vector<8x1xf32>
    %61 = arith.divf %59, %60 : vector<8x1xf32>
    %62 = vector.broadcast %54 : vector<8x1xf32> to vector<8x16xf32>
    %63 = arith.subf %50, %62 : vector<8x16xf32>
    %cst_35 = arith.constant 9.99999974E-6 : f32
    %64 = vector.broadcast %cst_35 : f32 to vector<8x1xf32>
    %65 = arith.addf %61, %64 : vector<8x1xf32>
    %66 = math.rsqrt %65 : vector<8x1xf32>
    %67 = vector.broadcast %66 : vector<8x1xf32> to vector<8x16xf32>
    %68 = arith.mulf %63, %67 : vector<8x16xf32>
    %cst_36 = arith.constant 0.000000e+00 : f32
    %69 = vector.broadcast %cst_36 : f32 to vector<8x16xf32>
    %70 = arith.maximumf %68, %69 : vector<8x16xf32>
    %c0_37 = arith.constant 0 : index
    %c0_38 = arith.constant 0 : index
    %71 = vector.load %arg11[%c0_37, %c0_38] : memref<1x16xf32, #tpu.memory_space<vmem>>, vector<1x16xf32>
    %72 = vector.broadcast %71 : vector<1x16xf32> to vector<8x16xf32>
    %73 = arith.mulf %70, %72 : vector<8x16xf32>
    %cst_39 = arith.constant dense<0.000000e+00> : vector<8xf32>
    %74 = vector.multi_reduction <add>, %73, %cst_39 [1] : vector<8x16xf32> to vector<8xf32>
    %75 = vector.shape_cast %74 : vector<8xf32> to vector<8x1xf32>
    %76 = vector.shape_cast %70 : vector<8x16xf32> to vector<8x4x4xf32>
    %77 = arith.truncf %76 : vector<8x4x4xf32> to vector<8x4x4xbf16>
    %78 = vector.extract_strided_slice %9 {offsets = [16, 0, 0], sizes = [8, 16, 16], strides = [1, 1, 1]} : vector<32x16x16xbf16> to vector<8x16x16xbf16>
    %c0_40 = arith.constant 0 : index
    %c0_41 = arith.constant 0 : index
    %c0_42 = arith.constant 0 : index
    %79 = vector.load %arg12[%c0_40, %c0_41, %c0_42] : memref<8x16x8xbf16, #tpu.memory_space<vmem>>, vector<8x16x8xbf16>
    "tpu.trace_start"() <{level = 10 : i32, message = "chw,cwv->chv"}> : () -> ()
    %cst_43 = arith.constant dense<0.000000e+00> : vector<8x16x8xf32>
    %80 = tpu.matmul %78, %79, %cst_43 {dimension_numbers = #tpu.dot_dimension_numbers<[2], [1], [1], [2], [0, 0, 0, 1, 1, 2], [0], [0]>} : vector<8x16x16xbf16>, vector<8x16x8xbf16>, vector<8x16x8xf32> -> vector<8x16x8xf32>
    "tpu.trace_stop"() : () -> ()
    %c0_44 = arith.constant 0 : index
    %c0_45 = arith.constant 0 : index
    %c0_46 = arith.constant 0 : index
    %81 = vector.load %arg13[%c0_44, %c0_45, %c0_46] : memref<8x8x16xbf16, #tpu.memory_space<vmem>>, vector<8x8x16xbf16>
    %82 = arith.truncf %80 : vector<8x16x8xf32> to vector<8x16x8xbf16>
    "tpu.trace_start"() <{level = 10 : i32, message = "cah,chv->cav"}> : () -> ()
    %cst_47 = arith.constant dense<0.000000e+00> : vector<8x8x8xf32>
    %83 = tpu.matmul %81, %82, %cst_47 {dimension_numbers = #tpu.dot_dimension_numbers<[2], [1], [1], [2], [0, 0, 0, 1, 1, 2], [0], [0]>} : vector<8x8x16xbf16>, vector<8x16x8xbf16>, vector<8x8x8xf32> -> vector<8x8x8xf32>
    "tpu.trace_stop"() : () -> ()
    %84 = vector.shape_cast %83 : vector<8x8x8xf32> to vector<8x64xf32>
    %cst_48 = arith.constant dense<0.000000e+00> : vector<8xf32>
    %85 = vector.multi_reduction <add>, %84, %cst_48 [1] : vector<8x64xf32> to vector<8xf32>
    %86 = vector.shape_cast %85 : vector<8xf32> to vector<8x1xf32>
    %cst_49 = arith.constant 6.400000e+01 : f32
    %87 = vector.broadcast %cst_49 : f32 to vector<8x1xf32>
    %88 = arith.divf %86, %87 : vector<8x1xf32>
    %89 = vector.broadcast %88 : vector<8x1xf32> to vector<8x64xf32>
    %90 = arith.subf %84, %89 : vector<8x64xf32>
    %91 = arith.mulf %90, %90 : vector<8x64xf32>
    %cst_50 = arith.constant dense<0.000000e+00> : vector<8xf32>
    %92 = vector.multi_reduction <add>, %91, %cst_50 [1] : vector<8x64xf32> to vector<8xf32>
    %93 = vector.shape_cast %92 : vector<8xf32> to vector<8x1xf32>
    %cst_51 = arith.constant 6.400000e+01 : f32
    %94 = vector.broadcast %cst_51 : f32 to vector<8x1xf32>
    %95 = arith.divf %93, %94 : vector<8x1xf32>
    %96 = vector.broadcast %88 : vector<8x1xf32> to vector<8x64xf32>
    %97 = arith.subf %84, %96 : vector<8x64xf32>
    %cst_52 = arith.constant 9.99999974E-6 : f32
    %98 = vector.broadcast %cst_52 : f32 to vector<8x1xf32>
    %99 = arith.addf %95, %98 : vector<8x1xf32>
    %100 = math.rsqrt %99 : vector<8x1xf32>
    %101 = vector.broadcast %100 : vector<8x1xf32> to vector<8x64xf32>
    %102 = arith.mulf %97, %101 : vector<8x64xf32>
    %cst_53 = arith.constant 0.000000e+00 : f32
    %103 = vector.broadcast %cst_53 : f32 to vector<8x64xf32>
    %104 = arith.maximumf %102, %103 : vector<8x64xf32>
    %c0_54 = arith.constant 0 : index
    %c0_55 = arith.constant 0 : index
    %105 = vector.load %arg16[%c0_54, %c0_55] : memref<1x64xf32, #tpu.memory_space<vmem>>, vector<1x64xf32>
    %106 = vector.broadcast %105 : vector<1x64xf32> to vector<8x64xf32>
    %107 = arith.mulf %104, %106 : vector<8x64xf32>
    %cst_56 = arith.constant dense<0.000000e+00> : vector<8xf32>
    %108 = vector.multi_reduction <add>, %107, %cst_56 [1] : vector<8x64xf32> to vector<8xf32>
    %109 = vector.shape_cast %108 : vector<8xf32> to vector<8x1xf32>
    %110 = vector.shape_cast %104 : vector<8x64xf32> to vector<8x8x8xf32>
    %111 = arith.truncf %110 : vector<8x8x8xf32> to vector<8x8x8xbf16>
    %112 = vector.extract_strided_slice %9 {offsets = [24, 0, 0], sizes = [8, 16, 16], strides = [1, 1, 1]} : vector<32x16x16xbf16> to vector<8x16x16xbf16>
    %c0_57 = arith.constant 0 : index
    %c0_58 = arith.constant 0 : index
    %c0_59 = arith.constant 0 : index
    %113 = vector.load %arg17[%c0_57, %c0_58, %c0_59] : memref<8x16x12xbf16, #tpu.memory_space<vmem>>, vector<8x16x12xbf16>
    "tpu.trace_start"() <{level = 10 : i32, message = "chw,cwv->chv"}> : () -> ()
    %cst_60 = arith.constant dense<0.000000e+00> : vector<8x16x12xf32>
    %114 = tpu.matmul %112, %113, %cst_60 {dimension_numbers = #tpu.dot_dimension_numbers<[2], [1], [1], [2], [0, 0, 0, 1, 1, 2], [0], [0]>} : vector<8x16x16xbf16>, vector<8x16x12xbf16>, vector<8x16x12xf32> -> vector<8x16x12xf32>
    "tpu.trace_stop"() : () -> ()
    %c0_61 = arith.constant 0 : index
    %c0_62 = arith.constant 0 : index
    %c0_63 = arith.constant 0 : index
    %115 = vector.load %arg18[%c0_61, %c0_62, %c0_63] : memref<8x12x16xbf16, #tpu.memory_space<vmem>>, vector<8x12x16xbf16>
    %116 = arith.truncf %114 : vector<8x16x12xf32> to vector<8x16x12xbf16>
    "tpu.trace_start"() <{level = 10 : i32, message = "cah,chv->cav"}> : () -> ()
    %cst_64 = arith.constant dense<0.000000e+00> : vector<8x12x12xf32>
    %117 = tpu.matmul %115, %116, %cst_64 {dimension_numbers = #tpu.dot_dimension_numbers<[2], [1], [1], [2], [0, 0, 0, 1, 1, 2], [0], [0]>} : vector<8x12x16xbf16>, vector<8x16x12xbf16>, vector<8x12x12xf32> -> vector<8x12x12xf32>
    "tpu.trace_stop"() : () -> ()
    %118 = vector.shape_cast %117 : vector<8x12x12xf32> to vector<8x144xf32>
    %cst_65 = arith.constant dense<0.000000e+00> : vector<8xf32>
    %119 = vector.multi_reduction <add>, %118, %cst_65 [1] : vector<8x144xf32> to vector<8xf32>
    %120 = vector.shape_cast %119 : vector<8xf32> to vector<8x1xf32>
    %cst_66 = arith.constant 1.440000e+02 : f32
    %121 = vector.broadcast %cst_66 : f32 to vector<8x1xf32>
    %122 = arith.divf %120, %121 : vector<8x1xf32>
    %123 = vector.broadcast %122 : vector<8x1xf32> to vector<8x144xf32>
    %124 = arith.subf %118, %123 : vector<8x144xf32>
    %125 = arith.mulf %124, %124 : vector<8x144xf32>
    %cst_67 = arith.constant dense<0.000000e+00> : vector<8xf32>
    %126 = vector.multi_reduction <add>, %125, %cst_67 [1] : vector<8x144xf32> to vector<8xf32>
    %127 = vector.shape_cast %126 : vector<8xf32> to vector<8x1xf32>
    %cst_68 = arith.constant 1.440000e+02 : f32
    %128 = vector.broadcast %cst_68 : f32 to vector<8x1xf32>
    %129 = arith.divf %127, %128 : vector<8x1xf32>
    %130 = vector.broadcast %122 : vector<8x1xf32> to vector<8x144xf32>
    %131 = arith.subf %118, %130 : vector<8x144xf32>
    %cst_69 = arith.constant 9.99999974E-6 : f32
    %132 = vector.broadcast %cst_69 : f32 to vector<8x1xf32>
    %133 = arith.addf %129, %132 : vector<8x1xf32>
    %134 = math.rsqrt %133 : vector<8x1xf32>
    %135 = vector.broadcast %134 : vector<8x1xf32> to vector<8x144xf32>
    %136 = arith.mulf %131, %135 : vector<8x144xf32>
    %cst_70 = arith.constant 0.000000e+00 : f32
    %137 = vector.broadcast %cst_70 : f32 to vector<8x144xf32>
    %138 = arith.maximumf %136, %137 : vector<8x144xf32>
    %c0_71 = arith.constant 0 : index
    %c0_72 = arith.constant 0 : index
    %139 = vector.load %arg21[%c0_71, %c0_72] : memref<1x144xf32, #tpu.memory_space<vmem>>, vector<1x144xf32>
    %140 = vector.broadcast %139 : vector<1x144xf32> to vector<8x144xf32>
    %141 = arith.mulf %138, %140 : vector<8x144xf32>
    %cst_73 = arith.constant dense<0.000000e+00> : vector<8xf32>
    %142 = vector.multi_reduction <add>, %141, %cst_73 [1] : vector<8x144xf32> to vector<8xf32>
    %143 = vector.shape_cast %142 : vector<8xf32> to vector<8x1xf32>
    %144 = vector.shape_cast %138 : vector<8x144xf32> to vector<8x12x12xf32>
    %145 = arith.truncf %144 : vector<8x12x12xf32> to vector<8x12x12xbf16>
    %146 = tpu.concatenate %41, %75, %109, %143 in 0 : vector<8x1xf32>, vector<8x1xf32>, vector<8x1xf32>, vector<8x1xf32> -> vector<32x1xf32>
    %c0_74 = arith.constant 0 : index
    %c0_75 = arith.constant 0 : index
    %147 = vector.load %arg24[%c0_74, %c0_75] : memref<32x32xf32, #tpu.memory_space<vmem>>, vector<32x32xf32>
    %cst_76 = arith.constant dense<0.000000e+00> : vector<32x1xf32>
    %148 = tpu.matmul %147, %146, %cst_76 {dimension_numbers = #tpu.dot_dimension_numbers<[1], [0], [0], [1], [0, 0, 1, 1], [], []>} : vector<32x32xf32>, vector<32x1xf32>, vector<32x1xf32> -> vector<32x1xf32>
    %c0_77 = arith.constant 0 : index
    %c0_78 = arith.constant 0 : index
    %149 = vector.load %arg25[%c0_77, %c0_78] : memref<32x1xf32, #tpu.memory_space<vmem>>, vector<32x1xf32>
    %150 = arith.addf %148, %149 : vector<32x1xf32>
    %cst_79 = arith.constant 0.000000e+00 : f32
    %151 = vector.broadcast %cst_79 : f32 to vector<32x1xf32>
    %152 = arith.maximumf %150, %151 : vector<32x1xf32>
    %c0_80 = arith.constant 0 : index
    %c0_81 = arith.constant 0 : index
    %153 = vector.load %arg26[%c0_80, %c0_81] : memref<7x32xf32, #tpu.memory_space<vmem>>, vector<7x32xf32>
    %cst_82 = arith.constant dense<0.000000e+00> : vector<7x1xf32>
    %154 = tpu.matmul %153, %152, %cst_82 {dimension_numbers = #tpu.dot_dimension_numbers<[1], [0], [0], [1], [0, 0, 1, 1], [], []>} : vector<7x32xf32>, vector<32x1xf32>, vector<7x1xf32> -> vector<7x1xf32>
    %c0_83 = arith.constant 0 : index
    %c0_84 = arith.constant 0 : index
    %155 = vector.load %arg27[%c0_83, %c0_84] : memref<7x1xf32, #tpu.memory_space<vmem>>, vector<7x1xf32>
    %156 = arith.addf %154, %155 : vector<7x1xf32>
    %157 = vector.extract_strided_slice %156 {offsets = [0, 0], sizes = [4, 1], strides = [1, 1]} : vector<7x1xf32> to vector<4x1xf32>
    %cst_85 = arith.constant dense<0xFF800000> : vector<1xf32>
    %158 = vector.multi_reduction <maximumf>, %157, %cst_85 [0] : vector<4x1xf32> to vector<1xf32>
    %159 = vector.shape_cast %158 : vector<1xf32> to vector<1x1xf32>
    %160 = vector.broadcast %159 : vector<1x1xf32> to vector<4x1xf32>
    %161 = arith.subf %157, %160 : vector<4x1xf32>
    %162 = math.exp %161 : vector<4x1xf32>
    %cst_86 = arith.constant dense<0.000000e+00> : vector<1xf32>
    %163 = vector.multi_reduction <add>, %162, %cst_86 [0] : vector<4x1xf32> to vector<1xf32>
    %164 = vector.shape_cast %163 : vector<1xf32> to vector<1x1xf32>
    %165 = vector.broadcast %164 : vector<1x1xf32> to vector<4x1xf32>
    %166 = arith.divf %162, %165 : vector<4x1xf32>
    %167 = vector.extract_strided_slice %156 {offsets = [4, 0], sizes = [3, 1], strides = [1, 1]} : vector<7x1xf32> to vector<3x1xf32>
    %168 = arith.negf %167 : vector<3x1xf32>
    %169 = math.exp %168 : vector<3x1xf32>
    %cst_87 = arith.constant 1.000000e+00 : f32
    %170 = vector.broadcast %cst_87 : f32 to vector<3x1xf32>
    %171 = arith.addf %170, %169 : vector<3x1xf32>
    %172 = arith.divf %170, %171 : vector<3x1xf32>
    %173 = vector.extract_strided_slice %172 {offsets = [0, 0], sizes = [1, 1], strides = [1, 1]} : vector<3x1xf32> to vector<1x1xf32>
    %cst_88 = arith.constant 1.000000e+01 : f32
    %174 = vector.broadcast %cst_88 : f32 to vector<1x1xf32>
    %175 = arith.mulf %173, %174 : vector<1x1xf32>
    %cst_89 = arith.constant 5.000000e+00 : f32
    %176 = vector.broadcast %cst_89 : f32 to vector<1x1xf32>
    %177 = arith.addf %176, %175 : vector<1x1xf32>
    %178 = vector.extract_strided_slice %172 {offsets = [1, 0], sizes = [1, 1], strides = [1, 1]} : vector<3x1xf32> to vector<1x1xf32>
    %cst_90 = arith.constant 4.800000e+00 : f32
    %179 = vector.broadcast %cst_90 : f32 to vector<1x1xf32>
    %180 = arith.mulf %178, %179 : vector<1x1xf32>
    %cst_91 = arith.constant 1.500000e+01 : f32
    %181 = vector.broadcast %cst_91 : f32 to vector<1x1xf32>
    %182 = arith.addf %181, %180 : vector<1x1xf32>
    %183 = vector.extract_strided_slice %172 {offsets = [2, 0], sizes = [1, 1], strides = [1, 1]} : vector<3x1xf32> to vector<1x1xf32>
    %cst_92 = arith.constant 1.600000e+00 : f32
    %184 = vector.broadcast %cst_92 : f32 to vector<1x1xf32>
    %185 = arith.mulf %183, %184 : vector<1x1xf32>
    %186 = arith.addf %182, %185 : vector<1x1xf32>
    %187 = tpu.concatenate %177, %182, %186 in 0 : vector<1x1xf32>, vector<1x1xf32>, vector<1x1xf32> -> vector<3x1xf32>
    %cst_93 = arith.constant 0.000000e+00 : f32
    %188 = vector.broadcast %cst_93 : f32 to vector<8x16x16xf32>
    %c0_94 = arith.constant 0 : index
    %c0_95 = arith.constant 0 : index
    %c0_96 = arith.constant 0 : index
    %189 = vector.load %arg4[%c0_94, %c0_95, %c0_96] : memref<8x4x16xbf16, #tpu.memory_space<vmem>>, vector<8x4x16xbf16>
    "tpu.trace_start"() <{level = 10 : i32, message = "cav,cvw->caw"}> : () -> ()
    %cst_97 = arith.constant dense<0.000000e+00> : vector<8x4x16xf32>
    %190 = tpu.matmul %43, %189, %cst_97 {dimension_numbers = #tpu.dot_dimension_numbers<[2], [1], [1], [2], [0, 0, 0, 1, 1, 2], [0], [0]>} : vector<8x4x4xbf16>, vector<8x4x16xbf16>, vector<8x4x16xf32> -> vector<8x4x16xf32>
    "tpu.trace_stop"() : () -> ()
    %c0_98 = arith.constant 0 : index
    %c0_99 = arith.constant 0 : index
    %c0_100 = arith.constant 0 : index
    %191 = vector.load %arg5[%c0_98, %c0_99, %c0_100] : memref<8x16x4xbf16, #tpu.memory_space<vmem>>, vector<8x16x4xbf16>
    %192 = arith.truncf %190 : vector<8x4x16xf32> to vector<8x4x16xbf16>
    "tpu.trace_start"() <{level = 10 : i32, message = "cha,caw->chw"}> : () -> ()
    %cst_101 = arith.constant dense<0.000000e+00> : vector<8x16x16xf32>
    %193 = tpu.matmul %191, %192, %cst_101 {dimension_numbers = #tpu.dot_dimension_numbers<[2], [1], [1], [2], [0, 0, 0, 1, 1, 2], [0], [0]>} : vector<8x16x4xbf16>, vector<8x4x16xbf16>, vector<8x16x16xf32> -> vector<8x16x16xf32>
    "tpu.trace_stop"() : () -> ()
    %194 = vector.extract_strided_slice %166 {offsets = [0, 0], sizes = [1, 1], strides = [1, 1]} : vector<4x1xf32> to vector<1x1xf32>
    %195 = vector.shape_cast %194 : vector<1x1xf32> to vector<1x1x1xf32>
    %196 = vector.broadcast %195 : vector<1x1x1xf32> to vector<8x16x16xf32>
    %197 = arith.mulf %193, %196 : vector<8x16x16xf32>
    %198 = arith.addf %188, %197 : vector<8x16x16xf32>
    %c0_102 = arith.constant 0 : index
    %c0_103 = arith.constant 0 : index
    %c0_104 = arith.constant 0 : index
    %199 = vector.load %arg9[%c0_102, %c0_103, %c0_104] : memref<8x4x16xbf16, #tpu.memory_space<vmem>>, vector<8x4x16xbf16>
    "tpu.trace_start"() <{level = 10 : i32, message = "cav,cvw->caw"}> : () -> ()
    %cst_105 = arith.constant dense<0.000000e+00> : vector<8x4x16xf32>
    %200 = tpu.matmul %77, %199, %cst_105 {dimension_numbers = #tpu.dot_dimension_numbers<[2], [1], [1], [2], [0, 0, 0, 1, 1, 2], [0], [0]>} : vector<8x4x4xbf16>, vector<8x4x16xbf16>, vector<8x4x16xf32> -> vector<8x4x16xf32>
    "tpu.trace_stop"() : () -> ()
    %c0_106 = arith.constant 0 : index
    %c0_107 = arith.constant 0 : index
    %c0_108 = arith.constant 0 : index
    %201 = vector.load %arg10[%c0_106, %c0_107, %c0_108] : memref<8x16x4xbf16, #tpu.memory_space<vmem>>, vector<8x16x4xbf16>
    %202 = arith.truncf %200 : vector<8x4x16xf32> to vector<8x4x16xbf16>
    "tpu.trace_start"() <{level = 10 : i32, message = "cha,caw->chw"}> : () -> ()
    %cst_109 = arith.constant dense<0.000000e+00> : vector<8x16x16xf32>
    %203 = tpu.matmul %201, %202, %cst_109 {dimension_numbers = #tpu.dot_dimension_numbers<[2], [1], [1], [2], [0, 0, 0, 1, 1, 2], [0], [0]>} : vector<8x16x4xbf16>, vector<8x4x16xbf16>, vector<8x16x16xf32> -> vector<8x16x16xf32>
    "tpu.trace_stop"() : () -> ()
    %204 = vector.extract_strided_slice %166 {offsets = [1, 0], sizes = [1, 1], strides = [1, 1]} : vector<4x1xf32> to vector<1x1xf32>
    %205 = vector.shape_cast %204 : vector<1x1xf32> to vector<1x1x1xf32>
    %206 = vector.broadcast %205 : vector<1x1x1xf32> to vector<8x16x16xf32>
    %207 = arith.mulf %203, %206 : vector<8x16x16xf32>
    %208 = arith.addf %198, %207 : vector<8x16x16xf32>
    %c0_110 = arith.constant 0 : index
    %c0_111 = arith.constant 0 : index
    %c0_112 = arith.constant 0 : index
    %209 = vector.load %arg14[%c0_110, %c0_111, %c0_112] : memref<8x8x16xbf16, #tpu.memory_space<vmem>>, vector<8x8x16xbf16>
    "tpu.trace_start"() <{level = 10 : i32, message = "cav,cvw->caw"}> : () -> ()
    %cst_113 = arith.constant dense<0.000000e+00> : vector<8x8x16xf32>
    %210 = tpu.matmul %111, %209, %cst_113 {dimension_numbers = #tpu.dot_dimension_numbers<[2], [1], [1], [2], [0, 0, 0, 1, 1, 2], [0], [0]>} : vector<8x8x8xbf16>, vector<8x8x16xbf16>, vector<8x8x16xf32> -> vector<8x8x16xf32>
    "tpu.trace_stop"() : () -> ()
    %c0_114 = arith.constant 0 : index
    %c0_115 = arith.constant 0 : index
    %c0_116 = arith.constant 0 : index
    %211 = vector.load %arg15[%c0_114, %c0_115, %c0_116] : memref<8x16x8xbf16, #tpu.memory_space<vmem>>, vector<8x16x8xbf16>
    %212 = arith.truncf %210 : vector<8x8x16xf32> to vector<8x8x16xbf16>
    "tpu.trace_start"() <{level = 10 : i32, message = "cha,caw->chw"}> : () -> ()
    %cst_117 = arith.constant dense<0.000000e+00> : vector<8x16x16xf32>
    %213 = tpu.matmul %211, %212, %cst_117 {dimension_numbers = #tpu.dot_dimension_numbers<[2], [1], [1], [2], [0, 0, 0, 1, 1, 2], [0], [0]>} : vector<8x16x8xbf16>, vector<8x8x16xbf16>, vector<8x16x16xf32> -> vector<8x16x16xf32>
    "tpu.trace_stop"() : () -> ()
    %214 = vector.extract_strided_slice %166 {offsets = [2, 0], sizes = [1, 1], strides = [1, 1]} : vector<4x1xf32> to vector<1x1xf32>
    %215 = vector.shape_cast %214 : vector<1x1xf32> to vector<1x1x1xf32>
    %216 = vector.broadcast %215 : vector<1x1x1xf32> to vector<8x16x16xf32>
    %217 = arith.mulf %213, %216 : vector<8x16x16xf32>
    %218 = arith.addf %208, %217 : vector<8x16x16xf32>
    %c0_118 = arith.constant 0 : index
    %c0_119 = arith.constant 0 : index
    %c0_120 = arith.constant 0 : index
    %219 = vector.load %arg19[%c0_118, %c0_119, %c0_120] : memref<8x12x16xbf16, #tpu.memory_space<vmem>>, vector<8x12x16xbf16>
    "tpu.trace_start"() <{level = 10 : i32, message = "cav,cvw->caw"}> : () -> ()
    %cst_121 = arith.constant dense<0.000000e+00> : vector<8x12x16xf32>
    %220 = tpu.matmul %145, %219, %cst_121 {dimension_numbers = #tpu.dot_dimension_numbers<[2], [1], [1], [2], [0, 0, 0, 1, 1, 2], [0], [0]>} : vector<8x12x12xbf16>, vector<8x12x16xbf16>, vector<8x12x16xf32> -> vector<8x12x16xf32>
    "tpu.trace_stop"() : () -> ()
    %c0_122 = arith.constant 0 : index
    %c0_123 = arith.constant 0 : index
    %c0_124 = arith.constant 0 : index
    %221 = vector.load %arg20[%c0_122, %c0_123, %c0_124] : memref<8x16x12xbf16, #tpu.memory_space<vmem>>, vector<8x16x12xbf16>
    %222 = arith.truncf %220 : vector<8x12x16xf32> to vector<8x12x16xbf16>
    "tpu.trace_start"() <{level = 10 : i32, message = "cha,caw->chw"}> : () -> ()
    %cst_125 = arith.constant dense<0.000000e+00> : vector<8x16x16xf32>
    %223 = tpu.matmul %221, %222, %cst_125 {dimension_numbers = #tpu.dot_dimension_numbers<[2], [1], [1], [2], [0, 0, 0, 1, 1, 2], [0], [0]>} : vector<8x16x12xbf16>, vector<8x12x16xbf16>, vector<8x16x16xf32> -> vector<8x16x16xf32>
    "tpu.trace_stop"() : () -> ()
    %224 = vector.extract_strided_slice %166 {offsets = [3, 0], sizes = [1, 1], strides = [1, 1]} : vector<4x1xf32> to vector<1x1xf32>
    %225 = vector.shape_cast %224 : vector<1x1xf32> to vector<1x1x1xf32>
    %226 = vector.broadcast %225 : vector<1x1x1xf32> to vector<8x16x16xf32>
    %227 = arith.mulf %223, %226 : vector<8x16x16xf32>
    %228 = arith.addf %218, %227 : vector<8x16x16xf32>
    %229 = vector.shape_cast %228 : vector<8x16x16xf32> to vector<8x256xf32>
    %c0_126 = arith.constant 0 : index
    %c0_127 = arith.constant 0 : index
    %c0_128 = arith.constant 0 : index
    %230 = vector.load %arg28[%c0_126, %c0_127, %c0_128] : memref<1x8x256xf32, #tpu.memory_space<vmem>>, vector<1x8x256xf32>
    %231 = vector.shape_cast %230 : vector<1x8x256xf32> to vector<8x256xf32>
    %232 = vector.shape_cast %229 : vector<8x256xf32> to vector<1x8x256xf32>
    tpu.vector_store %arg28[%c0_126, %c0_127, %c0_128], %232 {strides = array<i32>} : memref<1x8x256xf32, #tpu.memory_space<vmem>>, vector<1x8x256xf32>,
    %c0_129 = arith.constant 0 : index
    %c0_130 = arith.constant 0 : index
    %c0_131 = arith.constant 0 : index
    %233 = vector.load %arg29[%c0_129, %c0_130, %c0_131] : memref<1x4x1xf32, #tpu.memory_space<vmem>>, vector<1x4x1xf32>
    %234 = vector.shape_cast %233 : vector<1x4x1xf32> to vector<4x1xf32>
    %235 = vector.shape_cast %166 : vector<4x1xf32> to vector<1x4x1xf32>
    tpu.vector_store %arg29[%c0_129, %c0_130, %c0_131], %235 {strides = array<i32>} : memref<1x4x1xf32, #tpu.memory_space<vmem>>, vector<1x4x1xf32>,
    %c0_132 = arith.constant 0 : index
    %c0_133 = arith.constant 0 : index
    %c0_134 = arith.constant 0 : index
    %236 = vector.load %arg30[%c0_132, %c0_133, %c0_134] : memref<1x3x1xf32, #tpu.memory_space<vmem>>, vector<1x3x1xf32>
    %237 = vector.shape_cast %236 : vector<1x3x1xf32> to vector<3x1xf32>
    %238 = vector.shape_cast %187 : vector<3x1xf32> to vector<1x3x1xf32>
    tpu.vector_store %arg30[%c0_132, %c0_133, %c0_134], %238 {strides = array<i32>} : memref<1x3x1xf32, #tpu.memory_space<vmem>>, vector<1x3x1xf32>,
    return
  }
  func.func @transform_0(%arg0: i32) -> (i32, i32, i32) {
    %c0_i32 = arith.constant 0 : i32
    %c0_i32_0 = arith.constant 0 : i32
    %c0_i32_1 = arith.constant 0 : i32
    return %arg0, %c0_i32, %c0_i32_0 : i32, i32, i32
  }
  func.func @transform_1(%arg0: i32) -> (i32, i32, i32) {
    %c0_i32 = arith.constant 0 : i32
    %c0_i32_0 = arith.constant 0 : i32
    %c0_i32_1 = arith.constant 0 : i32
    %c0_i32_2 = arith.constant 0 : i32
    return %c0_i32, %c0_i32_0, %c0_i32_1 : i32, i32, i32
  }
  func.func @transform_2(%arg0: i32) -> (i32, i32, i32) {
    %c0_i32 = arith.constant 0 : i32
    %c0_i32_0 = arith.constant 0 : i32
    %c0_i32_1 = arith.constant 0 : i32
    %c0_i32_2 = arith.constant 0 : i32
    return %c0_i32, %c0_i32_0, %c0_i32_1 : i32, i32, i32
  }
  func.func @transform_3(%arg0: i32) -> (i32, i32, i32) {
    %c0_i32 = arith.constant 0 : i32
    %c0_i32_0 = arith.constant 0 : i32
    %c0_i32_1 = arith.constant 0 : i32
    %c0_i32_2 = arith.constant 0 : i32
    return %c0_i32, %c0_i32_0, %c0_i32_1 : i32, i32, i32
  }
  func.func @transform_4(%arg0: i32) -> (i32, i32, i32) {
    %c0_i32 = arith.constant 0 : i32
    %c0_i32_0 = arith.constant 0 : i32
    %c0_i32_1 = arith.constant 0 : i32
    %c0_i32_2 = arith.constant 0 : i32
    return %c0_i32, %c0_i32_0, %c0_i32_1 : i32, i32, i32
  }
  func.func @transform_5(%arg0: i32) -> (i32, i32) {
    %c0_i32 = arith.constant 0 : i32
    %c0_i32_0 = arith.constant 0 : i32
    %c0_i32_1 = arith.constant 0 : i32
    return %c0_i32, %c0_i32_0 : i32, i32
  }
  func.func @transform_6(%arg0: i32) -> (i32, i32, i32) {
    %c0_i32 = arith.constant 0 : i32
    %c0_i32_0 = arith.constant 0 : i32
    %c0_i32_1 = arith.constant 0 : i32
    %c0_i32_2 = arith.constant 0 : i32
    return %c0_i32, %c0_i32_0, %c0_i32_1 : i32, i32, i32
  }
  func.func @transform_7(%arg0: i32) -> (i32, i32, i32) {
    %c0_i32 = arith.constant 0 : i32
    %c0_i32_0 = arith.constant 0 : i32
    %c0_i32_1 = arith.constant 0 : i32
    %c0_i32_2 = arith.constant 0 : i32
    return %c0_i32, %c0_i32_0, %c0_i32_1 : i32, i32, i32
  }
  func.func @transform_8(%arg0: i32) -> (i32, i32, i32) {
    %c0_i32 = arith.constant 0 : i32
    %c0_i32_0 = arith.constant 0 : i32
    %c0_i32_1 = arith.constant 0 : i32
    %c0_i32_2 = arith.constant 0 : i32
    return %c0_i32, %c0_i32_0, %c0_i32_1 : i32, i32, i32
  }
  func.func @transform_9(%arg0: i32) -> (i32, i32, i32) {
    %c0_i32 = arith.constant 0 : i32
    %c0_i32_0 = arith.constant 0 : i32
    %c0_i32_1 = arith.constant 0 : i32
    %c0_i32_2 = arith.constant 0 : i32
    return %c0_i32, %c0_i32_0, %c0_i32_1 : i32, i32, i32
  }
  func.func @transform_10(%arg0: i32) -> (i32, i32) {
    %c0_i32 = arith.constant 0 : i32
    %c0_i32_0 = arith.constant 0 : i32
    %c0_i32_1 = arith.constant 0 : i32
    return %c0_i32, %c0_i32_0 : i32, i32
  }
  func.func @transform_11(%arg0: i32) -> (i32, i32, i32) {
    %c0_i32 = arith.constant 0 : i32
    %c0_i32_0 = arith.constant 0 : i32
    %c0_i32_1 = arith.constant 0 : i32
    %c0_i32_2 = arith.constant 0 : i32
    return %c0_i32, %c0_i32_0, %c0_i32_1 : i32, i32, i32
  }
  func.func @transform_12(%arg0: i32) -> (i32, i32, i32) {
    %c0_i32 = arith.constant 0 : i32
    %c0_i32_0 = arith.constant 0 : i32
    %c0_i32_1 = arith.constant 0 : i32
    %c0_i32_2 = arith.constant 0 : i32
    return %c0_i32, %c0_i32_0, %c0_i32_1 : i32, i32, i32
  }
  func.func @transform_13(%arg0: i32) -> (i32, i32, i32) {
    %c0_i32 = arith.constant 0 : i32
    %c0_i32_0 = arith.constant 0 : i32
    %c0_i32_1 = arith.constant 0 : i32
    %c0_i32_2 = arith.constant 0 : i32
    return %c0_i32, %c0_i32_0, %c0_i32_1 : i32, i32, i32
  }
  func.func @transform_14(%arg0: i32) -> (i32, i32, i32) {
    %c0_i32 = arith.constant 0 : i32
    %c0_i32_0 = arith.constant 0 : i32
    %c0_i32_1 = arith.constant 0 : i32
    %c0_i32_2 = arith.constant 0 : i32
    return %c0_i32, %c0_i32_0, %c0_i32_1 : i32, i32, i32
  }
  func.func @transform_15(%arg0: i32) -> (i32, i32) {
    %c0_i32 = arith.constant 0 : i32
    %c0_i32_0 = arith.constant 0 : i32
    %c0_i32_1 = arith.constant 0 : i32
    return %c0_i32, %c0_i32_0 : i32, i32
  }
  func.func @transform_16(%arg0: i32) -> (i32, i32, i32) {
    %c0_i32 = arith.constant 0 : i32
    %c0_i32_0 = arith.constant 0 : i32
    %c0_i32_1 = arith.constant 0 : i32
    %c0_i32_2 = arith.constant 0 : i32
    return %c0_i32, %c0_i32_0, %c0_i32_1 : i32, i32, i32
  }
  func.func @transform_17(%arg0: i32) -> (i32, i32, i32) {
    %c0_i32 = arith.constant 0 : i32
    %c0_i32_0 = arith.constant 0 : i32
    %c0_i32_1 = arith.constant 0 : i32
    %c0_i32_2 = arith.constant 0 : i32
    return %c0_i32, %c0_i32_0, %c0_i32_1 : i32, i32, i32
  }
  func.func @transform_18(%arg0: i32) -> (i32, i32, i32) {
    %c0_i32 = arith.constant 0 : i32
    %c0_i32_0 = arith.constant 0 : i32
    %c0_i32_1 = arith.constant 0 : i32
    %c0_i32_2 = arith.constant 0 : i32
    return %c0_i32, %c0_i32_0, %c0_i32_1 : i32, i32, i32
  }
  func.func @transform_19(%arg0: i32) -> (i32, i32, i32) {
    %c0_i32 = arith.constant 0 : i32
    %c0_i32_0 = arith.constant 0 : i32
    %c0_i32_1 = arith.constant 0 : i32
    %c0_i32_2 = arith.constant 0 : i32
    return %c0_i32, %c0_i32_0, %c0_i32_1 : i32, i32, i32
  }
  func.func @transform_20(%arg0: i32) -> (i32, i32) {
    %c0_i32 = arith.constant 0 : i32
    %c0_i32_0 = arith.constant 0 : i32
    %c0_i32_1 = arith.constant 0 : i32
    return %c0_i32, %c0_i32_0 : i32, i32
  }
  func.func @transform_21(%arg0: i32) -> (i32, i32) {
    %c0_i32 = arith.constant 0 : i32
    %c0_i32_0 = arith.constant 0 : i32
    %c0_i32_1 = arith.constant 0 : i32
    return %c0_i32, %c0_i32_0 : i32, i32
  }
  func.func @transform_22(%arg0: i32) -> (i32, i32) {
    %c0_i32 = arith.constant 0 : i32
    %c0_i32_0 = arith.constant 0 : i32
    %c0_i32_1 = arith.constant 0 : i32
    return %c0_i32, %c0_i32_0 : i32, i32
  }
  func.func @transform_23(%arg0: i32) -> (i32, i32) {
    %c0_i32 = arith.constant 0 : i32
    %c0_i32_0 = arith.constant 0 : i32
    %c0_i32_1 = arith.constant 0 : i32
    return %c0_i32, %c0_i32_0 : i32, i32
  }
  func.func @transform_24(%arg0: i32) -> (i32, i32) {
    %c0_i32 = arith.constant 0 : i32
    %c0_i32_0 = arith.constant 0 : i32
    %c0_i32_1 = arith.constant 0 : i32
    return %c0_i32, %c0_i32_0 : i32, i32
  }
  func.func @transform_25(%arg0: i32) -> (i32, i32) {
    %c0_i32 = arith.constant 0 : i32
    %c0_i32_0 = arith.constant 0 : i32
    %c0_i32_1 = arith.constant 0 : i32
    return %c0_i32, %c0_i32_0 : i32, i32
  }
  func.func @transform_26(%arg0: i32) -> (i32, i32) {
    %c0_i32 = arith.constant 0 : i32
    %c0_i32_0 = arith.constant 0 : i32
    %c0_i32_1 = arith.constant 0 : i32
    return %c0_i32, %c0_i32_0 : i32, i32
  }
  func.func @transform_27(%arg0: i32) -> (i32, i32, i32) {
    %c0_i32 = arith.constant 0 : i32
    %c0_i32_0 = arith.constant 0 : i32
    %c0_i32_1 = arith.constant 0 : i32
    return %arg0, %c0_i32, %c0_i32_0 : i32, i32, i32
  }
  func.func @transform_28(%arg0: i32) -> (i32, i32, i32) {
    %c0_i32 = arith.constant 0 : i32
    %c0_i32_0 = arith.constant 0 : i32
    %c0_i32_1 = arith.constant 0 : i32
    return %arg0, %c0_i32, %c0_i32_0 : i32, i32, i32
  }
  func.func @transform_29(%arg0: i32) -> (i32, i32, i32) {
    %c0_i32 = arith.constant 0 : i32
    %c0_i32_0 = arith.constant 0 : i32
    %c0_i32_1 = arith.constant 0 : i32
    return %arg0, %c0_i32, %c0_i32_0 : i32, i32, i32
  }
}

</mosaic_0001>

<bundles_post_ra>
// kernel: tpu_custom_call.1
= control target key start
LH: loop header
LB: loop body
LE: loop exit
PB: predicated region body
PF: predicated region fallthrough
CT: control target
= control target key end

     0   :  { %s8516_s6 = smov 1   ;;  %s8517_s10 = smov 2   ;;  %s11125_s0 = inlined_call_operand.smem [shape: u32[30], index: -1, kind: input, shape index: {}] }
   0x1   :  { %s8586_s5 = sld [smem:[%s11125_s0]]   ;;  %s8518_s14 = smov 3  }
   0x2   :  { %s8591_s9 = sld [smem:[%s11125_s0 + %s8516_s6]]   ;;  %s8519_s18 = smov 4  }
   0x3   :  { %s8596_s13 = sld [smem:[%s11125_s0 + %s8517_s10]]   ;;  %s8520_s22 = smov 5  }
   0x4   :  { %s8601_s17 = sld [smem:[%s11125_s0 + %s8518_s14]]   ;;  %s8521_s26 = smov 6  }
   0x5   :  { %s8606_s21 = sld [smem:[%s11125_s0 + %s8519_s18]]   ;;  %s8522_s30 = smov 7  }
   0x6   :  { %s8611_s25 = sld [smem:[%s11125_s0 + %s8520_s22]]   ;;  %s8523_s4 = smov 8  }
   0x7   :  { %11166 = sst [smem:[#allocation5_spill]] %s8586_s5  ;;  %s8524_s10 = smov 9  }
   0x8   :  { %11167 = sst [smem:[#allocation6_spill]] %s8591_s9  ;;  %s8525_s15 = smov 10  }
   0x9   :  { %s8616_s29 = sld [smem:[%s11125_s0 + %s8521_s26]]   ;;  %s8526_s20 = smov 11  }
   0xa   :  { %11168 = sst [smem:[#allocation7_spill]] %s8601_s17  ;;  %s8527_s26 = smov 12  }
   0xb   :  { %11169 = sst [smem:[#allocation8_spill]] %s8606_s21  ;;  %s8528_s1 = smov 13  }
   0xc   :  { %11170 = sst [smem:[#allocation9_spill]] %s8611_s25  ;;  %s8529_s7 = smov 14  }
   0xd   :  { %s8621_s3 = sld [smem:[%s11125_s0 + %s8522_s30]]   ;;  %s8531_s22 = smov 16  }
   0xe   :  { %s8626_s8 = sld [smem:[%s11125_s0 + %s8523_s4]]   ;;  %s8532_s28 = smov 17  }
   0xf   :  { %s8631_s14 = sld [smem:[%s11125_s0 + %s8524_s10]]  }
  0x10   :  { %s8636_s19 = sld [smem:[%s11125_s0 + %s8525_s15]]   ;;  %s8530_s15 = smov 15  }
  0x11   :  { %s8641_s24 = sld [smem:[%s11125_s0 + %s8526_s20]]  }
  0x12   :  { %s8646_s30 = sld [smem:[%s11125_s0 + %s8527_s26]]  }
  0x13   :  { %11171 = sst [smem:[#allocation10_spill]] %s8621_s3 }
  0x14   :  { %11172 = sst [smem:[#allocation11_spill]] %s8626_s8 }
  0x15   :  { %11173 = sst [smem:[#allocation12_spill]] %s8631_s14 }
  0x16   :  { %s8651_s6 = sld [smem:[%s11125_s0 + %s8528_s1]]  }
  0x17   :  { %s8656_s12 = sld [smem:[%s11125_s0 + %s8529_s7]]   ;;  %s8533_s7 = smov 18  }
  0x18   :  { %s8661_s20 = sld [smem:[%s11125_s0 + %s8530_s15]]   ;;  %s8534_s15 = smov 19  }
  0x19   :  { %s8666_s27 = sld [smem:[%s11125_s0 + %s8531_s22]]   ;;  %s8535_s22 = smov 20  }
  0x1a   :  { %s8671_s4 = sld [smem:[%s11125_s0 + %s8532_s28]]   ;;  %s8536_s28 = smov 21  }
  0x1b   :  { %s8686_s14 = sld [smem:[%s11125_s0 + %s8535_s22]]   ;;  %s8539_s22 = smov 24  }
  0x1c   :  { %11174 = sst [smem:[#allocation13_spill]] %s8651_s6 }
  0x1d   :  { %11175 = sst [smem:[#allocation14_spill]] %s8656_s12 }
  0x1e   :  { %s8676_s12 = sld [smem:[%s11125_s0 + %s8533_s7]]   ;;  %s8537_s7 = smov 22  }
  0x1f   :  { %s8681_s6 = sld [smem:[%s11125_s0 + %s8534_s15]]   ;;  %s8538_s15 = smov 23  }
  0x20   :  { %11176 = sst [smem:[#allocation15_spill]] %s8671_s4 }
  0x21   :  { %s8691_s8 = sld [smem:[%s11125_s0 + %s8536_s28]]   ;;  %s8540_s28 = smov 25  }
  0x22   :  { %s8706_s21 = sld [smem:[%s11125_s0 + %s8539_s22]]   ;;  %s8543_s22 = smov 28  }
  0x23   :  { %s8711_s17 = sld [smem:[%s11125_s0 + %s8540_s28]]   ;;  %s8544_s28 = smov 29  }
  0x24   :  { %11177 = sst [smem:[#allocation16_spill]] %s8676_s12 }
  0x25   :  { %11178 = sst [smem:[#allocation17_spill]] %s8681_s6 }
  0x26   :  { %s8696_s12 = sld [smem:[%s11125_s0 + %s8537_s7]]   ;;  %s8541_s7 = smov 26  }
  0x27   :  { %11179 = sst [smem:[#allocation18_spill]] %s8691_s8 }
  0x28   :  { %s8701_s6 = sld [smem:[%s11125_s0 + %s8538_s15]]   ;;  %s8542_s15 = smov 27  }
  0x29   :  { %11182 = sst [smem:[#allocation21_spill]] %s8706_s21 }
  0x2a   :  { %11183 = sst [smem:[#allocation22_spill]] %s8711_s17 }
  0x2b   :  { %s8716_s25 = sld [smem:[%s11125_s0 + %s8541_s7]]  }
  0x2c   :  { %11180 = sst [smem:[#allocation19_spill]] %s8696_s12 }
  0x2d   :  { %s8726_s21 = sld [smem:[%s11125_s0 + %s8543_s22]]  }
  0x2e   :  { %11181 = sst [smem:[#allocation20_spill]] %s8701_s6 }
  0x2f   :  { %s8721_s6 = sld [smem:[%s11125_s0 + %s8542_s15]]  }
  0x30   :  { %s8731_s17 = sld [smem:[%s11125_s0 + %s8544_s28]]  }
  0x31   :  { %65 = vsyncpa [#allocation3], 0 }
  0x32   :  { %67 = vsyncpa [#allocation3 + $0x1], 0  ;;  %s8733_s7 = smov 0   ;;  %s8735_s10 = smov 0  }
  0x33   :  { %s8737_s11 = smov 0   ;;  %s8739_s15 = smov 0  }
  0x34 LB: > { %s11184_s12 = sld [smem:[#allocation19_spill]]  ;;  %s8754_s0 = sadd.s32 4294967295, %s8514_s15   ;;  %s8502_s7 = sphi %s8733_s7, %s11226_s7   ;;  %s8514_s15 = sphi %s8739_s15, %s11223_s15   ;;  %s8510_s11 = sphi %s8737_s11, %s11225_s11   ;;  %s8506_s10 = sphi %s8735_s10, %s11227_s10  }
  0x35   : > { %s11185_s9 = sld [smem:[#allocation6_spill]]  ;;  %s7606_s16 = sadd.s32 4294967294, %s8514_s15  }
  0x36   : > { %s11186_s8 = sld [smem:[#allocation18_spill]]  ;;  %s8758_s18 = sadd.s32 1, %s8514_s15  }
  0x37   : > { %s11187_s4 = sld [smem:[#allocation15_spill]]  ;;  %s652_s22 = sadd.s32 1, %s8510_s11 }
  0x38   : > { %s11188_s3 = sld [smem:[#allocation10_spill]]  ;;  %s649_s23 = ssub.s32 %s8514_s15, %s8758_s18 }
  0x39   : > { %11189 = sst [smem:[#allocation23_spill]] %s8510_s11  ;;  %p662_p0 = scmp.ne.s32.totalorder %s8510_s11, %s8506_s10 }
  0x3a   : > { %11190 = sst [smem:[#allocation24_spill]] %s8758_s18  ;;  %p650_p1 = scmp.eq.s32.totalorder %s649_s23, 0 }
  0x3b   : > { %p663_p2 = scmp.eq.s32.totalorder %s8754_s0, 1  ;;  %p668_p3 = scmp.ne.s32.totalorder %s8506_s10, %s8502_s7 }
  0x3c   : > { %p669_p4 = scmp.eq.s32.totalorder %s7606_s16, 1  ;;  %p7609_p7 = scmp.ge.s32.totalorder %s8514_s15, 1 }
  0x3d   : > { %s8769_s26 = scalar_select %p650_p1, %s8510_s11, %s652_s22  }
  0x3e   : > { %p8771_p5 = por %p663_p2, %p662_p0  ;;  %p8775_p6 = por %p669_p4, %p668_p3 }
  0x3f   : > { %11191 = sst [smem:[#allocation25_spill]] %s8769_s26  ;;  %p825_p8 = scmp.lt.s32.totalorder %s8514_s15, 3 }
  0x41   : > { %p826_p9 = pnand %p7609_p7, %p825_p8 }
  0x42   : > { %s11194_s5 = sld [smem:[#allocation5_spill]] (!%p826_p9)  ;;  %p909_p10 = scmp.lt.s32.totalorder (!%p826_p9), %s8754_s0, 1 }
  0x43   : > { %829 = sbr.rel (%p826_p9) target bundleno = 2883 (0xb43), region = 128  ;;  %s11158_s23 = smov (!%p826_p9), 96  }
  0x44   : > { %s11143_s26 = smov (!%p826_p9), 112   ;;  %s11147_s11 = smov (!%p826_p9), 32  }
  0x45   : > { %s11139_s18 = smov (!%p826_p9), 64  }
  0x48   : > { %v933_v0 = vld [vmem:[%s11184_s12] sm:$0xff]  ;;  %v8545_v1 = vmov 0   ;;  %s8784_s2 = scalar_select %p909_p10, %s8754_s0, 1  ;;  %vm967_vm0 = vcmask 130048   ;;  %v934_v15 = vld [vmem:[%s11184_s12 + $0x8] sm:$0xff]  ;;  %vm1189_vm1 = vcmask 1047556  }
  0x49   : > { %8279 = vset.pattern.permute.xlu0 %v8545_v1  ;;  %8315 = vset.pattern.permute.xlu2 %v8545_v1  ;;  %v8087_v8 = vld [vmem:[%s11186_s8] sm:$0xff]  ;;  %v8088_v16 = vld [vmem:[%s11186_s8 + $0x8] sm:$0xff]  ;;  %v8553_v28 = vmov 1983009808   ;;  %v8554_v52 = vmov 1934713408  }
  0x4a   : > { %939 = vperm.xlu0 %8279, %v933_v0   ;;  %8351 = vset.pattern.permute.xlu1 %v8545_v1  ;;  %s8086_s16 = sshll.u32 %s8784_s2, 5  ;;  %v8090_v27 = vld [vmem:[%s11185_s9 + $0x8] sm:$0xff]  ;;  %v1194_v29 = vunpack.c.l.s4 %v8553_v28  ;;  %v8089_v30 = vld [vmem:[%s11185_s9] sm:$0xff]  ;;  %v1242_v53 = vunpack.c.l.s4 %v8554_v52  ;;  %vm2659_vm2 = vcmask 64512   ;;  %vm3973_vm3 = vcmask 195584   ;;  %s8574_s8 = smov 88  }
  0x4b   : > { %s913_s22 = scalar_lea.vmem %s11194_s5, %s8086_s16  ;;  %s11145_s16 = smov 16   ;;  %2214 = vmatpush.bf16.msra.mxu3 %v8090_v27  ;;  %v8094_v31 = vld [vmem:[%s11185_s9 + $0x28] sm:$0xff]  ;;  %2186 = vmatpush.bf16.msra.mxu2 %v8089_v30  ;;  %v8093_v39 = vld [vmem:[%s11185_s9 + $0x20] sm:$0xff]  ;;  %vm3975_vm4 = vcmask 261120   ;;  %vm3977_vm5 = vcmask 326656   ;;  %vm2661_vm6 = vcmask 97280  }
  0x4c   : > { %v923_v2 = vld [vmem:[%s913_s22] sm:$0xff]  ;;  %v925_v3 = vld [vmem:[%s913_s22 + $0x10] sm:$0xff]  ;;  %v924_v4 = vld [vmem:[%s913_s22 + $0x8] sm:$0xff]  ;;  %s11150_s5 = smov 48   ;;  %v8824_v36 = vunpack.c.0.s8 %v1194_v29  ;;  %vm3979_vm7 = vcmask 392192   ;;  %vm3981_vm8 = vcmask 457728  }
  0x4d   : > { %v927_v5 = vpack.c.bf16 %v925_v3, %v923_v2  ;;  %v926_v6 = vld [vmem:[%s913_s22 + $0x18] sm:$0xff]  ;;  %s11141_s22 = smov 80   ;;  %v935_v2 = vld [vmem:[%s11184_s12 + $0x10] sm:$0xff]  ;;  %vm4874_vm9 = vcmask 293888   ;;  %vm3983_vm10 = vcmask 523264   ;;  %vm4877_vm11 = vcmask 490496  }
  0x4e   : > { %v928_v7 = vpack.c.bf16 %v926_v6, %v924_v4  ;;  %vm4879_vm12 = vcmask 588800   ;;  %vm4881_vm13 = vcmask 687104   ;;  %vm4883_vm14 = vcmask 785408  }
  0x4f   : > { %981 = vmatpush.bf16.msra.mxu0 %v927_v5  ;;  %vm2657_vm15 = vcmask 31744  }
  0x50   : > { %1000 = vmatpush.bf16.msra.mxu1 %v928_v7 }
  0x52   : > { %7623 = vmatmul.msk.bf16.vlgmr.msra.gmra.mxu0 %vm967_vm0, %v8087_v8 }
  0x53   : > { %7625 = vmatmul.msk.bf16.vlgmr.msra.gmra.mxu1 %vm967_vm0, %v8087_v8  ;;  %2298 = vmatpush.bf16.msrb.mxu0 %v8093_v39  ;;  %v8092_v8 = vld [vmem:[%s11185_s9 + $0x18] sm:$0xff] }
  0x54   : > { %2326 = vmatpush.bf16.msrb.mxu1 %v8094_v31  ;;  %2270 = vmatpush.bf16.msrb.mxu3 %v8092_v8 }
  0x62   : > { %7624 = vmatmul.msk.bf16.gmra.mxu0 %vm967_vm0, %v8088_v16 }
  0x63   : > { %7626 = vmatmul.msk.bf16.gmra.mxu1 %vm967_vm0, %v8088_v16 }
  0xbc   : > { %v940_v9 = vpop.permute.xlu0 %939 }
  0xcf   : > { %v983_v10 = vpop.f32.mrf.mxu0 }
  0xd0   : > { %v8791_v11 = vadd.f32 %v983_v10, %v940_v9  ;;  %v1002_v12 = vpop.f32.mrf.mxu1 }
  0xd1   : > { %v1003_v13 = vadd.f32 %v1002_v12, %v940_v9  ;;  %v8091_v9 = vld [vmem:[%s11185_s9 + $0x10] sm:$0xff] }
  0xd2   : > { %v1191_v40 = vrot.slane %v8791_v11, 4  ;;  %2242 = vmatpush.bf16.msrb.mxu2 %v8091_v9 }
  0xd3   : > { %v8295_v14 = vpack.i.bf16 %v1003_v13, %v8791_v11  ;;  %v1303_v37 = vrot.slane %v1003_v13, 4 }
  0xd5   : > { %8296 = vrot.lane.b32.xlu2 %v8295_v14, %s11158_s23  ;;  %8286 = vrot.lane.b32.xlu1 %v8295_v14, %s11145_s16 }
  0xd6   : > { %8281 = vrot.lane.b32.xlu0 %v8295_v14, %s11141_s22 }
  0xd7   : > { %v985_v19 = vpop.f32.mrf.mxu0 }
  0xd8   : > { %v1004_v20 = vpop.f32.mrf.mxu1 }
  0xdd   : > { %8301 = vrot.lane.b32.xlu2 %v8295_v14, %s11150_s5  ;;  %8291 = vrot.lane.b32.xlu1 %v8295_v14, %s11143_s26 }
  0xde   : > { %8306 = vrot.lane.b32.xlu0 %v8295_v14, %s11147_s11 }
  0xe5   : > { %944 = vperm.xlu2 %8315, %v934_v15   ;;  %8311 = vrot.lane.b32.xlu1 %v8295_v14, %s11139_s18 }
 0x12f   : > { %v8297_v17 = vpop.permute.xlu2 %8296 }
 0x130   : > { %v8299_v25 = vunpack.i.h.bf16 %v8297_v17  ;;  %v8298_v26 = vunpack.i.l.bf16 %v8297_v17 }
 0x132   : > { %v1301_v33 = vrot.slane %v8299_v25, 4  ;;  %v1188_v34 = vrot.slane %v8298_v26, 4  ;;  %v1304_v42 = vsel %vm1189_vm1, %v8299_v25, %v1303_v37  ;;  %v1192_v50 = vsel %vm1189_vm1, %v8298_v26, %v1191_v40 }
 0x133   : > { %v8845_v55 = vperm.slane %v1304_v42, %v8824_v36  ;;  %v8877_v25 = vunpack.c.0.s8 %v1242_v53 }
 0x134   : > { %v1302_v44 = vsel %vm1189_vm1, %v1301_v33, %v1003_v13  ;;  %v1190_v45 = vsel %vm1189_vm1, %v1188_v34, %v8791_v11 }
 0x135   : > { %v8842_v54 = vperm.slane %v1302_v44, %v8824_v36  ;;  %v1196_v56 = vperm.slane %v1190_v45, %v8824_v36 }
 0x137   : > { %v8302_v18 = vpop.permute.xlu2 %8301  ;;  %v1351_v28 = vrot.slane %v8842_v54, 4  ;;  %v1239_v29 = vrot.slane %v1196_v56, 4 }
 0x138   : > { %v8304_v43 = vunpack.i.h.bf16 %v8302_v18  ;;  %v8303_v48 = vunpack.i.l.bf16 %v8302_v18 }
 0x13a   : > { %v1339_v57 = vrot.slane %v8304_v43, 4  ;;  %v1227_v63 = vrot.slane %v8303_v48, 4 }
 0x13f   : > { %v945_v21 = vpop.permute.xlu2 %944 }
 0x140   : > { %v8805_v22 = vadd.f32 %v985_v19, %v945_v21  ;;  %v8807_v23 = vadd.f32 %v1004_v20, %v945_v21  ;;  %v8875_v21 = vperm.slane %v1192_v50, %v8824_v36 }
 0x142   : > { %v8811_v24 = vpack.i.bf16 %v8807_v23, %v8805_v22 }
 0x144   : > { %8327 = vrot.lane.b32.xlu2 %v8811_v24, %s11141_s22  ;;  %8322 = vrot.lane.b32.xlu1 %v8811_v24, %s11147_s11 }
 0x145   : > { %8317 = vrot.lane.b32.xlu0 %v8811_v24, %s11158_s23 }
 0x147   : > { %v8287_v32 = vpop.permute.xlu1 %8286 }
 0x148   : > { %v8822_v35 = vpop.permute.xlu0 %8281  ;;  %v8289_v38 = vunpack.i.h.bf16 %v8287_v32  ;;  %v8288_v41 = vunpack.i.l.bf16 %v8287_v32 }
 0x149   : > { %v8284_v46 = vunpack.i.h.bf16 %v8822_v35  ;;  %v8283_v47 = vunpack.i.l.bf16 %v8822_v35 }
 0x14a   : > { %v1337_v49 = vrot.slane %v8289_v38, 4  ;;  %v1225_v51 = vrot.slane %v8288_v41, 4  ;;  %v1340_v1 = vsel %vm1189_vm1, %v8289_v38, %v1339_v57  ;;  %v1228_v10 = vsel %vm1189_vm1, %v8288_v41, %v1227_v63 }
 0x14b   : > { %v1313_v59 = vrot.slane %v8284_v46, 4  ;;  %v1201_v60 = vrot.slane %v8283_v47, 4  ;;  %v8863_v15 = vperm.slane %v1340_v1, %v8824_v36  ;;  %v8881_v30 = vperm.slane %v1228_v10, %v8824_v36 }
 0x14c   : > { %8342 = vrot.lane.b32.xlu2 %v8811_v24, %s11143_s26  ;;  %8337 = vrot.lane.b32.xlu1 %v8811_v24, %s11145_s16  ;;  %v1338_v0 = vsel %vm1189_vm1, %v1337_v49, %v8304_v43  ;;  %v1226_v3 = vsel %vm1189_vm1, %v1225_v51, %v8303_v48 }
 0x14d   : > { %8332 = vrot.lane.b32.xlu0 %v8811_v24, %s11139_s18  ;;  %v8860_v14 = vperm.slane %v1338_v0, %v8824_v36  ;;  %v8867_v17 = vperm.slane %v1226_v3, %v8824_v36 }
 0x14f   : > { %v8292_v58 = vpop.permute.xlu1 %8291  ;;  %v1373_v33 = vrot.slane %v8860_v14, 4  ;;  %v1261_v37 = vrot.slane %v8867_v17, 4 }
 0x150   : > { %v8294_v61 = vunpack.i.h.bf16 %v8292_v58  ;;  %v8293_v62 = vunpack.i.l.bf16 %v8292_v58  ;;  %v8307_v7 = vpop.permute.xlu0 %8306  ;;  %v1273_v58 = vrot.slane %v8881_v30, 4 }
 0x151   : > { %v8308_v20 = vunpack.i.l.bf16 %v8307_v7  ;;  %v8309_v27 = vunpack.i.h.bf16 %v8307_v7 }
 0x152   : > { %v1202_v4 = vsel %vm1189_vm1, %v1201_v60, %v8293_v62  ;;  %v1203_v5 = vrot.slane %v8293_v62, 4  ;;  %v1314_v6 = vsel %vm1189_vm1, %v1313_v59, %v8294_v61  ;;  %v1315_v11 = vrot.slane %v8294_v61, 4 }
 0x153   : > { %v1208_v12 = vperm.slane %v1202_v4, %v8824_v36  ;;  %v1320_v13 = vperm.slane %v1314_v6, %v8824_v36  ;;  %v1213_v38 = vrot.slane %v8308_v20, 4  ;;  %v1325_v44 = vrot.slane %v8309_v27, 4 }
 0x154   : > { %v1204_v16 = vsel %vm1189_vm1, %v8283_v47, %v1203_v5  ;;  %949 = vperm.xlu1 %8351, %v935_v2   ;;  %v1316_v31 = vsel %vm1189_vm1, %v8284_v46, %v1315_v11 }
 0x155   : > { %v8870_v18 = vperm.slane %v1204_v16, %v8824_v36  ;;  %v1237_v19 = vrot.slane %v1208_v12, 4  ;;  %8347 = vrot.lane.b32.xlu0 %v8811_v24, %s11150_s5  ;;  %v1349_v26 = vrot.slane %v1320_v13, 4  ;;  %v1385_v24 = vrot.slane %v8863_v15, 4 }
 0x156   : > { %v1240_v41 = vsel %vm1189_vm1, %v1208_v12, %v1239_v29  ;;  %v8891_v42 = vperm.slane %v1316_v31, %v8824_v36  ;;  %v1352_v50 = vsel %vm1189_vm1, %v1320_v13, %v1351_v28 }
 0x157   : > { %v8312_v32 = vpop.permute.xlu1 %8311  ;;  %v1238_v34 = vsel %vm1189_vm1, %v1237_v19, %v1196_v56  ;;  %v1249_v35 = vrot.slane %v8870_v18, 4  ;;  %v1350_v43 = vsel %vm1189_vm1, %v1349_v26, %v8842_v54  ;;  %v8916_v2 = vperm.slane %v1240_v41, %v8877_v25 }
 0x158   : > { %v8314_v39 = vunpack.i.h.bf16 %v8312_v32  ;;  %v8313_v40 = vunpack.i.l.bf16 %v8312_v32  ;;  %v1244_v48 = vperm.slane %v1238_v34, %v8877_v25  ;;  %v1356_v57 = vperm.slane %v1350_v43, %v8877_v25 }
 0x159   : > { %v1250_v49 = vsel %vm1189_vm1, %v1249_v35, %v8875_v21  ;;  %v1361_v59 = vrot.slane %v8891_v42, 4  ;;  %v8919_v3 = vperm.slane %v1352_v50, %v8877_v25 }
 0x15a   : > { %v1327_v45 = vrot.slane %v8314_v39, 4  ;;  %v1214_v46 = vsel %vm1189_vm1, %v1213_v38, %v8313_v40  ;;  %v1215_v47 = vrot.slane %v8313_v40, 4  ;;  %v1326_v52 = vsel %vm1189_vm1, %v1325_v44, %v8314_v39 }
 0x15b   : > { %v1220_v51 = vperm.slane %v1214_v46, %v8824_v36  ;;  %v1332_v56 = vperm.slane %v1326_v52, %v8824_v36  ;;  %v1287_v0 = vrot.slane %v1244_v48, 4  ;;  %v1256_v1 = vperm.slane %v1250_v49, %v8877_v25 }
 0x15c   : > { %v1216_v53 = vsel %vm1189_vm1, %v8308_v20, %v1215_v47  ;;  %v1328_v54 = vsel %vm1189_vm1, %v8309_v27, %v1327_v45  ;;  %v1399_v9 = vrot.slane %v1356_v57, 4  ;;  %v1362_v16 = vsel %vm1189_vm1, %v1361_v59, %v8845_v55  ;;  %v8096_v45 = vld [vmem:[%s11185_s9 + $0x38] sm:$0xff] }
 0x15d   : > { %v8909_v60 = vperm.slane %v1216_v53, %v8824_v36  ;;  %v1262_v61 = vsel %vm1189_vm1, %v1261_v37, %v1220_v51  ;;  %v1374_v62 = vsel %vm1189_vm1, %v1373_v33, %v1332_v56  ;;  %v8924_v5 = vperm.slane %v1328_v54, %v8824_v36 }
 0x15e   : > { %v1268_v63 = vperm.slane %v1262_v61, %v8877_v25  ;;  %v1263_v6 = vrot.slane %v1220_v51, 4  ;;  %v1380_v8 = vperm.slane %v1374_v62, %v8877_v25  ;;  %v1375_v10 = vrot.slane %v1332_v56, 4  ;;  %v8095_v51 = vld [vmem:[%s11185_s9 + $0x30] sm:$0xff]  ;;  %s11199_s9 = smov 32  }
 0x15f   : > { %v1274_v4 = vsel %vm1189_vm1, %v1273_v58, %v8909_v60  ;;  %v1295_v26 = vrot.slane %v1256_v1, 4  ;;  %v1386_v27 = vsel %vm1189_vm1, %v1385_v24, %v8924_v5  ;;  %v1368_v24 = vperm.slane %v1362_v16, %v8877_v25 }
 0x160   : > { %v1288_v7 = vsel %vm1189_vm1, %v1268_v63, %v1287_v0  ;;  %v1285_v12 = vrot.slane %v1268_v63, 4  ;;  %v1280_v13 = vperm.slane %v1274_v4, %v8877_v25  ;;  %v1400_v19 = vsel %vm1189_vm1, %v1380_v8, %v1399_v9 }
 0x161   : > { %v2087_v11 = vpack.c.bf16 %v1288_v7, %v1288_v7  ;;  %v1397_v20 = vrot.slane %v1380_v8, 4  ;;  %v2088_v28 = vpack.c.bf16 %v1400_v19, %v1400_v19  ;;  %v1264_v32 = vsel %vm1189_vm1, %v8867_v17, %v1263_v6 }
 0x162   : > { %v1286_v31 = vsel %vm1189_vm1, %v1285_v12, %v1244_v48  ;;  %v1296_v35 = vsel %vm1189_vm1, %v1280_v13, %v1295_v26  ;;  %v1376_v37 = vsel %vm1189_vm1, %v8860_v14, %v1375_v10  ;;  %v1392_v41 = vperm.slane %v1386_v27, %v8877_v25 }
 0x163   : > { %v2195_v29 = vunpack.c.l.b16 %v2087_v11  ;;  %v1398_v33 = vsel %vm1189_vm1, %v1397_v20, %v1356_v57  ;;  %v2085_v34 = vpack.c.bf16 %v1286_v31, %v1286_v31  ;;  %v2196_v38 = vunpack.c.l.b16 %v2088_v28 }
 0x164   : > { %v2086_v39 = vpack.c.bf16 %v1398_v33, %v1398_v33  ;;  %v2095_v43 = vpack.c.bf16 %v1296_v35, %v1296_v35  ;;  %v1293_v44 = vrot.slane %v1280_v13, 4  ;;  %v1407_v47 = vrot.slane %v1368_v24, 4 }
 0x165   : > { %v2167_v40 = vunpack.c.l.b16 %v2085_v34  ;;  %v2197_v17 = vpack.c.b16 %v2196_v38, %v2195_v29  ;;  %v1272_v48 = vperm.slane %v1264_v32, %v8877_v25  ;;  %v1405_v14 = vrot.slane %v1392_v41, 4 }
 0x166   : > { %v2168_v46 = vunpack.c.l.b16 %v2086_v39  ;;  %v2307_v49 = vunpack.c.l.b16 %v2095_v43  ;;  %v1294_v50 = vsel %vm1189_vm1, %v1293_v44, %v1256_v1  ;;  %v1408_v53 = vsel %vm1189_vm1, %v1392_v41, %v1407_v47 }
 0x167   : > { %7636 = vmatmul.msk.bf16.vlgmr.msra.gmra.mxu3 %vm967_vm0, %v2197_v17  ;;  %v2093_v54 = vpack.c.bf16 %v1294_v50, %v1294_v50  ;;  %v1384_v56 = vperm.slane %v1376_v37, %v8877_v25  ;;  %v2096_v57 = vpack.c.bf16 %v1408_v53, %v1408_v53  ;;  %v1406_v58 = vsel %vm1189_vm1, %v1405_v14, %v1368_v24 }
 0x168   : > { %v2169_v52 = vpack.c.b16 %v2168_v46, %v2167_v40  ;;  %v1291_v59 = vrot.slane %v8916_v2, 4  ;;  %v1403_v61 = vrot.slane %v8919_v3, 4  ;;  %2382 = vmatpush.bf16.msra.mxu3 %v8096_v45  ;;  %v2094_v62 = vpack.c.bf16 %v1406_v58, %v1406_v58 }
 0x169   : > { %v2279_v63 = vunpack.c.l.b16 %v2093_v54  ;;  %v1289_v0 = vrot.slane %v1272_v48, 4  ;;  %v2308_v1 = vunpack.c.l.b16 %v2096_v57  ;;  %v1401_v7 = vrot.slane %v1384_v56, 4 }
 0x16a   : > { %7631 = vmatmul.msk.bf16.vlgmr.msra.gmra.mxu2 %vm967_vm0, %v2169_v52  ;;  %v1292_v4 = vsel %vm1189_vm1, %v1272_v48, %v1291_v59  ;;  %v1404_v6 = vsel %vm1189_vm1, %v1384_v56, %v1403_v61  ;;  %v2280_v8 = vunpack.c.l.b16 %v2094_v62  ;;  %v1275_v9 = vrot.slane %v8909_v60, 4 }
 0x16b   : > { %2354 = vmatpush.bf16.msra.mxu2 %v8095_v51  ;;  %v2309_v10 = vpack.c.b16 %v2308_v1, %v2307_v49  ;;  %v1290_v11 = vsel %vm1189_vm1, %v1289_v0, %v8916_v2  ;;  %v1402_v12 = vsel %vm1189_vm1, %v1401_v7, %v8919_v3  ;;  %v1387_v13 = vrot.slane %v8924_v5, 4 }
 0x16c   : > { %v2281_v16 = vpack.c.b16 %v2280_v8, %v2279_v63  ;;  %v2091_v19 = vpack.c.bf16 %v1292_v4, %v1292_v4  ;;  %v2092_v20 = vpack.c.bf16 %v1404_v6, %v1404_v6  ;;  %v1363_v26 = vrot.slane %v8845_v55, 4 }
 0x16d   : > { %v1251_v27 = vrot.slane %v8875_v21, 4  ;;  %7656 = vmatmul.msk.bf16.vlgmr.msrb.gmra.mxu1 %vm967_vm0, %v2309_v10  ;;  %v2089_v60 = vpack.c.bf16 %v1290_v11, %v1290_v11  ;;  %v2090_v28 = vpack.c.bf16 %v1402_v12, %v1402_v12  ;;  %v1276_v5 = vsel %vm1189_vm1, %v8881_v30, %v1275_v9 }
 0x16e   : > { %7651 = vmatmul.msk.bf16.vlgmr.msrb.gmra.mxu0 %vm967_vm0, %v2281_v16  ;;  %v1364_v3 = vsel %vm1189_vm1, %v8891_v42, %v1363_v26  ;;  %v1388_v55 = vsel %vm1189_vm1, %v8863_v15, %v1387_v13  ;;  %v2251_v29 = vunpack.c.l.b16 %v2091_v19  ;;  %v2252_v21 = vunpack.c.l.b16 %v2092_v20 }
 0x16f   : > { %v1252_v2 = vsel %vm1189_vm1, %v8870_v18, %v1251_v27  ;;  %v2223_v31 = vunpack.c.l.b16 %v2089_v60  ;;  %v2224_v32 = vunpack.c.l.b16 %v2090_v28  ;;  %v1372_v34 = vperm.slane %v1364_v3, %v8877_v25 }
 0x170   : > { %v1260_v33 = vperm.slane %v1252_v2, %v8877_v25  ;;  %v1284_v35 = vperm.slane %v1276_v5, %v8877_v25  ;;  %v1396_v18 = vperm.slane %v1388_v55, %v8877_v25  ;;  %v2253_v37 = vpack.c.b16 %v2252_v21, %v2251_v29 }
 0x171   : > { %v2225_v42 = vpack.c.b16 %v2224_v32, %v2223_v31  ;;  %v1411_v38 = vrot.slane %v1372_v34, 4  ;;  %v1415_v11 = vrot.slane %v8805_v22, 4  ;;  %v1527_v16 = vrot.slane %v8807_v23, 4 }
 0x172   : > { %v1299_v30 = vrot.slane %v1260_v33, 4  ;;  %v1297_v39 = vrot.slane %v1284_v35, 4  ;;  %v1409_v15 = vrot.slane %v1396_v18, 4 }
 0x173   : > { %v1412_v40 = vsel %vm1189_vm1, %v1396_v18, %v1411_v38 }
 0x174   : > { %v1300_v24 = vsel %vm1189_vm1, %v1284_v35, %v1299_v30  ;;  %v1298_v41 = vsel %vm1189_vm1, %v1297_v39, %v1260_v33  ;;  %v1410_v43 = vsel %vm1189_vm1, %v1409_v15, %v1372_v34  ;;  %v2100_v45 = vpack.c.bf16 %v1412_v40, %v1412_v40 }
 0x175   : > { %v2099_v44 = vpack.c.bf16 %v1300_v24, %v1300_v24  ;;  %v2097_v17 = vpack.c.bf16 %v1298_v41, %v1298_v41  ;;  %v2098_v46 = vpack.c.bf16 %v1410_v43, %v1410_v43 }
 0x176   : > { %v2364_v48 = vunpack.c.l.b16 %v2100_v45 }
 0x177   : > { %7646 = vmatmul.msk.bf16.vlgmr.msrb.gmra.mxu3 %vm967_vm0, %v2253_v37  ;;  %v2363_v47 = vunpack.c.l.b16 %v2099_v44  ;;  %v2335_v49 = vunpack.c.l.b16 %v2097_v17  ;;  %v2336_v50 = vunpack.c.l.b16 %v2098_v46 }
 0x179   : > { %v2365_v14 = vpack.c.b16 %v2364_v48, %v2363_v47  ;;  %v2337_v51 = vpack.c.b16 %v2336_v50, %v2335_v49 }
 0x17a   : > { %7641 = vmatmul.msk.bf16.vlgmr.msrb.gmra.mxu2 %vm967_vm0, %v2225_v42 }
 0x187   : > { %7666 = vmatmul.msk.bf16.vlgmr.msra.gmra.mxu3 %vm967_vm0, %v2365_v14 }
 0x18a   : > { %7661 = vmatmul.msk.bf16.vlgmr.msra.gmra.mxu2 %vm967_vm0, %v2337_v51 }
 0x19e   : > { %v8328_v52 = vpop.permute.xlu2 %8327 }
 0x19f   : > { %v8329_v54 = vunpack.i.l.bf16 %v8328_v52  ;;  %v8330_v58 = vunpack.i.h.bf16 %v8328_v52 }
 0x1a1   : > { %v1425_v59 = vrot.slane %v8329_v54, 4  ;;  %v1537_v63 = vrot.slane %v8330_v58, 4 }
 0x1a6   : > { %v8343_v53 = vpop.permute.xlu2 %8342 }
 0x1a7   : > { %v8345_v56 = vunpack.i.h.bf16 %v8343_v53  ;;  %v8344_v57 = vunpack.i.l.bf16 %v8343_v53 }
 0x1a9   : > { %v1539_v61 = vrot.slane %v8345_v56, 4  ;;  %v1427_v62 = vrot.slane %v8344_v57, 4  ;;  %v1426_v0 = vsel %vm1189_vm1, %v1425_v59, %v8344_v57  ;;  %v1538_v1 = vsel %vm1189_vm1, %v1537_v63, %v8345_v56 }
 0x1aa   : > { %v1432_v7 = vperm.slane %v1426_v0, %v8824_v36  ;;  %v1544_v9 = vperm.slane %v1538_v1, %v8824_v36 }
 0x1ab   : > { %v1540_v4 = vsel %vm1189_vm1, %v8330_v58, %v1539_v61  ;;  %v1428_v6 = vsel %vm1189_vm1, %v8329_v54, %v1427_v62  ;;  %v988_v62 = vpop.f32.mrf.mxu0 }
 0x1ac   : > { %v1548_v10 = vperm.slane %v1540_v4, %v8824_v36  ;;  %v1436_v13 = vperm.slane %v1428_v6, %v8824_v36  ;;  %v1461_v26 = vrot.slane %v1432_v7, 4  ;;  %v1573_v3 = vrot.slane %v1544_v9, 4  ;;  %v1007_v6 = vpop.f32.mrf.mxu1 }
 0x1ae   : > { %v1585_v5 = vrot.slane %v1548_v10, 4  ;;  %v1473_v21 = vrot.slane %v1436_v13, 4 }
 0x1b6   : > { %v8991_v8 = vpop.permute.xlu1 %8322 }
 0x1b7   : > { %v8318_v12 = vpop.permute.xlu0 %8317  ;;  %v8325_v31 = vunpack.i.h.bf16 %v8991_v8  ;;  %v8324_v42 = vunpack.i.l.bf16 %v8991_v8 }
 0x1b8   : > { %v8320_v19 = vunpack.i.h.bf16 %v8318_v12  ;;  %v8319_v20 = vunpack.i.l.bf16 %v8318_v12 }
 0x1b9   : > { %v1549_v49 = vrot.slane %v8325_v31, 4  ;;  %v1437_v50 = vrot.slane %v8324_v42, 4 }
 0x1ba   : > { %v1525_v27 = vrot.slane %v8320_v19, 4  ;;  %v1528_v60 = vsel %vm1189_vm1, %v8320_v19, %v1527_v16  ;;  %v1413_v28 = vrot.slane %v8319_v20, 4  ;;  %v1416_v2 = vsel %vm1189_vm1, %v8319_v20, %v1415_v11 }
 0x1bb   : > { %v1536_v55 = vperm.slane %v1528_v60, %v8824_v36  ;;  %v1424_v29 = vperm.slane %v1416_v2, %v8824_v36 }
 0x1bc   : > { %v1526_v32 = vsel %vm1189_vm1, %v1525_v27, %v8807_v23  ;;  %v1414_v33 = vsel %vm1189_vm1, %v1413_v28, %v8805_v22 }
 0x1bd   : > { %v1532_v34 = vperm.slane %v1526_v32, %v8824_v36  ;;  %v1586_v35 = vsel %vm1189_vm1, %v1585_v5, %v1536_v55  ;;  %v1587_v18 = vrot.slane %v1536_v55, 4  ;;  %v1420_v37 = vperm.slane %v1414_v33, %v8824_v36 }
 0x1be   : > { %v9012_v30 = vperm.slane %v1586_v35, %v8877_v25  ;;  %v1474_v38 = vsel %vm1189_vm1, %v1473_v21, %v1424_v29  ;;  %v1475_v39 = vrot.slane %v1424_v29, 4  ;;  %v9015_v15 = vpop.permute.xlu1 %8337 }
 0x1bf   : > { %v1574_v23 = vsel %vm1189_vm1, %v1573_v3, %v1532_v34  ;;  %v1575_v22 = vrot.slane %v1532_v34, 4  ;;  %v1588_v24 = vsel %vm1189_vm1, %v1548_v10, %v1587_v18  ;;  %v1462_v40 = vsel %vm1189_vm1, %v1461_v26, %v1420_v37  ;;  %v8333_v41 = vpop.permute.xlu0 %8332 }
 0x1c0   : > { %v9021_v43 = vperm.slane %v1574_v23, %v8877_v25  ;;  %v9024_v44 = vperm.slane %v1588_v24, %v8877_v25  ;;  %v1463_v45 = vrot.slane %v1420_v37, 4  ;;  %v9028_v46 = vperm.slane %v1462_v40, %v8877_v25 }
 0x1c1   : > { %v1576_v17 = vsel %vm1189_vm1, %v1544_v9, %v1575_v22  ;;  %v1476_v47 = vsel %vm1189_vm1, %v1436_v13, %v1475_v39  ;;  %v9032_v48 = vperm.slane %v1474_v38, %v8877_v25  ;;  %v1631_v53 = vrot.slane %v9012_v30, 4 }
 0x1c2   : > { %v9035_v14 = vperm.slane %v1576_v17, %v8877_v25  ;;  %v1464_v51 = vsel %vm1189_vm1, %v1432_v7, %v1463_v45  ;;  %v1623_v52 = vrot.slane %v9021_v43, 4  ;;  %v1635_v54 = vrot.slane %v9024_v44, 4 }
 0x1c3   : > { %v9042_v56 = vperm.slane %v1464_v51, %v8877_v25  ;;  %v9045_v57 = vperm.slane %v1476_v47, %v8877_v25  ;;  %v8340_v58 = vunpack.i.h.bf16 %v9015_v15  ;;  %v8339_v59 = vunpack.i.l.bf16 %v9015_v15 }
 0x1c4   : > { %v8335_v61 = vunpack.i.h.bf16 %v8333_v41  ;;  %v1627_v63 = vrot.slane %v9035_v14, 4  ;;  %v1511_v0 = vrot.slane %v9028_v46, 4  ;;  %v1519_v1 = vrot.slane %v9032_v48, 4 }
 0x1c5   : > { %v8334_v4 = vunpack.i.l.bf16 %v8333_v41  ;;  %v1561_v7 = vrot.slane %v8340_v58, 4  ;;  %v1449_v8 = vrot.slane %v8339_v59, 4 }
 0x1c6   : > { %v1550_v9 = vsel %vm1189_vm1, %v1549_v49, %v8335_v61  ;;  %v1551_v10 = vrot.slane %v8335_v61, 4  ;;  %v950_v11 = vpop.permute.xlu1 %949 }
 0x1c7   : > { %v1556_v12 = vperm.slane %v1550_v9, %v8824_v36  ;;  %v1438_v13 = vsel %vm1189_vm1, %v1437_v50, %v8334_v4  ;;  %v1439_v16 = vrot.slane %v8334_v4, 4  ;;  %v9055_v19 = vadd.f32 %v988_v62, %v950_v11  ;;  %v8348_v20 = vpop.permute.xlu0 %8347 }
 0x1c8   : > { %v1552_v26 = vsel %vm1189_vm1, %v8325_v31, %v1551_v10  ;;  %v1444_v27 = vperm.slane %v1438_v13, %v8824_v36  ;;  %v9059_v60 = vadd.f32 %v1007_v6, %v950_v11  ;;  %v8350_v28 = vunpack.i.h.bf16 %v8348_v20 }
 0x1c9   : > { %v1560_v2 = vperm.slane %v1552_v26, %v8824_v36  ;;  %v1599_v3 = vrot.slane %v1556_v12, 4  ;;  %v1440_v5 = vsel %vm1189_vm1, %v8324_v42, %v1439_v16  ;;  %v8349_v55 = vunpack.i.l.bf16 %v8348_v20 }
 0x1ca   : > { %v1448_v29 = vperm.slane %v1440_v5, %v8824_v36  ;;  %v1487_v21 = vrot.slane %v1444_v27, 4  ;;  %v1562_v32 = vsel %vm1189_vm1, %v1561_v7, %v8350_v28  ;;  %v1563_v33 = vrot.slane %v8350_v28, 4 }
 0x1cb   : > { %v1611_v34 = vrot.slane %v1560_v2, 4  ;;  %v1568_v31 = vperm.slane %v1562_v32, %v8824_v36  ;;  %v1450_v35 = vsel %vm1189_vm1, %v1449_v8, %v8349_v55  ;;  %v1451_v18 = vrot.slane %v8349_v55, 4 }
 0x1cc   : > { %v1499_v37 = vrot.slane %v1448_v29, 4  ;;  %v1564_v38 = vsel %vm1189_vm1, %v8340_v58, %v1563_v33  ;;  %v1456_v39 = vperm.slane %v1450_v35, %v8824_v36  ;;  %v9071_v42 = vpack.i.bf16 %v9059_v60, %v9055_v19 }
 0x1cd   : > { %v1572_v15 = vperm.slane %v1564_v38, %v8824_v36  ;;  %v1597_v23 = vrot.slane %v1568_v31, 4  ;;  %v1452_v22 = vsel %vm1189_vm1, %v8339_v59, %v1451_v18  ;;  %v1600_v24 = vsel %vm1189_vm1, %v1568_v31, %v1599_v3 }
 0x1ce   : > { %v1460_v40 = vperm.slane %v1452_v22, %v8824_v36  ;;  %v1485_v41 = vrot.slane %v1456_v39, 4  ;;  %v1488_v45 = vsel %vm1189_vm1, %v1456_v39, %v1487_v21  ;;  %v1608_v17 = vperm.slane %v1600_v24, %v8877_v25  ;;  %8363 = vrot.lane.b32.xlu1 %v9071_v42, %s11141_s22  ;;  %8353 = vrot.lane.b32.xlu2 %v9071_v42, %s11158_s23 }
 0x1cf   : > { %v1609_v47 = vrot.slane %v1572_v15, 4  ;;  %v1496_v49 = vperm.slane %v1488_v45, %v8877_v25  ;;  %v1598_v50 = vsel %vm1189_vm1, %v1597_v23, %v1556_v12  ;;  %v1612_v51 = vsel %vm1189_vm1, %v1572_v15, %v1611_v34  ;;  %8358 = vrot.lane.b32.xlu0 %v9071_v42, %s11147_s11 }
 0x1d0   : > { %v1486_v58 = vsel %vm1189_vm1, %v1485_v41, %v1444_v27  ;;  %v1497_v59 = vrot.slane %v1460_v40, 4  ;;  %v1500_v61 = vsel %vm1189_vm1, %v1460_v40, %v1499_v37  ;;  %v1604_v62 = vperm.slane %v1598_v50, %v8877_v25 }
 0x1d1   : > { %v1515_v4 = vrot.slane %v9042_v56, 4  ;;  %v1492_v6 = vperm.slane %v1486_v58, %v8877_v25  ;;  %v9090_v7 = vperm.slane %v1500_v61, %v8877_v25  ;;  %v1610_v8 = vsel %vm1189_vm1, %v1609_v47, %v1560_v2 }
 0x1d2   : > { %v1523_v9 = vrot.slane %v9045_v57, 4  ;;  %v1498_v10 = vsel %vm1189_vm1, %v1497_v59, %v1448_v29  ;;  %v1616_v11 = vperm.slane %v1610_v8, %v8877_v25  ;;  %v9097_v12 = vperm.slane %v1612_v51, %v8877_v25 }
 0x1d3   : > { %v1504_v13 = vperm.slane %v1498_v10, %v8877_v25  ;;  %v1509_v16 = vrot.slane %v1492_v6, 4  ;;  %v1513_v20 = vrot.slane %v1496_v49, 4  ;;  %v1621_v26 = vrot.slane %v1604_v62, 4 }
 0x1d4   : > { %v1521_v27 = vrot.slane %v9090_v7, 4  ;;  %v1625_v28 = vrot.slane %v1608_v17, 4  ;;  %v1629_v3 = vrot.slane %v1616_v11, 4  ;;  %v1633_v2 = vrot.slane %v9097_v12, 4 }
 0x1d5   : > { %v1517_v5 = vrot.slane %v1504_v13, 4  ;;  %v1512_v55 = vsel %vm1189_vm1, %v1492_v6, %v1511_v0  ;;  %v1624_v29 = vsel %vm1189_vm1, %v1604_v62, %v1623_v52  ;;  %v1510_v33 = vsel %vm1189_vm1, %v1509_v16, %v9028_v46 }
 0x1d6   : > { %8378 = vrot.lane.b32.xlu1 %v9071_v42, %s11143_s26  ;;  %v2103_v21 = vpack.c.bf16 %v1512_v55, %v1512_v55  ;;  %v2104_v32 = vpack.c.bf16 %v1624_v29, %v1624_v29  ;;  %v1622_v34 = vsel %vm1189_vm1, %v1621_v26, %v9021_v43  ;;  %v2101_v31 = vpack.c.bf16 %v1510_v33, %v1510_v33  ;;  %v936_v26 = vld [vmem:[%s11184_s12 + $0x18] sm:$0xff]  ;;  %s8575_s12 = smov 92  }
 0x1d7   : > { %v2102_v35 = vpack.c.bf16 %v1622_v34, %v1622_v34  ;;  %v1516_v18 = vsel %vm1189_vm1, %v1496_v49, %v1515_v4  ;;  %v1628_v0 = vsel %vm1189_vm1, %v1608_v17, %v1627_v63  ;;  %v1520_v43 = vsel %vm1189_vm1, %v1504_v13, %v1519_v1  ;;  %8373 = vrot.lane.b32.xlu0 %v9071_v42, %s11145_s16 }
 0x1d8   : > { %v9122_v52 = vunpack.c.l.b16 %v2103_v21  ;;  %v9124_v37 = vunpack.c.l.b16 %v2104_v32  ;;  %v2107_v38 = vpack.c.bf16 %v1516_v18, %v1516_v18  ;;  %v2108_v39 = vpack.c.bf16 %v1628_v0, %v1628_v0  ;;  %8368 = vrot.lane.b32.xlu2 %v9071_v42, %s11139_s18 }
 0x1d9   : > { %v9126_v15 = vunpack.c.l.b16 %v2101_v31  ;;  %v9128_v46 = vunpack.c.l.b16 %v2102_v35  ;;  %v1632_v23 = vsel %vm1189_vm1, %v1616_v11, %v1631_v53  ;;  %v2111_v40 = vpack.c.bf16 %v1520_v43, %v1520_v43 }
 0x1da   : > { %v2823_v63 = vpack.c.b16 %v9124_v37, %v9122_v52  ;;  %v9138_v22 = vunpack.c.l.b16 %v2107_v38  ;;  %v9140_v24 = vunpack.c.l.b16 %v2108_v39  ;;  %v2112_v45 = vpack.c.bf16 %v1632_v23, %v1632_v23 }
 0x1db   : > { %v2795_v41 = vpack.c.b16 %v9128_v46, %v9126_v15  ;;  %v1514_v17 = vsel %vm1189_vm1, %v1513_v20, %v9042_v56  ;;  %v1626_v1 = vsel %vm1189_vm1, %v1625_v28, %v9035_v14  ;;  %v9150_v47 = vunpack.c.l.b16 %v2111_v40 }
 0x1dc   : > { %v2879_v53 = vpack.c.b16 %v9140_v24, %v9138_v22  ;;  %v2105_v49 = vpack.c.bf16 %v1514_v17, %v1514_v17  ;;  %v2106_v50 = vpack.c.bf16 %v1626_v1, %v1626_v1  ;;  %v9156_v51 = vunpack.c.l.b16 %v2112_v45 }
 0x1dd   : > { %v1518_v56 = vsel %vm1189_vm1, %v1517_v5, %v9032_v48  ;;  %v1630_v14 = vsel %vm1189_vm1, %v1629_v3, %v9012_v30  ;;  %v1524_v58 = vsel %vm1189_vm1, %v9090_v7, %v1523_v9  ;;  %v1636_v48 = vsel %vm1189_vm1, %v9097_v12, %v1635_v54  ;;  %v9195_v3 = vpop.f32.mrf.mxu0 }
 0x1de   : > { %v9164_v59 = vunpack.c.l.b16 %v2105_v49  ;;  %v9166_v61 = vunpack.c.l.b16 %v2106_v50  ;;  %v2109_v62 = vpack.c.bf16 %v1518_v56, %v1518_v56  ;;  %v2110_v4 = vpack.c.bf16 %v1630_v14, %v1630_v14 }
 0x1df   : > { %v2935_v6 = vpack.c.b16 %v9156_v51, %v9150_v47  ;;  %v2115_v8 = vpack.c.bf16 %v1524_v58, %v1524_v58  ;;  %v1522_v30 = vsel %vm1189_vm1, %v1521_v27, %v9045_v57  ;;  %v2116_v11 = vpack.c.bf16 %v1636_v48, %v1636_v48  ;;  %v9191_v27 = vpop.f32.mrf.mxu1  ;;  %954 = vperm.xlu0 %8279, %v936_v26   ;;  %v8097_v26 = vld [vmem:[%s8616_s29] sm:$0xff] }
 0x1e0   : > { %v2851_v7 = vpack.c.b16 %v9166_v61, %v9164_v59  ;;  %v9178_v9 = vunpack.c.l.b16 %v2109_v62  ;;  %v9180_v10 = vunpack.c.l.b16 %v2110_v4  ;;  %v1634_v16 = vsel %vm1189_vm1, %v1633_v2, %v9024_v44  ;;  %8383 = vrot.lane.b32.xlu2 %v9071_v42, %s11150_s5 }
 0x1e1   : > { %v9182_v13 = vunpack.c.l.b16 %v2115_v8  ;;  %v2113_v20 = vpack.c.bf16 %v1522_v30, %v1522_v30  ;;  %v9189_v12 = vunpack.c.l.b16 %v2116_v11  ;;  %v2114_v57 = vpack.c.bf16 %v1634_v16, %v1634_v16  ;;  %v2390_v8 = vld [vmem:[%s8596_s13 + $0x2] sm:$0x3]  ;;  %v8098_v30 = vld [vmem:[%s8616_s29 + $0x8] sm:$0xff] }
 0x1e2   : > { %v2907_v54 = vpack.c.b16 %v9180_v10, %v9178_v9  ;;  %v1751_v22 = vrot.slane %v9059_v60, 4  ;;  %v1639_v24 = vrot.slane %v9055_v19, 4 }
 0x1e3   : > { %v9193_v28 = vunpack.c.l.b16 %v2113_v20  ;;  %v2991_v5 = vpack.c.b16 %v9189_v12, %v9182_v13  ;;  %v9199_v55 = vunpack.c.l.b16 %v2114_v57  ;;  %v2389_v20 = vld [vmem:[%s8596_s13] sm:$0x3] }
 0x1e5   : > { %v2963_v44 = vpack.c.b16 %v9199_v55, %v9193_v28 }
 0x1ea   : > { %v2216_v2 = vpop.f32.mrf.mxu3  ;;  %v2328_v29 = vpop.f32.mrf.mxu1 }
 0x1eb   : > { %v2300_v21 = vpop.f32.mrf.mxu0  ;;  %v2399_v33 = vpack.c.bf16 %v2216_v2, %v2216_v2  ;;  %v2407_v34 = vpack.c.bf16 %v2328_v29, %v2328_v29 }
 0x1ec   : > { %v2405_v38 = vpack.c.bf16 %v2300_v21, %v2300_v21 }
 0x1ed   : > { %v2188_v32 = vpop.f32.mrf.mxu2  ;;  %v2437_v42 = vunpack.c.l.b16 %v2399_v33  ;;  %v2525_v1 = vunpack.c.l.b16 %v2407_v34 }
 0x1ee   : > { %v2397_v35 = vpack.c.bf16 %v2188_v32, %v2188_v32  ;;  %v2503_v62 = vunpack.c.l.b16 %v2405_v38 }
 0x1f0   : > { %v2415_v50 = vunpack.c.l.b16 %v2397_v35 }
 0x1f2   : > { %v2218_v31 = vpop.f32.mrf.mxu3  ;;  %v2330_v18 = vpop.f32.mrf.mxu1 }
 0x1f3   : > { %v2400_v0 = vpack.c.bf16 %v2218_v31, %v2218_v31  ;;  %v2408_v39 = vpack.c.bf16 %v2330_v18, %v2330_v18  ;;  %v2302_v43 = vpop.f32.mrf.mxu0 }
 0x1f4   : > { %v2406_v40 = vpack.c.bf16 %v2302_v43, %v2302_v43  ;;  %v2392_v43 = vld [vmem:[%s8596_s13 + $0x6] sm:$0x3] }
 0x1f5   : > { %v2190_v23 = vpop.f32.mrf.mxu2  ;;  %v2438_v45 = vunpack.c.l.b16 %v2400_v0  ;;  %v2526_v49 = vunpack.c.l.b16 %v2408_v39 }
 0x1f6   : > { %v2398_v17 = vpack.c.bf16 %v2190_v23, %v2190_v23  ;;  %v2504_v56 = vunpack.c.l.b16 %v2406_v40  ;;  %v2394_v23 = vld [vmem:[%s8596_s13 + $0xa] sm:$0x3]  ;;  %v2391_v40 = vld [vmem:[%s8596_s13 + $0x4] sm:$0x3] }
 0x1f7   : > { %v2439_v14 = vpack.c.b16 %v2438_v45, %v2437_v42  ;;  %v2527_v4 = vpack.c.b16 %v2526_v49, %v2525_v1  ;;  %v2393_v45 = vld [vmem:[%s8596_s13 + $0x8] sm:$0x3] }
 0x1f8   : > { %v2416_v58 = vunpack.c.l.b16 %v2398_v17  ;;  %v2505_v11 = vpack.c.b16 %v2504_v56, %v2503_v62 }
 0x1f9   : > { %2451 = vmatpush.bf16.msra.mxu1 %v2439_v14 }
 0x1fa   : > { %v2417_v48 = vpack.c.b16 %v2416_v58, %v2415_v50  ;;  %v2272_v16 = vpop.f32.mrf.mxu3 }
 0x1fb   : > { %v2403_v2 = vpack.c.bf16 %v2272_v16, %v2272_v16 }
 0x1fc   : > { %2429 = vmatpush.bf16.msra.mxu0 %v2417_v48  ;;  %7668 = vmatmul.msk.bf16.vlgmr.msra.gmra.mxu1 %vm967_vm0, %v2390_v8  ;;  %v8102_v48 = vld [vmem:[%s8616_s29 + $0x28] sm:$0xff]  ;;  %v8100_v8 = vld [vmem:[%s8616_s29 + $0x18] sm:$0xff] }
 0x1fd   : > { %2539 = vmatpush.bf16.msrb.mxu1 %v2527_v4  ;;  %v2244_v57 = vpop.f32.mrf.mxu2  ;;  %v2481_v34 = vunpack.c.l.b16 %v2403_v2  ;;  %v8099_v2 = vld [vmem:[%s8616_s29 + $0x10] sm:$0xff] }
 0x1fe   : > { %v2401_v21 = vpack.c.bf16 %v2244_v57, %v2244_v57  ;;  %v2396_v57 = vld [vmem:[%s8596_s13 + $0xe] sm:$0x3] }
 0x1ff   : > { %7667 = vmatmul.msk.bf16.vlgmr.msra.gmra.mxu0 %vm967_vm0, %v2389_v20 }
 0x200   : > { %2517 = vmatpush.bf16.msrb.mxu0 %v2505_v11  ;;  %v2459_v18 = vunpack.c.l.b16 %v2401_v21  ;;  %v2395_v21 = vld [vmem:[%s8596_s13 + $0xc] sm:$0x3] }
 0x201   : > { %2840 = vmatpush.bf16.msra.mxu1 %v8098_v30  ;;  %v8101_v30 = vld [vmem:[%s8616_s29 + $0x20] sm:$0xff] }
 0x202   : > { %v2274_v29 = vpop.f32.mrf.mxu3 }
 0x203   : > { %v2404_v32 = vpack.c.bf16 %v2274_v29, %v2274_v29  ;;  %v8104_v29 = vld [vmem:[%s8616_s29 + $0x38] sm:$0xff] }
 0x204   : > { %2812 = vmatpush.bf16.msra.mxu0 %v8097_v26 }
 0x205   : > { %v2246_v33 = vpop.f32.mrf.mxu2  ;;  %v2482_v31 = vunpack.c.l.b16 %v2404_v32  ;;  %v8103_v32 = vld [vmem:[%s8616_s29 + $0x30] sm:$0xff] }
 0x206   : > { %v2402_v35 = vpack.c.bf16 %v2246_v33, %v2246_v33 }
 0x207   : > { %v2483_v0 = vpack.c.b16 %v2482_v31, %v2481_v34 }
 0x208   : > { %v2460_v38 = vunpack.c.l.b16 %v2402_v35 }
 0x209   : > { %2495 = vmatpush.bf16.msrb.mxu3 %v2483_v0 }
 0x20a   : > { %v2461_v39 = vpack.c.b16 %v2460_v38, %v2459_v18  ;;  %v2384_v42 = vpop.f32.mrf.mxu3 }
 0x20b   : > { %v2411_v1 = vpack.c.bf16 %v2384_v42, %v2384_v42 }
 0x20c   : > { %2473 = vmatpush.bf16.msrb.mxu2 %v2461_v39  ;;  %7670 = vmatmul.msk.bf16.vlgmr.msrb.gmra.mxu3 %vm967_vm0, %v2392_v43 }
 0x20d   : > { %v2356_v17 = vpop.f32.mrf.mxu2  ;;  %7672 = vmatmul.msk.bf16.vlgmr.msrb.gmra.mxu1 %vm967_vm0, %v2394_v23  ;;  %v2569_v58 = vunpack.c.l.b16 %v2411_v1 }
 0x20e   : > { %v2409_v50 = vpack.c.bf16 %v2356_v17, %v2356_v17  ;;  %2952 = vmatpush.bf16.msrb.mxu1 %v8102_v48 }
 0x20f   : > { %7669 = vmatmul.msk.bf16.vlgmr.msrb.gmra.mxu2 %vm967_vm0, %v2391_v40  ;;  %7671 = vmatmul.msk.bf16.vlgmr.msrb.gmra.mxu0 %vm967_vm0, %v2393_v45 }
 0x210   : > { %v2547_v11 = vunpack.c.l.b16 %v2409_v50  ;;  %2924 = vmatpush.bf16.msrb.mxu0 %v8101_v30 }
 0x212   : > { %v2386_v49 = vpop.f32.mrf.mxu3 }
 0x213   : > { %v2412_v56 = vpack.c.bf16 %v2386_v49, %v2386_v49 }
 0x215   : > { %v2358_v14 = vpop.f32.mrf.mxu2  ;;  %v2570_v62 = vunpack.c.l.b16 %v2412_v56 }
 0x216   : > { %v2410_v4 = vpack.c.bf16 %v2358_v14, %v2358_v14 }
 0x217   : > { %v2571_v16 = vpack.c.b16 %v2570_v62, %v2569_v58 }
 0x218   : > { %v2548_v20 = vunpack.c.l.b16 %v2410_v4 }
 0x219   : > { %2583 = vmatpush.bf16.msra.mxu3 %v2571_v16 }
 0x21a   : > { %v2549_v26 = vpack.c.b16 %v2548_v20, %v2547_v11 }
 0x21c   : > { %2561 = vmatpush.bf16.msra.mxu2 %v2549_v26  ;;  %7674 = vmatmul.msk.bf16.vlgmr.msra.gmra.mxu3 %vm967_vm0, %v2396_v57 }
 0x21d   : > { %2896 = vmatpush.bf16.msrb.mxu3 %v8100_v8  ;;  %7684 = vmatmul.msk.bf16.vlgmr.msra.gmra.mxu1 %vm967_vm0, %v2823_v63 }
 0x21f   : > { %7673 = vmatmul.msk.bf16.vlgmr.msra.gmra.mxu2 %vm967_vm0, %v2395_v21  ;;  %7679 = vmatmul.msk.bf16.vlgmr.msra.gmra.mxu0 %vm967_vm0, %v2795_v41 }
 0x220   : > { %2868 = vmatpush.bf16.msrb.mxu2 %v8099_v2 }
 0x221   : > { %3008 = vmatpush.bf16.msra.mxu3 %v8104_v29 }
 0x224   : > { %2980 = vmatpush.bf16.msra.mxu2 %v8103_v32 }
 0x228   : > { %v8354_v52 = vpop.permute.xlu2 %8353 }
 0x229   : > { %v8355_v37 = vunpack.i.l.bf16 %v8354_v52  ;;  %v8356_v46 = vunpack.i.h.bf16 %v8354_v52 }
 0x22b   : > { %v1637_v63 = vrot.slane %v8355_v37, 4  ;;  %v1752_v47 = vsel %vm1189_vm1, %v8356_v46, %v1751_v22  ;;  %v1640_v51 = vsel %vm1189_vm1, %v8355_v37, %v1639_v24 }
 0x22c   : > { %7694 = vmatmul.msk.bf16.vlgmr.msrb.gmra.mxu3 %vm967_vm0, %v2879_v53  ;;  %v1749_v53 = vrot.slane %v8356_v46, 4  ;;  %v1648_v9 = vperm.slane %v1640_v51, %v8824_v36 }
 0x22d   : > { %7704 = vmatmul.msk.bf16.vlgmr.msrb.gmra.mxu1 %vm967_vm0, %v2935_v6  ;;  %v1638_v59 = vsel %vm1189_vm1, %v1637_v63, %v9055_v19 }
 0x22e   : > { %v1750_v13 = vsel %vm1189_vm1, %v1749_v53, %v9059_v60  ;;  %v1699_v33 = vrot.slane %v1648_v9, 4 }
 0x22f   : > { %7689 = vmatmul.msk.bf16.vlgmr.msrb.gmra.mxu2 %vm967_vm0, %v2851_v7  ;;  %7699 = vmatmul.msk.bf16.vlgmr.msrb.gmra.mxu0 %vm967_vm0, %v2907_v54  ;;  %v9268_v7 = vperm.slane %v1752_v47, %v8824_v36  ;;  %v1644_v54 = vperm.slane %v1638_v59, %v8824_v36  ;;  %v1756_v19 = vperm.slane %v1750_v13, %v8824_v36 }
 0x231   : > { %v1687_v35 = vrot.slane %v1644_v54, 4  ;;  %v1799_v8 = vrot.slane %v1756_v19, 4 }
 0x232   : > { %v8369_v15 = vpop.permute.xlu2 %8368 }
 0x233   : > { %v8371_v61 = vunpack.i.h.bf16 %v8369_v15  ;;  %v8370_v6 = vunpack.i.l.bf16 %v8369_v15 }
 0x235   : > { %v1663_v55 = vrot.slane %v8370_v6, 4 }
 0x23a   : > { %v9274_v28 = vpop.permute.xlu2 %8383 }
 0x23b   : > { %v8386_v38 = vunpack.i.h.bf16 %v9274_v28  ;;  %v8385_v43 = vunpack.i.l.bf16 %v9274_v28 }
 0x23c   : > { %7714 = vmatmul.msk.bf16.vlgmr.msra.gmra.mxu3 %vm967_vm0, %v2991_v5  ;;  %v1775_v5 = vrot.slane %v8371_v61, 4 }
 0x23d   : > { %v1787_v11 = vrot.slane %v8386_v38, 4  ;;  %v1675_v16 = vrot.slane %v8385_v43, 4 }
 0x23f   : > { %7709 = vmatmul.msk.bf16.vlgmr.msra.gmra.mxu2 %vm967_vm0, %v2963_v44  ;;  %v1811_v44 = vrot.slane %v9268_v7, 4 }
 0x240   : > { %v8364_v41 = vpop.permute.xlu1 %8363 }
 0x241   : > { %v8365_v10 = vunpack.i.l.bf16 %v8364_v41  ;;  %v8366_v12 = vunpack.i.h.bf16 %v8364_v41  ;;  %v8359_v31 = vpop.permute.xlu0 %8358 }
 0x242   : > { %v8361_v18 = vunpack.i.h.bf16 %v8359_v31  ;;  %v8360_v0 = vunpack.i.l.bf16 %v8359_v31 }
 0x243   : > { %v1649_v34 = vrot.slane %v8365_v10, 4  ;;  %v1761_v39 = vrot.slane %v8366_v12, 4 }
 0x244   : > { %v1773_v40 = vrot.slane %v8361_v18, 4  ;;  %v1776_v45 = vsel %vm1189_vm1, %v8361_v18, %v1775_v5  ;;  %v1661_v17 = vrot.slane %v8360_v0, 4  ;;  %v1664_v1 = vsel %vm1189_vm1, %v8360_v0, %v1663_v55 }
 0x245   : > { %v9283_v49 = vperm.slane %v1776_v45, %v8824_v36  ;;  %v9286_v50 = vperm.slane %v1664_v1, %v8824_v36 }
 0x246   : > { %v1774_v58 = vsel %vm1189_vm1, %v1773_v40, %v8371_v61  ;;  %v1662_v62 = vsel %vm1189_vm1, %v1661_v17, %v8370_v6 }
 0x247   : > { %v1780_v30 = vperm.slane %v1774_v58, %v8824_v36  ;;  %v1835_v29 = vrot.slane %v9283_v49, 4  ;;  %v9300_v21 = vperm.slane %v1662_v62, %v8824_v36  ;;  %v1723_v32 = vrot.slane %v9286_v50, 4 }
 0x248   : > { %v8379_v60 = vpop.permute.xlu1 %8378 }
 0x249   : > { %v8381_v23 = vunpack.i.h.bf16 %v8379_v60  ;;  %v8380_v42 = vunpack.i.l.bf16 %v8379_v60  ;;  %v8374_v37 = vpop.permute.xlu0 %8373  ;;  %v1711_v5 = vrot.slane %v9300_v21, 4 }
 0x24a   : > { %v8376_v22 = vunpack.i.h.bf16 %v8374_v37 }
 0x24b   : > { %v1763_v56 = vrot.slane %v8381_v23, 4  ;;  %v1650_v14 = vsel %vm1189_vm1, %v1649_v34, %v8380_v42  ;;  %v1651_v4 = vrot.slane %v8380_v42, 4  ;;  %v1762_v2 = vsel %vm1189_vm1, %v1761_v39, %v8381_v23 }
 0x24c   : > { %v1656_v48 = vperm.slane %v1650_v14, %v8824_v36  ;;  %v1768_v63 = vperm.slane %v1762_v2, %v8824_v36  ;;  %v1788_v23 = vsel %vm1189_vm1, %v8376_v22, %v1787_v11 }
 0x24d   : > { %v1652_v20 = vsel %vm1189_vm1, %v8365_v10, %v1651_v4  ;;  %v1764_v46 = vsel %vm1189_vm1, %v8366_v12, %v1763_v56  ;;  %v1823_v10 = vrot.slane %v1780_v30, 4  ;;  %v1785_v12 = vrot.slane %v8376_v22, 4 }
 0x24e   : > { %v1685_v26 = vrot.slane %v1656_v48, 4  ;;  %v1688_v57 = vsel %vm1189_vm1, %v1656_v48, %v1687_v35  ;;  %v1660_v52 = vperm.slane %v1652_v20, %v8824_v36  ;;  %v1772_v59 = vperm.slane %v1764_v46, %v8824_v36 }
 0x24f   : > { %v9311_v41 = vperm.slane %v1688_v57, %v8877_v25  ;;  %v1797_v61 = vrot.slane %v1768_v63, 4  ;;  %v1800_v6 = vsel %vm1189_vm1, %v1768_v63, %v1799_v8  ;;  %v8375_v56 = vunpack.i.l.bf16 %v8374_v37 }
 0x250   : > { %v1686_v15 = vsel %vm1189_vm1, %v1685_v26, %v1644_v54  ;;  %v1697_v53 = vrot.slane %v1660_v52, 4  ;;  %v1700_v47 = vsel %vm1189_vm1, %v1660_v52, %v1699_v33  ;;  %v9321_v54 = vperm.slane %v1800_v6, %v8877_v25 }
 0x251   : > { %v9308_v24 = vperm.slane %v1686_v15, %v8877_v25  ;;  %v9315_v51 = vperm.slane %v1700_v47, %v8877_v25  ;;  %v1798_v33 = vsel %vm1189_vm1, %v1797_v61, %v1756_v19  ;;  %v1809_v34 = vrot.slane %v1772_v59, 4  ;;  %v955_v45 = vpop.permute.xlu0 %954 }
 0x252   : > { %v1698_v13 = vsel %vm1189_vm1, %v1697_v53, %v1648_v9  ;;  %v1739_v31 = vrot.slane %v9311_v41, 4  ;;  %v1804_v35 = vperm.slane %v1798_v33, %v8877_v25  ;;  %v1812_v18 = vsel %vm1189_vm1, %v1772_v59, %v1811_v44 }
 0x253   : > { %v9325_v55 = vperm.slane %v1698_v13, %v8877_v25  ;;  %v1786_v9 = vsel %vm1189_vm1, %v1785_v12, %v8386_v38  ;;  %v1735_v0 = vrot.slane %v9308_v24, 4  ;;  %v1747_v60 = vrot.slane %v9315_v51, 4 }
 0x254   : > { %v1810_v39 = vsel %vm1189_vm1, %v1809_v34, %v9268_v7  ;;  %v9338_v19 = vperm.slane %v1812_v18, %v8877_v25  ;;  %v1851_v42 = vrot.slane %v9321_v54, 4  ;;  %v1792_v40 = vperm.slane %v1786_v9, %v8824_v36 }
 0x255   : > { %v1796_v44 = vperm.slane %v1788_v23, %v8824_v36  ;;  %v1743_v38 = vrot.slane %v9325_v55, 4  ;;  %v1816_v17 = vperm.slane %v1810_v39, %v8877_v25  ;;  %v1847_v1 = vrot.slane %v1804_v35, 4 }
 0x256   : > { %v1821_v14 = vrot.slane %v1792_v40, 4  ;;  %v1824_v58 = vsel %vm1189_vm1, %v1792_v40, %v1823_v10  ;;  %v9347_v62 = vadd.f32 %v9195_v3, %v955_v45  ;;  %v1673_v4 = vrot.slane %v8375_v56, 4 }
 0x257   : > { %v1833_v7 = vrot.slane %v1796_v44, 4  ;;  %v1676_v48 = vsel %vm1189_vm1, %v8375_v56, %v1675_v16  ;;  %v1836_v8 = vsel %vm1189_vm1, %v1796_v44, %v1835_v29  ;;  %v9352_v11 = vadd.f32 %v9191_v27, %v955_v45 }
 0x258   : > { %v1859_v20 = vrot.slane %v9338_v19, 4  ;;  %v1684_v26 = vperm.slane %v1676_v48, %v8824_v36  ;;  %v1822_v57 = vsel %vm1189_vm1, %v1821_v14, %v1780_v30  ;;  %v1674_v3 = vsel %vm1189_vm1, %v1673_v4, %v8385_v43 }
 0x259   : > { %v1834_v2 = vsel %vm1189_vm1, %v1833_v7, %v9283_v49  ;;  %v1828_v16 = vperm.slane %v1822_v57, %v8877_v25  ;;  %v9364_v29 = vperm.slane %v1824_v58, %v8877_v25  ;;  %v9367_v27 = vperm.slane %v1836_v8, %v8877_v25 }
 0x25a   : > { %v1680_v52 = vperm.slane %v1674_v3, %v8824_v36  ;;  %v1721_v37 = vrot.slane %v1684_v26, 4  ;;  %v1724_v30 = vsel %vm1189_vm1, %v1684_v26, %v1723_v32  ;;  %v1840_v15 = vperm.slane %v1834_v2, %v8877_v25 }
 0x25b   : > { %v1855_v49 = vrot.slane %v1816_v17, 4  ;;  %v9373_v28 = vperm.slane %v1724_v30, %v8877_v25  ;;  %v1845_v43 = vrot.slane %v1828_v16, 4  ;;  %v9377_v46 = vpack.i.bf16 %v9352_v11, %v9347_v62 }
 0x25c   : > { %v1709_v63 = vrot.slane %v1680_v52, 4  ;;  %v1712_v22 = vsel %vm1189_vm1, %v1680_v52, %v1711_v5  ;;  %v1722_v53 = vsel %vm1189_vm1, %v1721_v37, %v9286_v50  ;;  %v1849_v59 = vrot.slane %v9364_v29, 4 }
 0x25d   : > { %v1720_v47 = vperm.slane %v1712_v22, %v8877_v25  ;;  %v1728_v32 = vperm.slane %v1722_v53, %v8877_v25  ;;  %8398 = vrot.lane.b32.xlu0 %v9377_v46, %s11141_s22  ;;  %v1745_v6 = vrot.slane %v9373_v28, 4  ;;  %v1853_v10 = vrot.slane %v1840_v15, 4  ;;  %8393 = vrot.lane.b32.xlu2 %v9377_v46, %s11147_s11  ;;  %s8556_s22 = smov 40  }
 0x25e   : > { %v1710_v61 = vsel %vm1189_vm1, %v1709_v63, %v9300_v21  ;;  %v1857_v13 = vrot.slane %v9367_v27, 4  ;;  %8388 = vrot.lane.b32.xlu1 %v9377_v46, %s11158_s23  ;;  %v1848_v33 = vsel %vm1189_vm1, %v1828_v16, %v1847_v1  ;;  %v1846_v34 = vsel %vm1189_vm1, %v1845_v43, %v1804_v35 }
 0x25f   : > { %v1716_v50 = vperm.slane %v1710_v61, %v8877_v25  ;;  %v1741_v12 = vrot.slane %v1728_v32, 4  ;;  %v1737_v5 = vrot.slane %v1720_v47, 4  ;;  %v2120_v9 = vpack.c.bf16 %v1848_v33, %v1848_v33 }
 0x260   : > { %v2118_v39 = vpack.c.bf16 %v1846_v34, %v1846_v34  ;;  %v1744_v40 = vsel %vm1189_vm1, %v1728_v32, %v1743_v38  ;;  %v1856_v44 = vsel %vm1189_vm1, %v1840_v15, %v1855_v49  ;;  %v1854_v4 = vsel %vm1189_vm1, %v1853_v10, %v1816_v17 }
 0x261   : > { %v1733_v21 = vrot.slane %v1716_v50, 4  ;;  %v1736_v18 = vsel %vm1189_vm1, %v1716_v50, %v1735_v0  ;;  %v1742_v45 = vsel %vm1189_vm1, %v1741_v12, %v9325_v55  ;;  %v9403_v56 = vunpack.c.l.b16 %v2120_v9 }
 0x262   : > { %v2119_v23 = vpack.c.bf16 %v1736_v18, %v1736_v18  ;;  %v9407_v14 = vunpack.c.l.b16 %v2118_v39  ;;  %v2127_v35 = vpack.c.bf16 %v1744_v40, %v1744_v40  ;;  %v2128_v58 = vpack.c.bf16 %v1856_v44, %v1856_v44 }
 0x263   : > { %v1734_v1 = vsel %vm1189_vm1, %v1733_v21, %v9308_v24  ;;  %v2125_v55 = vpack.c.bf16 %v1742_v45, %v1742_v45  ;;  %v2126_v48 = vpack.c.bf16 %v1854_v4, %v1854_v4  ;;  %v1740_v24 = vsel %vm1189_vm1, %v1720_v47, %v1739_v31 }
 0x264   : > { %v9409_v7 = vunpack.c.l.b16 %v2119_v23  ;;  %v2117_v0 = vpack.c.bf16 %v1734_v1, %v1734_v1  ;;  %v9414_v38 = vunpack.c.l.b16 %v2127_v35  ;;  %v9425_v17 = vunpack.c.l.b16 %v2128_v58 }
 0x265   : > { %8413 = vrot.lane.b32.xlu0 %v9377_v46, %s11143_s26  ;;  %8408 = vrot.lane.b32.xlu2 %v9377_v46, %s11145_s16  ;;  %v1852_v57 = vsel %vm1189_vm1, %v9364_v29, %v1851_v42  ;;  %v9433_v2 = vunpack.c.l.b16 %v2125_v55  ;;  %v9435_v31 = vunpack.c.l.b16 %v2126_v48  ;;  %v2123_v3 = vpack.c.bf16 %v1740_v24, %v1740_v24  ;;  %s11153_s26 = smov 8  }
 0x266   : > { %v3439_v8 = vpack.c.b16 %v9403_v56, %v9409_v7  ;;  %v9423_v26 = vunpack.c.l.b16 %v2117_v0  ;;  %8403 = vrot.lane.b32.xlu1 %v9377_v46, %s11139_s18  ;;  %v2124_v16 = vpack.c.bf16 %v1852_v57, %v1852_v57  ;;  %v3551_v37 = vpack.c.b16 %v9425_v17, %v9414_v38  ;;  %v3021_v56 = vld [vmem:[%s11188_s3 + $0xc] sm:$0x3]  ;;  %v8109_v7 = vld [vmem:[%s8641_s24 + $0x20] sm:$0xff]  ;;  %s8555_s18 = smov 4  }
 0x267   : > { %v1738_v30 = vsel %vm1189_vm1, %v1737_v5, %v9311_v41  ;;  %v1850_v42 = vsel %vm1189_vm1, %v1849_v59, %v9321_v54  ;;  %v3523_v29 = vpack.c.b16 %v9435_v31, %v9433_v2  ;;  %v9447_v15 = vunpack.c.l.b16 %v2123_v3 }
 0x268   : > { %v3411_v52 = vpack.c.b16 %v9407_v14, %v9423_v26  ;;  %v9449_v49 = vunpack.c.l.b16 %v2124_v16  ;;  %v2121_v43 = vpack.c.bf16 %v1738_v30, %v1738_v30  ;;  %v2122_v63 = vpack.c.bf16 %v1850_v42, %v1850_v42  ;;  %v8107_v14 = vld [vmem:[%s8641_s24 + $0x10] sm:$0xff]  ;;  %v8112_v26 = vld [vmem:[%s8641_s24 + $0x38] sm:$0xff] }
 0x269   : > { %v1748_v22 = vsel %vm1189_vm1, %v9373_v28, %v1747_v60  ;;  %v1860_v41 = vsel %vm1189_vm1, %v9367_v27, %v1859_v20  ;;  %v1746_v54 = vsel %vm1189_vm1, %v1745_v6, %v9315_v51  ;;  %v1858_v60 = vsel %vm1189_vm1, %v1857_v13, %v9338_v19 }
 0x26a   : > { %v3495_v53 = vpack.c.b16 %v9449_v49, %v9447_v15  ;;  %v9463_v47 = vunpack.c.l.b16 %v2121_v43  ;;  %v2131_v32 = vpack.c.bf16 %v1748_v22, %v1748_v22  ;;  %v2132_v59 = vpack.c.bf16 %v1860_v41, %v1860_v41 }
 0x26b   : > { %v9465_v61 = vunpack.c.l.b16 %v2122_v63  ;;  %v2129_v28 = vpack.c.bf16 %v1746_v54, %v1746_v54  ;;  %v2130_v20 = vpack.c.bf16 %v1858_v60, %v1858_v60 }
 0x26c   : > { %v9469_v10 = vunpack.c.l.b16 %v2131_v32  ;;  %v9471_v50 = vunpack.c.l.b16 %v2132_v59 }
 0x26d   : > { %v3467_v51 = vpack.c.b16 %v9465_v61, %v9463_v47  ;;  %v9475_v27 = vunpack.c.l.b16 %v2129_v28  ;;  %v9481_v12 = vunpack.c.l.b16 %v2130_v20 }
 0x26e   : > { %8418 = vrot.lane.b32.xlu1 %v9377_v46, %s11150_s5  ;;  %v3607_v6 = vpack.c.b16 %v9471_v50, %v9469_v10 }
 0x26f   : > { %v3579_v19 = vpack.c.b16 %v9481_v12, %v9475_v27 }
 0x279   : > { %v2453_v13 = vpop.f32.mrf.mxu1 }
 0x27c   : > { %v2431_v5 = vpop.f32.mrf.mxu0 }
 0x281   : > { %v2455_v33 = vpop.f32.mrf.mxu1 }
 0x284   : > { %v2433_v34 = vpop.f32.mrf.mxu0 }
 0x28a   : > { %v2541_v21 = vpop.f32.mrf.mxu1 }
 0x28c   : > { %v2519_v18 = vpop.f32.mrf.mxu0 }
 0x28f   : > { %v2497_v9 = vpop.f32.mrf.mxu3 }
 0x290   : > { %v2595_v39 = vrot.slane %v2497_v9, 4 }
 0x292   : > { %v2475_v23 = vpop.f32.mrf.mxu2  ;;  %v2543_v40 = vpop.f32.mrf.mxu1  ;;  %v2596_v46 = vsel %vm1189_vm1, %v2595_v39, %v2453_v13 }
 0x293   : > { %v2589_v44 = vrot.slane %v2475_v23, 4  ;;  %v2600_v45 = vperm.slane %v2596_v46, %v8824_v36 }
 0x294   : > { %v2521_v1 = vpop.f32.mrf.mxu0 }
 0x295   : > { %v2590_v35 = vsel %vm1189_vm1, %v2589_v44, %v2431_v5  ;;  %v2613_v0 = vrot.slane %v2600_v45, 4 }
 0x296   : > { %v2594_v58 = vperm.slane %v2590_v35, %v8824_v36 }
 0x297   : > { %v2499_v55 = vpop.f32.mrf.mxu3 }
 0x298   : > { %v2615_v4 = vrot.slane %v2594_v58, 4  ;;  %v2614_v48 = vsel %vm1189_vm1, %v2613_v0, %v2594_v58  ;;  %v3016_v0 = vld [vmem:[%s11188_s3 + $0x2] sm:$0x3] }
 0x299   : > { %v2620_v20 = vperm.slane %v2614_v48, %v8877_v25 }
 0x29a   : > { %v2477_v24 = vpop.f32.mrf.mxu2  ;;  %v2842_v57 = vpop.f32.mrf.mxu1  ;;  %v2616_v3 = vsel %vm1189_vm1, %v2600_v45, %v2615_v4 }
 0x29b   : > { %v3025_v42 = vpack.c.bf16 %v2842_v57, %v2842_v57  ;;  %v2624_v46 = vperm.slane %v2616_v3, %v8877_v25  ;;  %v2639_v58 = vrot.slane %v2620_v20, 4  ;;  %v3015_v24 = vld [vmem:[%s11188_s3] sm:$0x3] }
 0x29c   : > { %v2814_v16 = vpop.f32.mrf.mxu0 }
 0x29d   : > { %v3023_v41 = vpack.c.bf16 %v2814_v16, %v2814_v16  ;;  %v3063_v13 = vunpack.c.l.b16 %v3025_v42 }
 0x29f   : > { %v2585_v30 = vpop.f32.mrf.mxu3  ;;  %v3041_v23 = vunpack.c.l.b16 %v3023_v41 }
 0x2a0   : > { %v2607_v43 = vrot.slane %v2585_v30, 4  ;;  %v2643_v30 = vrot.slane %v2624_v46, 4 }
 0x2a2   : > { %v2563_v63 = vpop.f32.mrf.mxu2  ;;  %v2844_v22 = vpop.f32.mrf.mxu1  ;;  %v2608_v54 = vsel %vm1189_vm1, %v2607_v43, %v2541_v21 }
 0x2a3   : > { %v2601_v32 = vrot.slane %v2563_v63, 4  ;;  %v3026_v59 = vpack.c.bf16 %v2844_v22, %v2844_v22  ;;  %v2612_v60 = vperm.slane %v2608_v54, %v8824_v36 }
 0x2a4   : > { %v2816_v28 = vpop.f32.mrf.mxu0 }
 0x2a5   : > { %v2602_v5 = vsel %vm1189_vm1, %v2601_v32, %v2519_v18  ;;  %v3064_v33 = vunpack.c.l.b16 %v3026_v59  ;;  %v3024_v34 = vpack.c.bf16 %v2816_v28, %v2816_v28  ;;  %v2625_v9 = vrot.slane %v2612_v60, 4 }
 0x2a6   : > { %v2606_v39 = vperm.slane %v2602_v5, %v8824_v36 }
 0x2a7   : > { %v3065_v40 = vpack.c.b16 %v3064_v33, %v3063_v13  ;;  %v3042_v21 = vunpack.c.l.b16 %v3024_v34  ;;  %v2587_v45 = vpop.f32.mrf.mxu3 }
 0x2a8   : > { %v2627_v44 = vrot.slane %v2606_v39, 4  ;;  %v2626_v1 = vsel %vm1189_vm1, %v2625_v9, %v2606_v39 }
 0x2a9   : > { %v3043_v35 = vpack.c.b16 %v3042_v21, %v3041_v23  ;;  %3077 = vmatpush.bf16.msra.mxu1 %v3065_v40  ;;  %v2632_v18 = vperm.slane %v2626_v1, %v8877_v25 }
 0x2aa   : > { %v2565_v4 = vpop.f32.mrf.mxu2  ;;  %v2954_v55 = vpop.f32.mrf.mxu1  ;;  %v2628_v48 = vsel %vm1189_vm1, %v2612_v60, %v2627_v44 }
 0x2ab   : > { %3055 = vmatpush.bf16.msra.mxu0 %v3043_v35  ;;  %v2637_v57 = vrot.slane %v2632_v18, 4  ;;  %v9503_v16 = vsel %vm1189_vm1, %v2632_v18, %v2639_v58  ;;  %v2636_v3 = vperm.slane %v2628_v48, %v8877_v25  ;;  %v3033_v32 = vpack.c.bf16 %v2954_v55, %v2954_v55  ;;  %v3020_v35 = vld [vmem:[%s11188_s3 + $0xa] sm:$0x3]  ;;  %v8105_v18 = vld [vmem:[%s8641_s24] sm:$0xff]  ;;  %v3019_v48 = vld [vmem:[%s11188_s3 + $0x8] sm:$0x3] }
 0x2ac   : > { %v2926_v42 = vpop.f32.mrf.mxu0  ;;  %7716 = vmatmul.msk.bf16.vlgmr.msra.gmra.mxu1 %vm967_vm0, %v3016_v0 }
 0x2ad   : > { %v9508_v43 = vsel %vm1189_vm1, %v2636_v3, %v2643_v30  ;;  %v2641_v63 = vrot.slane %v2636_v3, 4  ;;  %v9512_v22 = vsel %vm1189_vm1, %v2637_v57, %v2620_v20  ;;  %v3031_v28 = vpack.c.bf16 %v2926_v42, %v2926_v42  ;;  %v3018_v42 = vld [vmem:[%s11188_s3 + $0x6] sm:$0x3] }
 0x2ae   : > { %7715 = vmatmul.msk.bf16.vlgmr.msra.gmra.mxu0 %vm967_vm0, %v3015_v24  ;;  %v3151_v33 = vunpack.c.l.b16 %v3033_v32 }
 0x2af   : > { %v9515_v41 = vsel %vm1189_vm1, %v2641_v63, %v2624_v46  ;;  %v2898_v54 = vpop.f32.mrf.mxu3  ;;  %v3129_v39 = vunpack.c.l.b16 %v3031_v28  ;;  %v8106_v46 = vld [vmem:[%s8641_s24 + $0x8] sm:$0xff] }
 0x2b0   : > { %v3029_v23 = vpack.c.bf16 %v2898_v54, %v2898_v54  ;;  %v3017_v54 = vld [vmem:[%s11188_s3 + $0x4] sm:$0x3] }
 0x2b2   : > { %v2870_v59 = vpop.f32.mrf.mxu2  ;;  %v2956_v60 = vpop.f32.mrf.mxu1  ;;  %v3107_v58 = vunpack.c.l.b16 %v3029_v23 }
 0x2b3   : > { %v3034_v13 = vpack.c.bf16 %v2956_v60, %v2956_v60  ;;  %v3027_v44 = vpack.c.bf16 %v2870_v59, %v2870_v59 }
 0x2b4   : > { %v2928_v5 = vpop.f32.mrf.mxu0 }
 0x2b5   : > { %v3152_v34 = vunpack.c.l.b16 %v3034_v13  ;;  %v3032_v9 = vpack.c.bf16 %v2928_v5, %v2928_v5  ;;  %v3085_v24 = vunpack.c.l.b16 %v3027_v44 }
 0x2b7   : > { %v3153_v20 = vpack.c.b16 %v3152_v34, %v3151_v33  ;;  %v3130_v40 = vunpack.c.l.b16 %v3032_v9  ;;  %v2900_v21 = vpop.f32.mrf.mxu3  ;;  %v9575_v49 = vpop.permute.xlu2 %8393 }
 0x2b8   : > { %v3030_v1 = vpack.c.bf16 %v2900_v21, %v2900_v21  ;;  %v3022_v21 = vld [vmem:[%s11188_s3 + $0xe] sm:$0x3]  ;;  %s11198_s3 = smov 72  }
 0x2b9   : > { %v3131_v45 = vpack.c.b16 %v3130_v40, %v3129_v39  ;;  %3165 = vmatpush.bf16.msrb.mxu1 %v3153_v20 }
 0x2ba   : > { %v2872_v0 = vpop.f32.mrf.mxu2  ;;  %v3108_v4 = vunpack.c.l.b16 %v3030_v1 }
 0x2bb   : > { %v3028_v55 = vpack.c.bf16 %v2872_v0, %v2872_v0  ;;  %3143 = vmatpush.bf16.msrb.mxu0 %v3131_v45  ;;  %v8396_v0 = vunpack.i.h.bf16 %v9575_v49 }
 0x2bc   : > { %7720 = vmatmul.msk.bf16.vlgmr.msrb.gmra.mxu1 %vm967_vm0, %v3020_v35  ;;  %v3109_v57 = vpack.c.b16 %v3108_v4, %v3107_v58 }
 0x2bd   : > { %3456 = vmatpush.bf16.msra.mxu1 %v8106_v46  ;;  %v3086_v3 = vunpack.c.l.b16 %v3028_v55  ;;  %v8110_v46 = vld [vmem:[%s8641_s24 + $0x28] sm:$0xff] }
 0x2be   : > { %7719 = vmatmul.msk.bf16.vlgmr.msrb.gmra.mxu0 %vm967_vm0, %v3019_v48  ;;  %3121 = vmatpush.bf16.msrb.mxu3 %v3109_v57 }
 0x2bf   : > { %3428 = vmatpush.bf16.msra.mxu0 %v8105_v18  ;;  %v3087_v30 = vpack.c.b16 %v3086_v3, %v3085_v24  ;;  %v3010_v63 = vpop.f32.mrf.mxu3  ;;  %v9583_v45 = vpop.permute.xlu2 %8408 }
 0x2c0   : > { %v3037_v59 = vpack.c.bf16 %v3010_v63, %v3010_v63  ;;  %v8411_v55 = vunpack.i.h.bf16 %v9583_v45 }
 0x2c1   : > { %3099 = vmatpush.bf16.msrb.mxu2 %v3087_v30  ;;  %7718 = vmatmul.msk.bf16.vlgmr.msrb.gmra.mxu3 %vm967_vm0, %v3018_v42 }
 0x2c2   : > { %v2982_v32 = vpop.f32.mrf.mxu2  ;;  %v3195_v33 = vunpack.c.l.b16 %v3037_v59  ;;  %3568 = vmatpush.bf16.msrb.mxu1 %v8110_v46  ;;  %v8410_v59 = vunpack.i.l.bf16 %v9583_v45 }
 0x2c3   : > { %v3035_v28 = vpack.c.bf16 %v2982_v32, %v2982_v32  ;;  %3540 = vmatpush.bf16.msrb.mxu0 %v8109_v7  ;;  %v8395_v32 = vunpack.i.l.bf16 %v9575_v49 }
 0x2c4   : > { %7717 = vmatmul.msk.bf16.vlgmr.msrb.gmra.mxu2 %vm967_vm0, %v3017_v54  ;;  %v9597_v54 = vrot.slane %v8396_v0, 4 }
 0x2c5   : > { %v3173_v39 = vunpack.c.l.b16 %v3035_v28 }
 0x2c7   : > { %v3012_v60 = vpop.f32.mrf.mxu3 }
 0x2c8   : > { %v3038_v13 = vpack.c.bf16 %v3012_v60, %v3012_v60 }
 0x2ca   : > { %v2984_v5 = vpop.f32.mrf.mxu2  ;;  %v3196_v34 = vunpack.c.l.b16 %v3038_v13 }
 0x2cb   : > { %v3036_v9 = vpack.c.bf16 %v2984_v5, %v2984_v5  ;;  %v2009_v5 = vrot.slane %v8411_v55, 4 }
 0x2cc   : > { %7732 = vmatmul.msk.bf16.vlgmr.msra.gmra.mxu1 %vm967_vm0, %v3439_v8  ;;  %v3197_v23 = vpack.c.b16 %v3196_v34, %v3195_v33  ;;  %v8108_v8 = vld [vmem:[%s8641_s24 + $0x18] sm:$0xff] }
 0x2cd   : > { %v3174_v20 = vunpack.c.l.b16 %v3036_v9 }
 0x2ce   : > { %7727 = vmatmul.msk.bf16.vlgmr.msra.gmra.mxu0 %vm967_vm0, %v3411_v52  ;;  %3209 = vmatpush.bf16.msra.mxu3 %v3197_v23  ;;  %v8111_v52 = vld [vmem:[%s8641_s24 + $0x30] sm:$0xff] }
 0x2cf   : > { %v3175_v40 = vpack.c.b16 %v3174_v20, %v3173_v39  ;;  %v9577_v61 = vpop.permute.xlu0 %8398 }
 0x2d0   : > { %v9573_v15 = vpop.permute.xlu1 %8388  ;;  %v8400_v24 = vunpack.i.l.bf16 %v9577_v61  ;;  %v8401_v33 = vunpack.i.h.bf16 %v9577_v61 }
 0x2d1   : > { %3187 = vmatpush.bf16.msra.mxu2 %v3175_v40  ;;  %7722 = vmatmul.msk.bf16.vlgmr.msra.gmra.mxu3 %vm967_vm0, %v3022_v21  ;;  %v8391_v57 = vunpack.i.h.bf16 %v9573_v15  ;;  %v8390_v3 = vunpack.i.l.bf16 %v9573_v15 }
 0x2d2   : > { %3512 = vmatpush.bf16.msrb.mxu3 %v8108_v8  ;;  %v1873_v39 = vrot.slane %v8400_v24, 4 }
 0x2d3   : > { %v1973_v23 = vrot.slane %v8391_v57, 4  ;;  %v1861_v20 = vrot.slane %v8390_v3, 4 }
 0x2d4   : > { %7721 = vmatmul.msk.bf16.vlgmr.msra.gmra.mxu2 %vm967_vm0, %v3021_v56 }
 0x2d5   : > { %3484 = vmatpush.bf16.msrb.mxu2 %v8107_v14  ;;  %v1897_v14 = vrot.slane %v8410_v59, 4 }
 0x2d6   : > { %3624 = vmatpush.bf16.msra.mxu3 %v8112_v26 }
 0x2d7   : > { %v9589_v48 = vpop.permute.xlu0 %8413 }
 0x2d8   : > { %v8415_v60 = vunpack.i.l.bf16 %v9589_v48  ;;  %v8416_v26 = vunpack.i.h.bf16 %v9589_v48 }
 0x2d9   : > { %3596 = vmatpush.bf16.msra.mxu2 %v8111_v52 }
 0x2da   : > { %v1874_v52 = vsel %vm1189_vm1, %v1873_v39, %v8415_v60  ;;  %v3631_v39 = vld [vmem:[%s8646_s30] sm:$0xf] }
 0x2dc   : > { %7752 = vmatmul.msk.bf16.vlgmr.msrb.gmra.mxu1 %vm967_vm0, %v3551_v37 }
 0x2de   : > { %7747 = vmatmul.msk.bf16.vlgmr.msrb.gmra.mxu0 %vm967_vm0, %v3523_v29 }
 0x2e1   : > { %7742 = vmatmul.msk.bf16.vlgmr.msrb.gmra.mxu3 %vm967_vm0, %v3495_v53 }
 0x2e4   : > { %7737 = vmatmul.msk.bf16.vlgmr.msrb.gmra.mxu2 %vm967_vm0, %v3467_v51  ;;  %v9579_v51 = vpop.permute.xlu1 %8403 }
 0x2ec   : > { %v9602_v28 = vpop.permute.xlu1 %8418 }
 0x2ed   : > { %v8420_v46 = vunpack.i.l.bf16 %v9602_v28 }
 0x2f1   : > { %7762 = vmatmul.msk.bf16.vlgmr.msra.gmra.mxu3 %vm967_vm0, %v3607_v6 }
 0x2f4   : > { %7757 = vmatmul.msk.bf16.vlgmr.msra.gmra.mxu2 %vm967_vm0, %v3579_v19 }
 0x329   : > { %v3079_v38 = vpop.f32.mrf.mxu1 }
 0x32b   : > { %v3057_v17 = vpop.f32.mrf.mxu0 }
 0x331   : > { %v3081_v2 = vpop.f32.mrf.mxu1 }
 0x333   : > { %v3059_v31 = vpop.f32.mrf.mxu0 }
 0x339   : > { %v9569_v37 = vpop.f32.mrf.mxu1 }
 0x33b   : > { %v9571_v29 = vpop.f32.mrf.mxu0 }
 0x341   : > { %v3169_v53 = vpop.f32.mrf.mxu1 }
 0x343   : > { %v3147_v47 = vpop.f32.mrf.mxu0 }
 0x344   : > { %v3123_v10 = vpop.f32.mrf.mxu3 }
 0x345   : > { %v3221_v50 = vrot.slane %v3123_v10, 4  ;;  %v1985_v10 = vrot.slane %v8401_v33, 4 }
 0x347   : > { %v3101_v27 = vpop.f32.mrf.mxu2  ;;  %v3222_v19 = vsel %vm1189_vm1, %v3221_v50, %v3079_v38  ;;  %v8421_v38 = vunpack.i.h.bf16 %v9602_v28  ;;  %v1974_v50 = vsel %vm1189_vm1, %v1973_v23, %v9352_v11 }
 0x348   : > { %v3215_v6 = vrot.slane %v3101_v27, 4  ;;  %v3226_v18 = vperm.slane %v3222_v19, %v8824_v36  ;;  %v1862_v27 = vsel %vm1189_vm1, %v1861_v20, %v9347_v62  ;;  %v1898_v19 = vsel %vm1189_vm1, %v1897_v14, %v8420_v46 }
 0x349   : > { %v3458_v12 = vpop.f32.mrf.mxu1  ;;  %v9649_v20 = vperm.slane %v1898_v19, %v8824_v36  ;;  %v1875_v14 = vrot.slane %v8415_v60, 4 }
 0x34a   : > { %v3216_v44 = vsel %vm1189_vm1, %v3215_v6, %v3057_v17  ;;  %v3641_v63 = vpack.c.bf16 %v3458_v12, %v3458_v12  ;;  %v3239_v40 = vrot.slane %v3226_v18, 4 }
 0x34b   : > { %v3220_v1 = vperm.slane %v3216_v44, %v8824_v36  ;;  %v3430_v35 = vpop.f32.mrf.mxu0 }
 0x34c   : > { %v3125_v4 = vpop.f32.mrf.mxu3  ;;  %v3639_v34 = vpack.c.bf16 %v3430_v35, %v3430_v35  ;;  %v3679_v56 = vunpack.c.l.b16 %v3641_v63 }
 0x34d   : > { %v3241_v58 = vrot.slane %v3220_v1, 4  ;;  %v3240_v12 = vsel %vm1189_vm1, %v3239_v40, %v3220_v1  ;;  %v9633_v4 = vperm.slane %v1874_v52, %v8824_v36  ;;  %v8406_v1 = vunpack.i.h.bf16 %v9579_v51 }
 0x34e   : > { %v3657_v2 = vunpack.c.l.b16 %v3639_v34  ;;  %v8405_v34 = vunpack.i.l.bf16 %v9579_v51  ;;  %v3246_v23 = vperm.slane %v3240_v12, %v8877_v25 }
 0x34f   : > { %v3103_v30 = vpop.f32.mrf.mxu2  ;;  %v3242_v42 = vsel %vm1189_vm1, %v3226_v18, %v3241_v58  ;;  %v3632_v58 = vld [vmem:[%s8646_s30 + $0x4] sm:$0xf] }
 0x350   : > { %v1986_v30 = vsel %vm1189_vm1, %v1985_v10, %v8416_v26  ;;  %v3265_v10 = vrot.slane %v3246_v23, 4 }
 0x351   : > { %v3460_v13 = vpop.f32.mrf.mxu1  ;;  %v9663_v52 = vperm.slane %v1986_v30, %v8824_v36 }
 0x352   : > { %v3642_v9 = vpack.c.bf16 %v3460_v13, %v3460_v13 }
 0x353   : > { %v3432_v21 = vpop.f32.mrf.mxu0  ;;  %v2021_v30 = vrot.slane %v9663_v52, 4 }
 0x354   : > { %v3680_v7 = vunpack.c.l.b16 %v3642_v9  ;;  %v3640_v8 = vpack.c.bf16 %v3432_v21, %v3432_v21  ;;  %v3211_v17 = vpop.f32.mrf.mxu3 }
 0x355   : > { %v3233_v47 = vrot.slane %v3211_v17, 4 }
 0x356   : > { %v3681_v31 = vpack.c.b16 %v3680_v7, %v3679_v56  ;;  %v3658_v53 = vunpack.c.l.b16 %v3640_v8  ;;  %v3250_v7 = vperm.slane %v3242_v42, %v8877_v25  ;;  %v9660_v8 = vperm.slane %v1862_v27, %v8824_v36 }
 0x357   : > { %v3189_v6 = vpop.f32.mrf.mxu2  ;;  %v3234_v35 = vsel %vm1189_vm1, %v3233_v47, %v9569_v37  ;;  %v2010_v37 = vsel %vm1189_vm1, %v2009_v5, %v8421_v38  ;;  %v1885_v5 = vrot.slane %v8395_v32, 4  ;;  %v1933_v27 = vrot.slane %v9649_v20, 4 }
 0x358   : > { %v3659_v44 = vpack.c.b16 %v3658_v53, %v3657_v2  ;;  %v3227_v18 = vrot.slane %v3189_v6, 4  ;;  %3693 = vmatpush.bf16.msra.mxu1 %v3681_v31  ;;  %v3238_v63 = vperm.slane %v3234_v35, %v8824_v36  ;;  %v9666_v17 = vperm.slane %v2010_v37, %v8824_v36 }
 0x359   : > { %v3570_v13 = vpop.f32.mrf.mxu1  ;;  %v1909_v53 = vrot.slane %v9633_v4, 4  ;;  %v1886_v47 = vsel %vm1189_vm1, %v1885_v5, %v8405_v34  ;;  %v3269_v19 = vrot.slane %v3250_v7, 4 }
 0x35a   : > { %v3228_v9 = vsel %vm1189_vm1, %v3227_v18, %v9571_v29  ;;  %3671 = vmatpush.bf16.msra.mxu0 %v3659_v44  ;;  %v3251_v40 = vrot.slane %v3238_v63, 4  ;;  %v9657_v29 = vperm.slane %v1974_v50, %v8824_v36  ;;  %v1998_v50 = vsel %vm1189_vm1, %v9597_v54, %v8406_v1 }
 0x35b   : > { %v3232_v21 = vperm.slane %v3228_v9, %v8824_v36  ;;  %v3542_v56 = vpop.f32.mrf.mxu0  ;;  %7764 = vmatmul.msk.bf16.vlgmr.msra.gmra.mxu1 %vm967_vm0, %v3632_v58  ;;  %v3649_v44 = vpack.c.bf16 %v3570_v13, %v3570_v13  ;;  %v9685_v37 = vperm.slane %v1886_v47, %v8824_v36  ;;  %v2045_v9 = vrot.slane %v9666_v17, 4 }
 0x35c   : > { %v3213_v31 = vpop.f32.mrf.mxu3  ;;  %v3647_v54 = vpack.c.bf16 %v3542_v56, %v3542_v56  ;;  %v1910_v5 = vsel %vm1189_vm1, %v1909_v53, %v9660_v8  ;;  %v1899_v56 = vrot.slane %v8420_v46, 4  ;;  %v1987_v53 = vrot.slane %v8416_v26, 4 }
 0x35d   : > { %v3253_v2 = vrot.slane %v3232_v21, 4  ;;  %7763 = vmatmul.msk.bf16.vlgmr.msra.gmra.mxu0 %vm967_vm0, %v3631_v39  ;;  %v3252_v42 = vsel %vm1189_vm1, %v3251_v40, %v3232_v21  ;;  %v1934_v31 = vsel %vm1189_vm1, %v1933_v27, %v9685_v37  ;;  %v2022_v46 = vsel %vm1189_vm1, %v2021_v30, %v9657_v29 }
 0x35e   : > { %v3258_v60 = vperm.slane %v3252_v42, %v8877_v25  ;;  %v3745_v48 = vunpack.c.l.b16 %v3647_v54  ;;  %v2028_v28 = vperm.slane %v2022_v46, %v8877_v25 }
 0x35f   : > { %v3191_v6 = vpop.f32.mrf.mxu2  ;;  %v3254_v12 = vsel %vm1189_vm1, %v3238_v63, %v3253_v2  ;;  %v9698_v2 = vperm.slane %v1998_v50, %v8824_v36  ;;  %v1876_v50 = vsel %vm1189_vm1, %v8400_v24, %v1875_v14  ;;  %v1863_v24 = vrot.slane %v9347_v62, 4  ;;  %v8118_v62 = vld [vmem:[%s8666_s27 + $0x28] sm:$0xff] }
 0x360   : > { %v3266_v35 = vsel %vm1189_vm1, %v3258_v60, %v3265_v10  ;;  %v3263_v18 = vrot.slane %v3258_v60, 4  ;;  %v3262_v58 = vperm.slane %v3254_v12, %v8877_v25  ;;  %v8114_v12 = vld [vmem:[%s8666_s27 + $0x8] sm:$0xff]  ;;  %v1916_v14 = vperm.slane %v1910_v5, %v8877_v25  ;;  %v3635_v5 = vld [vmem:[%s8646_s30 + $0x10] sm:$0xf] }
 0x361   : > { %v3572_v39 = vpop.f32.mrf.mxu1  ;;  %3272 = vrot.lane.b32.xlu1 %v3266_v35, %s8555_s18  ;;  %v2046_v27 = vsel %vm1189_vm1, %v2045_v9, %v9698_v2  ;;  %v1940_v35 = vperm.slane %v1934_v31, %v8877_v25  ;;  %v9732_v54 = vperm.slane %v1876_v50, %v8824_v36  ;;  %v1999_v31 = vrot.slane %v8406_v1, 4 }
 0x362   : > { %v3650_v63 = vpack.c.bf16 %v3572_v39, %v3572_v39  ;;  %v9690_v13 = vsel %vm1189_vm1, %v3263_v18, %v3246_v23  ;;  %v3267_v40 = vrot.slane %v3262_v58, 4  ;;  %v9693_v21 = vsel %vm1189_vm1, %v3262_v58, %v3269_v19  ;;  %v8113_v58 = vld [vmem:[%s8666_s27] sm:$0xff] }
 0x363   : > { %v3544_v42 = vpop.f32.mrf.mxu0  ;;  %v3767_v23 = vunpack.c.l.b16 %v3649_v44  ;;  %v1975_v44 = vrot.slane %v9352_v11, 4  ;;  %v2052_v30 = vperm.slane %v2046_v27, %v8877_v25  ;;  %v3636_v11 = vld [vmem:[%s8646_s30 + $0x14] sm:$0xf]  ;;  %v1959_v61 = vrot.slane %v1916_v14, 4 }
 0x364   : > { %v3768_v47 = vunpack.c.l.b16 %v3650_v63  ;;  %v3648_v60 = vpack.c.bf16 %v3544_v42, %v3544_v42  ;;  %v9705_v10 = vsel %vm1189_vm1, %v3267_v40, %v3250_v7  ;;  %v3514_v6 = vpop.f32.mrf.mxu3  ;;  %v2011_v7 = vrot.slane %v8421_v38, 4 }
 0x365   : > { %v1900_v38 = vsel %vm1189_vm1, %v8410_v59, %v1899_v56  ;;  %v1976_v39 = vsel %vm1189_vm1, %v8391_v57, %v1975_v44  ;;  %v1864_v63 = vsel %vm1189_vm1, %v8390_v3, %v1863_v24  ;;  %v1988_v59 = vsel %vm1189_vm1, %v8401_v33, %v1987_v53  ;;  %v8117_v56 = vld [vmem:[%s8666_s27 + $0x20] sm:$0xff] }
 0x366   : > { %v3769_v19 = vpack.c.b16 %v3768_v47, %v3767_v23  ;;  %v3746_v26 = vunpack.c.l.b16 %v3648_v60  ;;  %v2012_v40 = vsel %vm1189_vm1, %v8411_v55, %v2011_v7  ;;  %v1887_v57 = vrot.slane %v8405_v34, 4 }
 0x367   : > { %v3486_v18 = vpop.f32.mrf.mxu2  ;;  %v9753_v15 = vperm.slane %v1900_v38, %v8824_v36  ;;  %v1957_v3 = vrot.slane %v1940_v35, 4  ;;  %v2071_v45 = vrot.slane %v2028_v28, 4  ;;  %v2069_v33 = vrot.slane %v2052_v30, 4 }
 0x368   : > { %v3747_v9 = vpack.c.b16 %v3746_v26, %v3745_v48  ;;  %3781 = vmatpush.bf16.msrb.mxu1 %v3769_v19  ;;  %v3645_v55 = vpack.c.bf16 %v3514_v6, %v3514_v6  ;;  %v9757_v42 = vperm.slane %v1864_v63, %v8824_v36  ;;  %v1921_v1 = vrot.slane %v9732_v54, 4 }
 0x369   : > { %v9761_v51 = vperm.slane %v1988_v59, %v8824_v36  ;;  %v9764_v34 = vperm.slane %v2012_v40, %v8824_v36  ;;  %v1960_v47 = vsel %vm1189_vm1, %v1940_v35, %v1959_v61  ;;  %v2072_v60 = vsel %vm1189_vm1, %v2052_v30, %v2071_v45  ;;  %v3634_v59 = vld [vmem:[%s8646_s30 + $0xc] sm:$0xf] }
 0x36a   : > { %3759 = vmatpush.bf16.msrb.mxu0 %v3747_v9  ;;  %v3643_v53 = vpack.c.bf16 %v3486_v18, %v3486_v18  ;;  %v2000_v46 = vsel %vm1189_vm1, %v8396_v0, %v1999_v31  ;;  %v1888_v27 = vsel %vm1189_vm1, %v8395_v32, %v1887_v57  ;;  %v1945_v6 = vrot.slane %v9753_v15, 4  ;;  %v3633_v57 = vld [vmem:[%s8646_s30 + $0x8] sm:$0xf] }
 0x36b   : > { %7768 = vmatmul.msk.bf16.vlgmr.msrb.gmra.mxu1 %vm967_vm0, %v3636_v11  ;;  %v1958_v7 = vsel %vm1189_vm1, %v1957_v3, %v1916_v14  ;;  %v3723_v48 = vunpack.c.l.b16 %v3645_v55  ;;  %v2070_v44 = vsel %vm1189_vm1, %v2069_v33, %v2028_v28  ;;  %v2033_v24 = vrot.slane %v9761_v51, 4 }
 0x36c   : > { %4229 = vmatpush.bf16.msra.mxu1 %v8114_v12  ;;  %v3516_v23 = vpop.f32.mrf.mxu3  ;;  %v2057_v35 = vrot.slane %v9764_v34, 4  ;;  %v2135_v0 = vpack.c.bf16 %v1960_v47, %v1960_v47  ;;  %v2136_v18 = vpack.c.bf16 %v2072_v60, %v2072_v60  ;;  %v9781_v49 = vperm.slane %v1888_v27, %v8824_v36 }
 0x36d   : > { %7767 = vmatmul.msk.bf16.vlgmr.msrb.gmra.mxu0 %vm967_vm0, %v3635_v5  ;;  %v3646_v50 = vpack.c.bf16 %v3516_v23, %v3516_v23  ;;  %v3701_v32 = vunpack.c.l.b16 %v3643_v53  ;;  %v9784_v14 = vperm.slane %v1976_v39, %v8824_v36  ;;  %v9787_v30 = vperm.slane %v2000_v46, %v8824_v36 }
 0x36e   : > { %4201 = vmatpush.bf16.msra.mxu0 %v8113_v58  ;;  %v2133_v28 = vpack.c.bf16 %v1958_v7, %v1958_v7  ;;  %v2134_v9 = vpack.c.bf16 %v2070_v44, %v2070_v44  ;;  %v1922_v11 = vsel %vm1189_vm1, %v1921_v1, %v9757_v42  ;;  %v4211_v31 = vunpack.c.l.b16 %v2136_v18 }
 0x36f   : > { %v3488_v12 = vpop.f32.mrf.mxu2  ;;  %v3724_v19 = vunpack.c.l.b16 %v3646_v50  ;;  %v2034_v40 = vsel %vm1189_vm1, %v2033_v24, %v9784_v14  ;;  %v2058_v39 = vsel %vm1189_vm1, %v2057_v35, %v9787_v30  ;;  %v1928_v55 = vperm.slane %v1922_v11, %v8877_v25 }
 0x370   : > { %4341 = vmatpush.bf16.msrb.mxu1 %v8118_v62  ;;  %v3644_v26 = vpack.c.bf16 %v3488_v12, %v3488_v12  ;;  %v1946_v62 = vsel %vm1189_vm1, %v1945_v6, %v9781_v49  ;;  %v4182_v45 = vunpack.c.l.b16 %v2133_v28  ;;  %v4183_v33 = vunpack.c.l.b16 %v2134_v9 }
 0x371   : > { %v3725_v58 = vpack.c.b16 %v3724_v19, %v3723_v48  ;;  %v1952_v3 = vperm.slane %v1946_v62, %v8877_v25  ;;  %v2040_v1 = vperm.slane %v2034_v40, %v8877_v25  ;;  %v2064_v23 = vperm.slane %v2058_v39, %v8877_v25 }
 0x372   : > { %4313 = vmatpush.bf16.msrb.mxu0 %v8117_v56  ;;  %v3702_v38 = vunpack.c.l.b16 %v3644_v26  ;;  %v4210_v56 = vunpack.c.l.b16 %v2135_v0  ;;  %v1911_v60 = vrot.slane %v9660_v8, 4  ;;  %v4184_v50 = vpack.c.b16 %v4183_v33, %v4182_v45 }
 0x373   : > { %3737 = vmatpush.bf16.msrb.mxu3 %v3725_v58  ;;  %v1965_v53 = vrot.slane %v1952_v3, 4  ;;  %v1967_v46 = vrot.slane %v1928_v55, 4  ;;  %v2079_v27 = vrot.slane %v2040_v1, 4  ;;  %v2077_v6 = vrot.slane %v2064_v23, 4 }
 0x374   : > { %v3703_v63 = vpack.c.b16 %v3702_v38, %v3701_v32  ;;  %v3626_v5 = vpop.f32.mrf.mxu3  ;;  %v4212_v47 = vpack.c.b16 %v4211_v31, %v4210_v56  ;;  %v2023_v7 = vrot.slane %v9657_v29, 4  ;;  %v1912_v48 = vsel %vm1189_vm1, %v9633_v4, %v1911_v60  ;;  %v8115_v56 = vld [vmem:[%s8666_s27 + $0x10] sm:$0xff] }
 0x375   : > { %v3653_v12 = vpack.c.bf16 %v3626_v5, %v3626_v5  ;;  %v1968_v8 = vsel %vm1189_vm1, %v1952_v3, %v1967_v46  ;;  %v2080_v24 = vsel %vm1189_vm1, %v2064_v23, %v2079_v27  ;;  %v2047_v0 = vrot.slane %v9698_v2, 4  ;;  %v3638_v3 = vld [vmem:[%s8646_s30 + $0x1c] sm:$0xf] }
 0x376   : > { %3715 = vmatpush.bf16.msrb.mxu2 %v3703_v63  ;;  %7766 = vmatmul.msk.bf16.vlgmr.msrb.gmra.mxu3 %vm967_vm0, %v3634_v59  ;;  %v2024_v35 = vsel %vm1189_vm1, %v9663_v52, %v2023_v7  ;;  %v1935_v29 = vrot.slane %v9685_v37, 4  ;;  %v1966_v4 = vsel %vm1189_vm1, %v1965_v53, %v1928_v55  ;;  %v2078_v28 = vsel %vm1189_vm1, %v2077_v6, %v2040_v1  ;;  %v8116_v37 = vld [vmem:[%s8666_s27 + $0x18] sm:$0xff]  ;;  %v8119_v1 = vld [vmem:[%s8666_s27 + $0x30] sm:$0xff] }
 0x377   : > { %v3598_v61 = vpop.f32.mrf.mxu2  ;;  %v3811_v32 = vunpack.c.l.b16 %v3653_v12  ;;  %v2048_v11 = vsel %vm1189_vm1, %v9666_v17, %v2047_v0  ;;  %v2143_v52 = vpack.c.bf16 %v1968_v8, %v1968_v8  ;;  %v2144_v2 = vpack.c.bf16 %v2080_v24, %v2080_v24  ;;  %v3637_v55 = vld [vmem:[%s8646_s30 + $0x18] sm:$0xf] }
 0x378   : > { %v3651_v26 = vpack.c.bf16 %v3598_v61, %v3598_v61  ;;  %v1936_v9 = vsel %vm1189_vm1, %v9649_v20, %v1935_v29  ;;  %v1920_v40 = vperm.slane %v1912_v48, %v8877_v25  ;;  %v2141_v39 = vpack.c.bf16 %v1966_v4, %v1966_v4  ;;  %v8120_v61 = vld [vmem:[%s8666_s27 + $0x38] sm:$0xff] }
 0x379   : > { %7765 = vmatmul.msk.bf16.vlgmr.msrb.gmra.mxu2 %vm967_vm0, %v3633_v57  ;;  %v2142_v5 = vpack.c.bf16 %v2078_v28, %v2078_v28  ;;  %v2032_v20 = vperm.slane %v2024_v35, %v8877_v25  ;;  %v1944_v31 = vperm.slane %v1936_v9, %v8877_v25  ;;  %v2056_v17 = vperm.slane %v2048_v11, %v8877_v25 }
 0x37a   : > { %v3789_v62 = vunpack.c.l.b16 %v3651_v26  ;;  %v4322_v45 = vunpack.c.l.b16 %v2143_v52  ;;  %v4323_v33 = vunpack.c.l.b16 %v2144_v2  ;;  %v4294_v23 = vunpack.c.l.b16 %v2141_v39 }
 0x37b   : > { %7780 = vmatmul.msk.bf16.vlgmr.msra.gmra.mxu1 %vm967_vm0, %v4212_v47  ;;  %v4295_v47 = vunpack.c.l.b16 %v2142_v5  ;;  %v1963_v60 = vrot.slane %v1920_v40, 4  ;;  %v2075_v53 = vrot.slane %v2032_v20, 4  ;;  %v2073_v46 = vrot.slane %v2056_v17, 4 }
 0x37c   : > { %v3628_v19 = vpop.f32.mrf.mxu3  ;;  %v4324_v27 = vpack.c.b16 %v4323_v33, %v4322_v45  ;;  %v2035_v8 = vrot.slane %v9784_v14, 4  ;;  %v1923_v24 = vrot.slane %v9757_v42, 4  ;;  %v2059_v35 = vrot.slane %v9787_v30, 4 }
 0x37d   : > { %7775 = vmatmul.msk.bf16.vlgmr.msra.gmra.mxu0 %vm967_vm0, %v4184_v50  ;;  %v3654_v44 = vpack.c.bf16 %v3628_v19, %v3628_v19  ;;  %v1961_v50 = vrot.slane %v1944_v31, 4  ;;  %v1964_v6 = vsel %vm1189_vm1, %v1944_v31, %v1963_v60  ;;  %v2076_v12 = vsel %vm1189_vm1, %v2056_v17, %v2075_v53 }
 0x37e   : > { %v4296_v7 = vpack.c.b16 %v4295_v47, %v4294_v23  ;;  %v2074_v19 = vsel %vm1189_vm1, %v2073_v46, %v2032_v20  ;;  %v2139_v26 = vpack.c.bf16 %v1964_v6, %v1964_v6  ;;  %v1947_v0 = vrot.slane %v9781_v49, 4 }
 0x37f   : > { %v3600_v18 = vpop.f32.mrf.mxu2  ;;  %v3812_v58 = vunpack.c.l.b16 %v3654_v44  ;;  %v1962_v48 = vsel %vm1189_vm1, %v1961_v50, %v1920_v40  ;;  %v2140_v44 = vpack.c.bf16 %v2076_v12, %v2076_v12  ;;  %v1924_v4 = vsel %vm1189_vm1, %v9732_v54, %v1923_v24 }
 0x380   : > { %v3652_v38 = vpack.c.bf16 %v3600_v18, %v3600_v18  ;;  %v2137_v29 = vpack.c.bf16 %v1962_v48, %v1962_v48  ;;  %v2138_v18 = vpack.c.bf16 %v2074_v19, %v2074_v19  ;;  %v2060_v14 = vsel %vm1189_vm1, %v9764_v34, %v2059_v35 }
 0x381   : > { %v3813_v63 = vpack.c.b16 %v3812_v58, %v3811_v32  ;;  %v2036_v32 = vsel %vm1189_vm1, %v9761_v51, %v2035_v8  ;;  %v1948_v58 = vsel %vm1189_vm1, %v9753_v15, %v1947_v0  ;;  %v4267_v42 = vunpack.c.l.b16 %v2140_v44 }
 0x382   : > { %v3790_v59 = vunpack.c.l.b16 %v3652_v38  ;;  %v4266_v38 = vunpack.c.l.b16 %v2139_v26  ;;  %v4238_v28 = vunpack.c.l.b16 %v2137_v29  ;;  %v4239_v30 = vunpack.c.l.b16 %v2138_v18 }
 0x383   : > { %3825 = vmatpush.bf16.msra.mxu3 %v3813_v63  ;;  %v1932_v49 = vperm.slane %v1924_v4, %v8877_v25  ;;  %v2044_v9 = vperm.slane %v2036_v32, %v8877_v25  ;;  %v1956_v11 = vperm.slane %v1948_v58, %v8877_v25  ;;  %v2068_v54 = vperm.slane %v2060_v14, %v8877_v25 }
 0x384   : > { %v3791_v57 = vpack.c.b16 %v3790_v59, %v3789_v62  ;;  %v4268_v52 = vpack.c.b16 %v4267_v42, %v4266_v38  ;;  %v4240_v51 = vpack.c.b16 %v4239_v30, %v4238_v28 }
 0x385   : > { %v1971_v15 = vrot.slane %v1932_v49, 4  ;;  %v2083_v2 = vrot.slane %v2044_v9, 4  ;;  %v2081_v34 = vrot.slane %v2068_v54, 4 }
 0x386   : > { %3803 = vmatpush.bf16.msra.mxu2 %v3791_v57  ;;  %7770 = vmatmul.msk.bf16.vlgmr.msra.gmra.mxu3 %vm967_vm0, %v3638_v3 }
 0x387   : > { %4285 = vmatpush.bf16.msrb.mxu3 %v8116_v37  ;;  %v1969_v37 = vrot.slane %v1956_v11, 4  ;;  %v1972_v62 = vsel %vm1189_vm1, %v1956_v11, %v1971_v15  ;;  %v2084_v63 = vsel %vm1189_vm1, %v2068_v54, %v2083_v2  ;;  %v2082_v40 = vsel %vm1189_vm1, %v2081_v34, %v2044_v9 }
 0x388   : > { %v2147_v39 = vpack.c.bf16 %v1972_v62, %v1972_v62  ;;  %v2148_v5 = vpack.c.bf16 %v2084_v63, %v2084_v63  ;;  %v2146_v20 = vpack.c.bf16 %v2082_v40, %v2082_v40 }
 0x389   : > { %7769 = vmatmul.msk.bf16.vlgmr.msra.gmra.mxu2 %vm967_vm0, %v3637_v55  ;;  %v1970_v59 = vsel %vm1189_vm1, %v1969_v37, %v1932_v49 }
 0x38a   : > { %4257 = vmatpush.bf16.msrb.mxu2 %v8115_v56  ;;  %v2145_v56 = vpack.c.bf16 %v1970_v59, %v1970_v59  ;;  %v4378_v31 = vunpack.c.l.b16 %v2147_v39  ;;  %v4379_v17 = vunpack.c.l.b16 %v2148_v5  ;;  %v4351_v3 = vunpack.c.l.b16 %v2146_v20  ;;  %v8122_v20 = vld [vmem:[%s11187_s4 + $0x8] sm:$0x30] }
 0x38b   : > { %4397 = vmatpush.bf16.msra.mxu3 %v8120_v61  ;;  %7800 = vmatmul.msk.bf16.vlgmr.msrb.gmra.mxu1 %vm967_vm0, %v4324_v27 }
 0x38c   : > { %v4350_v57 = vunpack.c.l.b16 %v2145_v56  ;;  %v4380_v61 = vpack.c.b16 %v4379_v17, %v4378_v31  ;;  %v7818_v56 = vld [vmem:[%s11187_s4 + $0x8] sm:$0xf] }
 0x38d   : > { %7795 = vmatmul.msk.bf16.vlgmr.msrb.gmra.mxu0 %vm967_vm0, %v4296_v7 }
 0x38e   : > { %4369 = vmatpush.bf16.msra.mxu2 %v8119_v1  ;;  %v4352_v45 = vpack.c.b16 %v4351_v3, %v4350_v57  ;;  %v7819_v57 = vor.u32 %v8122_v20, %v7818_v56 }
 0x396   : > { %7790 = vmatmul.msk.bf16.vlgmr.msrb.gmra.mxu3 %vm967_vm0, %v4268_v52 }
 0x399   : > { %7785 = vmatmul.msk.bf16.vlgmr.msrb.gmra.mxu2 %vm967_vm0, %v4240_v51 }
 0x3a6   : > { %7810 = vmatmul.msk.bf16.vlgmr.msra.gmra.mxu3 %vm967_vm0, %v4380_v61 }
 0x3a9   : > { %7805 = vmatmul.msk.bf16.vlgmr.msra.gmra.mxu2 %vm967_vm0, %v4352_v45 }
 0x3d8   : > { %v3695_v33 = vpop.f32.mrf.mxu1 }
 0x3d9   : > { %v3845_v27 = vrot.slane %v3695_v33, 4 }
 0x3da   : > { %v3673_v55 = vpop.f32.mrf.mxu0 }
 0x3db   : > { %v3833_v19 = vrot.slane %v3673_v55, 4 }
 0x3e0   : > { %v3697_v1 = vpop.f32.mrf.mxu1 }
 0x3e2   : > { %v3675_v23 = vpop.f32.mrf.mxu0 }
 0x3e8   : > { %v3783_v47 = vpop.f32.mrf.mxu1 }
 0x3e9   : > { %v3869_v37 = vrot.slane %v3783_v47, 4 }
 0x3ea   : > { %v9865_v60 = vpop.f32.mrf.mxu0 }
 0x3eb   : > { %v3857_v39 = vrot.slane %v9865_v60, 4 }
 0x3f0   : > { %v3785_v53 = vpop.f32.mrf.mxu1 }
 0x3f2   : > { %v3763_v50 = vpop.f32.mrf.mxu0 }
 0x3f8   : > { %v4231_v46 = vpop.f32.mrf.mxu1 }
 0x3f9   : > { %v3739_v6 = vpop.f32.mrf.mxu3  ;;  %v4422_v24 = vpack.c.bf16 %v4231_v46, %v4231_v46 }
 0x3fa   : > { %v4203_v12 = vpop.f32.mrf.mxu0  ;;  %v3843_v7 = vrot.slane %v3739_v6, 4  ;;  %v3846_v26 = vsel %vm1189_vm1, %v3739_v6, %v3845_v27 }
 0x3fb   : > { %v3854_v35 = vperm.slane %v3846_v26, %v8824_v36  ;;  %v4420_v0 = vpack.c.bf16 %v4203_v12, %v4203_v12  ;;  %v4471_v42 = vunpack.c.l.b16 %v4422_v24  ;;  %v7813_v12 = vld [vmem:[%s11187_s4] sm:$0xf] }
 0x3fc   : > { %v3717_v48 = vpop.f32.mrf.mxu2  ;;  %v3844_v8 = vsel %vm1189_vm1, %v3843_v7, %v3695_v33  ;;  %v8121_v7 = vld [vmem:[%s11187_s4] sm:$0x30] }
 0x3fd   : > { %v3831_v44 = vrot.slane %v3717_v48, 4  ;;  %v3850_v18 = vperm.slane %v3844_v8, %v8824_v36  ;;  %v3834_v32 = vsel %vm1189_vm1, %v3717_v48, %v3833_v19  ;;  %v3891_v49 = vrot.slane %v3854_v35, 4 }
 0x3fe   : > { %v3842_v11 = vperm.slane %v3834_v32, %v8824_v36  ;;  %v4443_v51 = vunpack.c.l.b16 %v4420_v0 }
 0x3ff   : > { %v3832_v4 = vsel %vm1189_vm1, %v3831_v44, %v3673_v55  ;;  %v3879_v52 = vrot.slane %v3850_v18, 4  ;;  %v7814_v44 = vor.u32 %v8121_v7, %v7813_v12 }
 0x400   : > { %v4233_v29 = vpop.f32.mrf.mxu1  ;;  %v3838_v9 = vperm.slane %v3832_v4, %v8824_v36  ;;  %v3892_v63 = vsel %vm1189_vm1, %v3891_v49, %v3842_v11  ;;  %v3893_v59 = vrot.slane %v3842_v11, 4 }
 0x401   : > { %v4423_v58 = vpack.c.bf16 %v4233_v29, %v4233_v29  ;;  %v3741_v14 = vpop.f32.mrf.mxu3  ;;  %v9882_v45 = vperm.slane %v3892_v63, %v8877_v25 }
 0x402   : > { %v4205_v38 = vpop.f32.mrf.mxu0  ;;  %v3881_v62 = vrot.slane %v3838_v9, 4  ;;  %v3880_v5 = vsel %vm1189_vm1, %v3879_v52, %v3838_v9  ;;  %v3894_v53 = vsel %vm1189_vm1, %v3854_v35, %v3893_v59 }
 0x403   : > { %v4472_v28 = vunpack.c.l.b16 %v4423_v58  ;;  %v4421_v30 = vpack.c.bf16 %v4205_v38, %v4205_v38  ;;  %v3886_v1 = vperm.slane %v3880_v5, %v8877_v25  ;;  %v3937_v35 = vrot.slane %v9882_v45, 4 }
 0x404   : > { %v3719_v54 = vpop.f32.mrf.mxu2  ;;  %v3882_v23 = vsel %vm1189_vm1, %v3850_v18, %v3881_v62  ;;  %v3902_v0 = vperm.slane %v3894_v53, %v8877_v25  ;;  %v7833_v53 = vld [vmem:[%s11187_s4 + $0x20] sm:$0xf] }
 0x405   : > { %v4473_v15 = vpack.c.b16 %v4472_v28, %v4471_v42  ;;  %v4444_v2 = vunpack.c.l.b16 %v4421_v30  ;;  %v3929_v38 = vrot.slane %v3886_v1, 4  ;;  %v3890_v42 = vperm.slane %v3882_v23, %v8877_v25  ;;  %v8126_v23 = vld [vmem:[%s11187_s4 + $0x28] sm:$0x30] }
 0x406   : > { %v3941_v63 = vrot.slane %v3902_v0, 4 }
 0x407   : > { %v4445_v34 = vpack.c.b16 %v4444_v2, %v4443_v51  ;;  %4485 = vmatpush.bf16.msra.mxu1 %v4473_v15  ;;  %v3933_v20 = vrot.slane %v3890_v42, 4 }
 0x408   : > { %v4343_v40 = vpop.f32.mrf.mxu1 }
 0x409   : > { %4457 = vmatpush.bf16.msra.mxu0 %v4445_v34  ;;  %v3827_v31 = vpop.f32.mrf.mxu3  ;;  %v4430_v50 = vpack.c.bf16 %v4343_v40, %v4343_v40 }
 0x40a   : > { %v4315_v17 = vpop.f32.mrf.mxu0  ;;  %v3867_v3 = vrot.slane %v3827_v31, 4  ;;  %v3870_v61 = vsel %vm1189_vm1, %v3827_v31, %v3869_v37  ;;  %7820 = vmatmul.msk.bf16.vlgmr.msra.gmra.mxu1 %vm967_vm0, %v7819_v57 }
 0x40b   : > { %v3878_v33 = vperm.slane %v3870_v61, %v8824_v36  ;;  %v4428_v8 = vpack.c.bf16 %v4315_v17, %v4315_v17 }
 0x40c   : > { %v3805_v55 = vpop.f32.mrf.mxu2  ;;  %v3868_v46 = vsel %vm1189_vm1, %v3867_v3, %v3783_v47  ;;  %7815 = vmatmul.msk.bf16.vlgmr.msra.gmra.mxu0 %vm967_vm0, %v7814_v44 }
 0x40d   : > { %v3855_v27 = vrot.slane %v3805_v55, 4  ;;  %v3858_v6 = vsel %vm1189_vm1, %v3805_v55, %v3857_v39  ;;  %v3874_v48 = vperm.slane %v3868_v46, %v8824_v36  ;;  %v3915_v19 = vrot.slane %v3878_v33, 4  ;;  %v7838_v55 = vld [vmem:[%s11187_s4 + $0x28] sm:$0xf] }
 0x40e   : > { %v3866_v26 = vperm.slane %v3858_v6, %v8824_v36  ;;  %v4555_v2 = vunpack.c.l.b16 %v4428_v8  ;;  %v7839_v46 = vor.u32 %v8126_v23, %v7838_v55 }
 0x40f   : > { %v3856_v24 = vsel %vm1189_vm1, %v3855_v27, %v9865_v60  ;;  %v3903_v47 = vrot.slane %v3874_v48, 4  ;;  %v4583_v60 = vunpack.c.l.b16 %v4430_v50  ;;  %v8125_v27 = vld [vmem:[%s11187_s4 + $0x20] sm:$0x30] }
 0x410   : > { %v3862_v29 = vperm.slane %v3856_v24, %v8824_v36  ;;  %v3917_v18 = vrot.slane %v3866_v26, 4  ;;  %v4345_v4 = vpop.f32.mrf.mxu1  ;;  %v3916_v32 = vsel %vm1189_vm1, %v3915_v19, %v3866_v26  ;;  %v7834_v7 = vor.u32 %v8125_v27, %v7833_v53 }
 0x411   : > { %v4431_v58 = vpack.c.bf16 %v4345_v4, %v4345_v4  ;;  %v3922_v14 = vperm.slane %v3916_v32, %v8877_v25  ;;  %v3829_v30 = vpop.f32.mrf.mxu3  ;;  %v7828_v4 = vld [vmem:[%s11187_s4 + $0x18] sm:$0xf] }
 0x412   : > { %v3905_v28 = vrot.slane %v3862_v29, 4  ;;  %v4317_v49 = vpop.f32.mrf.mxu0  ;;  %v3904_v9 = vsel %vm1189_vm1, %v3903_v47, %v3862_v29  ;;  %v3918_v11 = vsel %vm1189_vm1, %v3878_v33, %v3917_v18 }
 0x413   : > { %v4584_v54 = vunpack.c.l.b16 %v4431_v58  ;;  %v4429_v52 = vpack.c.bf16 %v4317_v49, %v4317_v49  ;;  %v3938_v51 = vsel %vm1189_vm1, %v3922_v14, %v3937_v35  ;;  %v3910_v15 = vperm.slane %v3904_v9, %v8877_v25 }
 0x414   : > { %v3807_v37 = vpop.f32.mrf.mxu2  ;;  %3960 = vrot.lane.b32.xlu2 %v3938_v51, %s8556_s22  ;;  %v3906_v34 = vsel %vm1189_vm1, %v3874_v48, %v3905_v28  ;;  %v3926_v62 = vperm.slane %v3918_v11, %v8877_v25  ;;  %v3935_v33 = vrot.slane %v3922_v14, 4  ;;  %s8558_s22 = smov 24  }
 0x415   : > { %v4585_v59 = vpack.c.b16 %v4584_v54, %v4583_v60  ;;  %v4556_v40 = vunpack.c.l.b16 %v4429_v52  ;;  %v3930_v39 = vsel %vm1189_vm1, %v3910_v15, %v3929_v38  ;;  %v3927_v5 = vrot.slane %v3910_v15, 4  ;;  %v8123_v38 = vld [vmem:[%s11187_s4 + $0x10] sm:$0x30] }
 0x416   : > { %3944 = vrot.lane.b32.xlu1 %v3930_v39, %s11153_s26  ;;  %v3914_v56 = vperm.slane %v3906_v34, %v8877_v25  ;;  %v9914_v31 = vsel %vm1189_vm1, %v3926_v62, %v3941_v63  ;;  %v3936_v48 = vsel %vm1189_vm1, %v3935_v33, %v9882_v45  ;;  %v8124_v45 = vld [vmem:[%s11187_s4 + $0x18] sm:$0x30]  ;;  %v7848_v34 = vld [vmem:[%s11187_s4 + $0x38] sm:$0xf]  ;;  %v7843_v39 = vld [vmem:[%s11187_s4 + $0x30] sm:$0xf] }
 0x417   : > { %v4557_v17 = vpack.c.b16 %v4556_v40, %v4555_v2  ;;  %4597 = vmatpush.bf16.msrb.mxu1 %v4585_v59  ;;  %v9917_v57 = vsel %vm1189_vm1, %v3927_v5, %v3886_v1  ;;  %v3939_v1 = vrot.slane %v3926_v62, 4  ;;  %v8128_v62 = vld [vmem:[%s11187_s4 + $0x38] sm:$0x30]  ;;  %v8127_v5 = vld [vmem:[%s11187_s4 + $0x30] sm:$0x30] }
 0x418   : > { %v3934_v3 = vsel %vm1189_vm1, %v3914_v56, %v3933_v20  ;;  %v3931_v61 = vrot.slane %v3914_v56, 4  ;;  %v7849_v56 = vor.u32 %v8128_v62, %v7848_v34 }
 0x419   : > { %3952 = vrot.lane.b32.xlu0 %v3934_v3, %s8558_s22  ;;  %4569 = vmatpush.bf16.msrb.mxu0 %v4557_v17  ;;  %v4287_v50 = vpop.f32.mrf.mxu3  ;;  %v3940_v19 = vsel %vm1189_vm1, %v3939_v1, %v3902_v0  ;;  %v7823_v0 = vld [vmem:[%s11187_s4 + $0x10] sm:$0xf]  ;;  %v7844_v17 = vor.u32 %v8127_v5, %v7843_v39  ;;  %s8573_s4 = smov 44  }
 0x41a   : > { %v3932_v6 = vsel %vm1189_vm1, %v3931_v61, %v3890_v42  ;;  %7840 = vmatmul.msk.bf16.vlgmr.msrb.gmra.mxu1 %vm967_vm0, %v7839_v46  ;;  %v4426_v26 = vpack.c.bf16 %v4287_v50, %v4287_v50  ;;  %v7829_v42 = vor.u32 %v8124_v45, %v7828_v4  ;;  %v7824_v30 = vor.u32 %v8123_v38, %v7823_v0 }
 0x41c   : > { %v4259_v12 = vpop.f32.mrf.mxu2  ;;  %3948 = vrot.lane.b32.xlu2 %v3932_v6, %s11145_s16  ;;  %7835 = vmatmul.msk.bf16.vlgmr.msrb.gmra.mxu0 %vm967_vm0, %v7834_v7  ;;  %v4527_v47 = vunpack.c.l.b16 %v4426_v26  ;;  %s8559_s16 = smov 60  }
 0x41d   : > { %v4424_v8 = vpack.c.bf16 %v4259_v12, %v4259_v12 }
 0x41e   : > { %3956 = vrot.lane.b32.xlu1 %v3936_v48, %s11147_s11  ;;  %s8560_s11 = smov 84  }
 0x41f   : > { %v4499_v32 = vunpack.c.l.b16 %v4424_v8 }
 0x421   : > { %3964 = vrot.lane.b32.xlu0 %v3940_v19, %s11150_s5  ;;  %v4289_v44 = vpop.f32.mrf.mxu3 }
 0x422   : > { %v4427_v24 = vpack.c.bf16 %v4289_v44, %v4289_v44 }
 0x424   : > { %v4261_v35 = vpop.f32.mrf.mxu2  ;;  %v4528_v29 = vunpack.c.l.b16 %v4427_v24 }
 0x425   : > { %v4425_v18 = vpack.c.bf16 %v4261_v35, %v4261_v35 }
 0x426   : > { %v4529_v58 = vpack.c.b16 %v4528_v29, %v4527_v47 }
 0x427   : > { %v4500_v14 = vunpack.c.l.b16 %v4425_v18 }
 0x428   : > { %4541 = vmatpush.bf16.msrb.mxu3 %v4529_v58 }
 0x429   : > { %v4501_v60 = vpack.c.b16 %v4500_v14, %v4499_v32  ;;  %v4399_v28 = vpop.f32.mrf.mxu3 }
 0x42a   : > { %v4434_v9 = vpack.c.bf16 %v4399_v28, %v4399_v28 }
 0x42b   : > { %4513 = vmatpush.bf16.msrb.mxu2 %v4501_v60  ;;  %7830 = vmatmul.msk.bf16.vlgmr.msrb.gmra.mxu3 %vm967_vm0, %v7829_v42 }
 0x42c   : > { %v4371_v49 = vpop.f32.mrf.mxu2  ;;  %v4639_v15 = vunpack.c.l.b16 %v4434_v9 }
 0x42d   : > { %v4432_v54 = vpack.c.bf16 %v4371_v49, %v4371_v49 }
 0x42e   : > { %7825 = vmatmul.msk.bf16.vlgmr.msrb.gmra.mxu2 %vm967_vm0, %v7824_v30 }
 0x42f   : > { %v4611_v63 = vunpack.c.l.b16 %v4432_v54 }
 0x431   : > { %v4401_v11 = vpop.f32.mrf.mxu3 }
 0x432   : > { %v4435_v52 = vpack.c.bf16 %v4401_v11, %v4401_v11 }
 0x434   : > { %v4373_v51 = vpop.f32.mrf.mxu2  ;;  %v4640_v2 = vunpack.c.l.b16 %v4435_v52 }
 0x435   : > { %v4433_v37 = vpack.c.bf16 %v4373_v51, %v4373_v51 }
 0x436   : > { %v4641_v59 = vpack.c.b16 %v4640_v2, %v4639_v15 }
 0x437   : > { %v4612_v40 = vunpack.c.l.b16 %v4433_v37 }
 0x438   : > { %4653 = vmatpush.bf16.msra.mxu3 %v4641_v59 }
 0x439   : > { %v4613_v20 = vpack.c.b16 %v4612_v40, %v4611_v63 }
 0x43b   : > { %4625 = vmatpush.bf16.msra.mxu2 %v4613_v20  ;;  %7850 = vmatmul.msk.bf16.vlgmr.msra.gmra.mxu3 %vm967_vm0, %v7849_v56 }
 0x43e   : > { %7845 = vmatmul.msk.bf16.vlgmr.msra.gmra.mxu2 %vm967_vm0, %v7844_v17 }
 0x487   : > { %v4487_v3 = vpop.f32.mrf.mxu1 }
 0x488   : > { %v4674_v33 = vrot.slane %v4487_v3, 4 }
 0x489   : > { %v4459_v61 = vpop.f32.mrf.mxu0 }
 0x48a   : > { %v4662_v23 = vrot.slane %v4459_v61, 4 }
 0x48f   : > { %v4489_v53 = vpop.f32.mrf.mxu1 }
 0x491   : > { %v4461_v27 = vpop.f32.mrf.mxu0 }
 0x497   : > { %v4599_v29 = vpop.f32.mrf.mxu1 }
 0x498   : > { %v4698_v4 = vrot.slane %v4599_v29, 4 }
 0x499   : > { %v4571_v32 = vpop.f32.mrf.mxu0 }
 0x49a   : > { %v4686_v14 = vrot.slane %v4571_v32, 4 }
 0x4ae   : > { %v4543_v55 = vpop.f32.mrf.mxu3 }
 0x4af   : > { %v4675_v6 = vsel %vm1189_vm1, %v4543_v55, %v4674_v33  ;;  %v4672_v1 = vrot.slane %v4543_v55, 4 }
 0x4b0   : > { %v4683_v7 = vperm.slane %v4675_v6, %v8824_v36 }
 0x4b1   : > { %v4515_v50 = vpop.f32.mrf.mxu2  ;;  %v4673_v44 = vsel %vm1189_vm1, %v4672_v1, %v4487_v3 }
 0x4b2   : > { %v4660_v46 = vrot.slane %v4515_v50, 4  ;;  %v4663_v12 = vsel %vm1189_vm1, %v4515_v50, %v4662_v23  ;;  %v4720_v35 = vrot.slane %v4683_v7, 4  ;;  %v4679_v18 = vperm.slane %v4673_v44, %v8824_v36 }
 0x4b3   : > { %v4671_v19 = vperm.slane %v4663_v12, %v8824_v36 }
 0x4b4   : > { %v4661_v48 = vsel %vm1189_vm1, %v4660_v46, %v4459_v61  ;;  %v4708_v42 = vrot.slane %v4679_v18, 4 }
 0x4b5   : > { %v4667_v8 = vperm.slane %v4661_v48, %v8824_v36  ;;  %v4722_v47 = vrot.slane %v4671_v19, 4  ;;  %v4721_v58 = vsel %vm1189_vm1, %v4720_v35, %v4671_v19  ;;  %v4601_v19 = vpop.f32.mrf.mxu1 }
 0x4b6   : > { %v4545_v26 = vpop.f32.mrf.mxu3  ;;  %v9959_v54 = vperm.slane %v4721_v58, %v8877_v25 }
 0x4b7   : > { %v4710_v45 = vrot.slane %v4667_v8, 4  ;;  %v4723_v38 = vsel %vm1189_vm1, %v4683_v7, %v4722_v47  ;;  %v4778_v49 = vrot.slane %v4545_v26, 4  ;;  %v4709_v5 = vsel %vm1189_vm1, %v4708_v42, %v4667_v8 }
 0x4b8   : > { %v9965_v37 = vperm.slane %v4723_v38, %v8877_v25  ;;  %v4766_v55 = vrot.slane %v9959_v54, 4 }
 0x4b9   : > { %v4517_v24 = vpop.f32.mrf.mxu2  ;;  %v4711_v52 = vsel %vm1189_vm1, %v4679_v18, %v4710_v45  ;;  %v4779_v61 = vsel %vm1189_vm1, %v4778_v49, %v4489_v53  ;;  %v4573_v45 = vpop.f32.mrf.mxu0 }
 0x4ba   : > { %v4772_v60 = vrot.slane %v4517_v24, 4  ;;  %v4719_v39 = vperm.slane %v4711_v52, %v8877_v25  ;;  %v4770_v23 = vrot.slane %v9965_v37, 4  ;;  %v4783_v18 = vperm.slane %v4779_v61, %v8824_v36 }
 0x4bc   : > { %v4773_v59 = vsel %vm1189_vm1, %v4772_v60, %v4461_v27  ;;  %v4762_v8 = vrot.slane %v4719_v39, 4 }
 0x4bd   : > { %v4777_v50 = vperm.slane %v4773_v59, %v8824_v36 }
 0x4be   : > { %v4655_v0 = vpop.f32.mrf.mxu3 }
 0x4bf   : > { %v4696_v28 = vrot.slane %v4655_v0, 4  ;;  %v4699_v30 = vsel %vm1189_vm1, %v4655_v0, %v4698_v4  ;;  %v4798_v4 = vrot.slane %v4777_v50, 4 }
 0x4c0   : > { %v4707_v9 = vperm.slane %v4699_v30, %v8824_v36  ;;  %v4796_v30 = vrot.slane %v4783_v18, 4 }
 0x4c1   : > { %v4627_v11 = vpop.f32.mrf.mxu2  ;;  %v4697_v51 = vsel %vm1189_vm1, %v4696_v28, %v4599_v29 }
 0x4c2   : > { %v4684_v15 = vrot.slane %v4627_v11, 4  ;;  %v4687_v2 = vsel %vm1189_vm1, %v4627_v11, %v4686_v14  ;;  %v4703_v34 = vperm.slane %v4697_v51, %v8824_v36  ;;  %v4744_v62 = vrot.slane %v4707_v9, 4 }
 0x4c3   : > { %v4695_v63 = vperm.slane %v4687_v2, %v8824_v36 }
 0x4c4   : > { %v4685_v40 = vsel %vm1189_vm1, %v4684_v15, %v4571_v32  ;;  %v4732_v56 = vrot.slane %v4703_v34, 4  ;;  %v4715_v32 = vperm.slane %v4709_v5, %v8877_v25 }
 0x4c5   : > { %v4691_v20 = vperm.slane %v4685_v40, %v8824_v36  ;;  %v4746_v17 = vrot.slane %v4695_v63, 4  ;;  %v4745_v3 = vsel %vm1189_vm1, %v4744_v62, %v4695_v63  ;;  %v4797_v63 = vsel %vm1189_vm1, %v4796_v30, %v4777_v50 }
 0x4c6   : > { %v9977_v33 = vperm.slane %v4745_v3, %v8877_v25  ;;  %v4657_v27 = vpop.f32.mrf.mxu3  ;;  %v4758_v52 = vrot.slane %v4715_v32, 4 }
 0x4c7   : > { %v4734_v46 = vrot.slane %v4691_v20, 4  ;;  %v4747_v6 = vsel %vm1189_vm1, %v4707_v9, %v4746_v17  ;;  %v4733_v12 = vsel %vm1189_vm1, %v4732_v56, %v4691_v20  ;;  %v4790_v1 = vrot.slane %v4657_v27, 4 }
 0x4c8   : > { %v4767_v7 = vsel %vm1189_vm1, %v9977_v33, %v4766_v55  ;;  %v4755_v53 = vperm.slane %v4747_v6, %v8877_v25  ;;  %v4739_v48 = vperm.slane %v4733_v12, %v8877_v25  ;;  %v4799_v9 = vsel %vm1189_vm1, %v4783_v18, %v4798_v4  ;;  %v3273_v6 = vpop.permute.xlu1 %3272  ;;  %v3953_v12 = vpop.permute.xlu0 %3952 }
 0x4c9   : > { %v4629_v26 = vpop.f32.mrf.mxu2  ;;  %4845 = vrot.lane.b32.xlu0 %v4767_v7, %s8559_s16  ;;  %v4735_v44 = vsel %vm1189_vm1, %v4703_v34, %v4734_v46  ;;  %v4791_v24 = vsel %vm1189_vm1, %v4790_v1, %v4601_v19  ;;  %s8561_s16 = smov 36   ;;  %v4807_v62 = vperm.slane %v4799_v9, %v8877_v25  ;;  %v4764_v56 = vrot.slane %v9977_v33, 4 }
 0x4ca   : > { %v4784_v35 = vrot.slane %v4629_v26, 4  ;;  %v4771_v47 = vsel %vm1189_vm1, %v4755_v53, %v4770_v23  ;;  %v4743_v29 = vperm.slane %v4735_v44, %v8877_v25  ;;  %v4756_v58 = vrot.slane %v4739_v48, 4 }
 0x4cb   : > { %4853 = vrot.lane.b32.xlu2 %v4771_v47, %s8560_s11  ;;  %v4795_v42 = vperm.slane %v4791_v24, %v8824_v36  ;;  %v4768_v51 = vrot.slane %v4755_v53, 4  ;;  %v4759_v34 = vsel %vm1189_vm1, %v4739_v48, %v4758_v52  ;;  %s8562_s11 = smov 12   ;;  %v4826_v5 = vrot.slane %v4807_v62, 4 }
 0x4cc   : > { %v4785_v14 = vsel %vm1189_vm1, %v4784_v35, %v4573_v45  ;;  %v4763_v0 = vsel %vm1189_vm1, %v4743_v29, %v4762_v8  ;;  %v4760_v38 = vrot.slane %v4743_v29, 4  ;;  %v9999_v28 = vsel %vm1189_vm1, %v4756_v58, %v4715_v32 }
 0x4cd   : > { %v4789_v60 = vperm.slane %v4785_v14, %v8824_v36  ;;  %4837 = vrot.lane.b32.xlu1 %v4763_v0, %s8561_s16  ;;  %v4808_v15 = vrot.slane %v4795_v42, 4  ;;  %v4769_v59 = vsel %vm1189_vm1, %v4768_v51, %v9965_v37  ;;  %s11149_s16 = smov 72   ;;  %v4803_v20 = vperm.slane %v4797_v63, %v8877_v25 }
 0x4ce   : > { %v4761_v11 = vsel %vm1189_vm1, %v4760_v38, %v4719_v39  ;;  %v4765_v37 = vsel %vm1189_vm1, %v4764_v56, %v9959_v54  ;;  %v3961_v54 = vpop.permute.xlu2 %3960 }
 0x4cf   : > { %v4810_v49 = vrot.slane %v4789_v60, 4  ;;  %v4809_v39 = vsel %vm1189_vm1, %v4808_v15, %v4789_v60  ;;  %v4822_v61 = vrot.slane %v4803_v20, 4 }
 0x4d0   : > { %v4815_v3 = vperm.slane %v4809_v39, %v8877_v25  ;;  %v3945_v1 = vpop.permute.xlu1 %3944  ;;  %v3965_v7 = vpop.permute.xlu0 %3964 }
 0x4d1   : > { %4833 = vrot.lane.b32.xlu0 %v4761_v11, %s8558_s22  ;;  %v4811_v2 = vsel %vm1189_vm1, %v4795_v42, %v4810_v49  ;;  %s8564_s22 = smov 108  }
 0x4d2   : > { %v4819_v40 = vperm.slane %v4811_v2, %v8877_v25  ;;  %v4823_v55 = vsel %vm1189_vm1, %v4815_v3, %v4822_v61  ;;  %v4820_v23 = vrot.slane %v4815_v3, 4  ;;  %v3283_v2 = vsel %vm2657_vm15, %v9690_v13, %v3273_v6 }
 0x4d3   : > { %4829 = vrot.lane.b32.xlu2 %v4759_v34, %s8562_s11  ;;  %v8567_v3 = vmov 64.0  }
 0x4d4   : > { %v4827_v17 = vsel %vm1189_vm1, %v4819_v40, %v4826_v5  ;;  %v4824_v33 = vrot.slane %v4819_v40, 4  ;;  %v4821_v50 = vsel %vm1189_vm1, %v4820_v23, %v4803_v20  ;;  %8430 = vrcp.f32 %v8567_v3 }
 0x4d5   : > { %4849 = vrot.lane.b32.xlu1 %v4769_v59, %s11149_s16  ;;  %s8565_s16 = smov 120  }
 0x4d6   : > { %v4825_v46 = vsel %vm1189_vm1, %v4824_v33, %v4807_v62  ;;  %v3949_v27 = vpop.permute.xlu2 %3948  ;;  %v8568_v33 = vmov 144.0  }
 0x4d7   : > { %8432 = vrcp.f32 %v8568_v33 }
 0x4d9   : > { %4869 = vrot.lane.b32.xlu0 %v4827_v17, %s8555_s18 }
 0x4db   : > { %4841 = vrot.lane.b32.xlu2 %v4765_v37, %s11150_s5  ;;  %s11152_s5 = smov 56   ;;  %v8431_v37 = vpop.eup %8430 }
 0x4dc   : > { %v3988_v61 = vmul.f32 64.0, %v8431_v37 }
 0x4dd   : > { %4861 = vrot.lane.b32.xlu1 %v4823_v55, %s8564_s22  ;;  %s11196_s22 = smov 112  }
 0x4de   : > { %v3989_v55 = vsub.f32 1.0, %v3988_v61 }
 0x4e0   : > { %v3990_v23 = vmul.f32 %v8431_v37, %v3989_v55 }
 0x4e1   : > { %4857 = vrot.lane.b32.xlu0 %v4821_v50, %s11158_s23 }
 0x4e2   : > { %v3991_v50 = vadd.f32 %v8431_v37, %v3990_v23 }
 0x4e3   : > { %4865 = vrot.lane.b32.xlu2 %v4825_v46, %s8565_s16  ;;  %v8569_v46 = vmov 16.0  }
 0x4e4   : > { %8434 = vrcp.f32 %v8569_v46 }
 0x4e5   : > { %2646 = vrot.lane.b32.xlu1 %v9503_v16, %s8555_s18  ;;  %s11195_s18 = sld [smem:[#allocation9_spill]] }
 0x4e9   : > { %3276 = vrot.lane.b32.xlu0 %v9705_v10, %s11153_s26 }
 0x4eb   : > { %3968 = vrot.lane.b32.xlu2 %v9914_v31, %s11152_s5  ;;  %v3957_v31 = vpop.permute.xlu1 %3956  ;;  %s8571_s5 = smov 124  }
 0x4ed   : > { %2654 = vrot.lane.b32.xlu1 %v9508_v43, %s8562_s11  ;;  %v3971_v43 = vsel %vm2659_vm2, %v9917_v57, %v3945_v1 }
 0x4f1   : > { %2650 = vrot.lane.b32.xlu0 %v9515_v41, %s11153_s26  ;;  %v3972_v41 = vsel %vm967_vm0, %v3971_v43, %v3949_v27  ;;  %s8572_s26 = smov 104  }
 0x4f2   : > { %v3974_v19 = vsel %vm3973_vm3, %v3972_v41, %v3953_v12 }
 0x4f3   : > { %3280 = vrot.lane.b32.xlu2 %v9693_v21, %s8562_s11  ;;  %v3976_v26 = vsel %vm3975_vm4, %v3974_v19, %v3957_v31  ;;  %s8570_s11 = smov 116  }
 0x4f4   : > { %v3978_v8 = vsel %vm3977_vm5, %v3976_v26, %v3961_v54  ;;  %vm4887_vm5 = vcmask 982016  }
 0x4f5   : > { %v3980_v47 = vsel %vm3979_vm7, %v3978_v8, %v3965_v7 }
 0x525   : > { %v4854_v16 = vpop.permute.xlu2 %4853 }
 0x52d   : > { %v4830_v10 = vpop.permute.xlu2 %4829 }
 0x52e   : > { %v4872_v24 = vsel %vm2661_vm6, %v9999_v28, %v4830_v10 }
 0x535   : > { %v4842_v53 = vpop.permute.xlu2 %4841 }
 0x53b   : > { %v4846_v48 = vpop.permute.xlu0 %4845 }
 0x53d   : > { %v4866_v21 = vpop.permute.xlu2 %4865 }
 0x53f   : > { %v4838_v44 = vpop.permute.xlu1 %4837 }
 0x543   : > { %v4834_v35 = vpop.permute.xlu0 %4833 }
 0x544   : > { %v4873_v57 = vsel %vm3973_vm3, %v4872_v24, %v4834_v35  ;;  %vm4885_vm3 = vcmask 883712  }
 0x545   : > { %v3969_v29 = vpop.permute.xlu2 %3968  ;;  %v4875_v4 = vsel %vm4874_vm9, %v4873_v57, %v4838_v44 }
 0x546   : > { %v3982_v18 = vsel %vm3981_vm8, %v3980_v47, %v3969_v29  ;;  %v4876_v58 = vsel %vm3979_vm7, %v4875_v4, %v4842_v53  ;;  %vm3992_vm8 = vweird.f32 %v8431_v37 }
 0x547   : > { %v4850_v45 = vpop.permute.xlu1 %4849  ;;  %v3984_v32 = vsel %vm3983_vm10, %v3982_v18, 0.0  ;;  %v4878_v0 = vsel %vm4877_vm11, %v4876_v58, %v4846_v48  ;;  %v3993_v54 = vsel %vm3992_vm8, %v8431_v37, %v3991_v50 }
 0x548   : > { %3985 = vadd.xlane.f32.xlu0 %v3984_v32  ;;  %v4880_v38 = vsel %vm4879_vm12, %v4878_v0, %v4850_v45 }
 0x549   : > { %v4882_v28 = vsel %vm4881_vm13, %v4880_v38, %v4854_v16 }
 0x54b   : > { %v4870_v14 = vpop.permute.xlu0 %4869 }
 0x54c   : > { %v4889_v60 = vsel %vm2657_vm15, %v4866_v21, %v4870_v14 }
 0x54d   : > { %v4890_v52 = vsel %vm967_vm0, %v4889_v60, 0.0  ;;  %v3281_v62 = vpop.permute.xlu2 %3280 }
 0x54f   : > { %v4862_v42 = vpop.permute.xlu1 %4861 }
 0x553   : > { %v4858_v30 = vpop.permute.xlu0 %4857 }
 0x554   : > { %v4884_v49 = vsel %vm4883_vm14, %v4882_v28, %v4858_v30 }
 0x555   : > { %v4886_v9 = vsel %vm4885_vm3, %v4884_v49, %v4862_v42 }
 0x556   : > { %v4888_v11 = vsel %vm4887_vm5, %v4886_v9, %v4866_v21 }
 0x557   : > { %v4891_v51 = vadd.f32 %v4890_v52, %v4888_v11  ;;  %v2647_v15 = vpop.permute.xlu1 %2646 }
 0x558   : > { %v2658_v39 = vsel %vm2657_vm15, %v9512_v22, %v2647_v15  ;;  %v8433_v22 = vpop.eup %8432 }
 0x559   : > { %4892 = vadd.xlane.f32.xlu2 %v4891_v51  ;;  %v4895_v27 = vmul.f32 144.0, %v8433_v22  ;;  %v8435_v12 = vpop.eup %8434  ;;  %vm4899_vm9 = vweird.f32 %v8433_v22 }
 0x55a   : > { %v2667_v53 = vmul.f32 16.0, %v8435_v12  ;;  %vm2671_vm11 = vweird.f32 %v8435_v12 }
 0x55b   : > { %v3277_v34 = vpop.permute.xlu0 %3276  ;;  %v4896_v10 = vsub.f32 1.0, %v4895_v27 }
 0x55c   : > { %v3284_v63 = vsel %vm2659_vm2, %v3283_v2, %v3277_v34  ;;  %v2668_v41 = vsub.f32 1.0, %v2667_v53 }
 0x55d   : > { %v3285_v59 = vsel %vm2661_vm6, %v3284_v63, %v3281_v62  ;;  %v4897_v43 = vmul.f32 %v8433_v22, %v4896_v10 }
 0x55e   : > { %v3286_v40 = vsel %vm967_vm0, %v3285_v59, 0.0  ;;  %v2669_v21 = vmul.f32 %v8435_v12, %v2668_v41 }
 0x55f   : > { %3287 = vadd.xlane.f32.xlu1 %v3286_v40  ;;  %v2655_v56 = vpop.permute.xlu1 %2654  ;;  %v4898_v48 = vadd.f32 %v8433_v22, %v4897_v43 }
 0x560   : > { %v2670_v44 = vadd.f32 %v8435_v12, %v2669_v21 }
 0x561   : > { %v4900_v19 = vsel %vm4899_vm9, %v8433_v22, %v4898_v48 }
 0x562   : > { %v2672_v57 = vsel %vm2671_vm11, %v8435_v12, %v2670_v44 }
 0x563   : > { %v2651_v5 = vpop.permute.xlu0 %2650 }
 0x564   : > { %v2660_v20 = vsel %vm2659_vm2, %v2658_v39, %v2651_v5 }
 0x565   : > { %v2662_v17 = vsel %vm2661_vm6, %v2660_v20, %v2655_v56  ;;  %v8427_v20 = vld [vmem:[%s8661_s20] ss:$0 sm:$0xff] }
 0x566   : > { %v2663_v13 = vsel %vm967_vm0, %v2662_v17, 0.0 }
 0x567   : > { %2664 = vadd.xlane.f32.xlu2 %v2663_v13 }
 0x5bb   : > { %v3986_v6 = vpop.xlane.xlu0 %3985 }
 0x5bc   : > { %v3994_v16 = vmul.f32 %v3993_v54, %v3986_v6 }
 0x5be   : > { %v3995_v1 = vsub.f32 %v3982_v18, %v3994_v16 }
 0x5c0   : > { %v3996_v7 = vmul.f32 %v3995_v1, %v3995_v1 }
 0x5c2   : > { %v3997_v31 = vsel %vm3983_vm10, %v3996_v7, 0.0  ;;  %v4926_v7 = vld [vmem:[%s8686_s14] sm:$0x3] }
 0x5c3   : > { %3998 = vadd.xlane.f32.xlu0 %v3997_v31  ;;  %v4928_v21 = vperm.slane %v4926_v7, 0 }
 0x5cc   : > { %v4893_v26 = vpop.xlane.xlu2 %4892 }
 0x5cd   : > { %v4901_v8 = vmul.f32 %v4900_v19, %v4893_v26 }
 0x5cf   : > { %v10064_v24 = vsub.f32 %v4888_v11, %v4901_v8  ;;  %v10066_v35 = vsub.f32 %v4889_v60, %v4901_v8 }
 0x5d1   : > { %v4904_v47 = vmul.f32 %v10064_v24, %v10064_v24  ;;  %v4905_v29 = vmul.f32 %v10066_v35, %v10066_v35 }
 0x5d2   : > { %v3288_v18 = vpop.xlane.xlu1 %3287 }
 0x5d3   : > { %v3289_v4 = vmul.f32 %v3288_v18, %v2672_v57  ;;  %v4906_v45 = vsel %vm967_vm0, %v4905_v29, 0.0 }
 0x5d4   : > { %v4907_v32 = vadd.f32 %v4906_v45, %v4904_v47 }
 0x5d5   : > { %v10073_v58 = vsub.f32 %v3285_v59, %v3289_v4 }
 0x5d6   : > { %4908 = vadd.xlane.f32.xlu2 %v4907_v32  ;;  %v8428_v32 = vld [vmem:[%s8636_s19] ss:$0 sm:$0xff] }
 0x5d7   : > { %v3291_v14 = vmul.f32 %v10073_v58, %v10073_v58 }
 0x5d9   : > { %v3292_v0 = vsel %vm967_vm0, %v3291_v14, 0.0 }
 0x5da   : > { %3293 = vadd.xlane.f32.xlu1 %v3292_v0  ;;  %v2665_v38 = vpop.xlane.xlu2 %2664 }
 0x5db   : > { %v2673_v42 = vmul.f32 %v2672_v57, %v2665_v38 }
 0x5dd   : > { %v10078_v60 = vsub.f32 %v2662_v17, %v2673_v42 }
 0x5df   : > { %v2675_v28 = vmul.f32 %v10078_v60, %v10078_v60 }
 0x5e1   : > { %v2676_v30 = vsel %vm967_vm0, %v2675_v28, 0.0 }
 0x5e2   : > { %2677 = vadd.xlane.f32.xlu2 %v2676_v30 }
 0x636   : > { %v3999_v49 = vpop.xlane.xlu0 %3998 }
 0x637   : > { %v4000_v9 = vmul.f32 %v3999_v49, %v3993_v54 }
 0x639   : > { %v4001_v11 = vadd.f32 1e-05, %v4000_v9  ;;  %v8429_v9 = vld [vmem:[%s11195_s18] ss:$0 sm:$0xff]  ;;  %s11197_s18 = smov 80  }
 0x63b   : > { %8436 = vrsqrt.f32 %v4001_v11  ;;  %vm4008_vm13 = vweird.f32 %v4001_v11 }
 0x641   : > { %v8437_v52 = vpop.eup %8436 }
 0x642   : > { %v4003_v51 = vmul.f32 %v8437_v52, %v4001_v11  ;;  %vm4009_vm12 = vweird.f32 %v8437_v52 }
 0x643   : > { %vm4010_vm3 = vmor %vm4008_vm13, %vm4009_vm12 }
 0x644   : > { %v4004_v15 = vmul.f32 %v8437_v52, %v4003_v51 }
 0x646   : > { %v4005_v2 = vmul.f32 0.5, %v4004_v15 }
 0x648   : > { %v4006_v34 = vsub.f32 1.5, %v4005_v2 }
 0x649   : > { %v4909_v62 = vpop.xlane.xlu2 %4908 }
 0x64a   : > { %v4007_v63 = vmul.f32 %v8437_v52, %v4006_v34  ;;  %v4910_v59 = vmul.f32 %v4909_v62, %v4900_v19  ;;  %v4929_v19 = vperm.slane %v4926_v7, 1 }
 0x64c   : > { %v4011_v40 = vsel %vm4010_vm3, %v8437_v52, %v4007_v63  ;;  %v4911_v39 = vadd.f32 1e-05, %v4910_v59 }
 0x64d   : > { %v4012_v5 = vmul.f32 %v4011_v40, %v3995_v1  ;;  %v3294_v56 = vpop.xlane.xlu1 %3293 }
 0x64e   : > { %8438 = vrsqrt.f32 %v4911_v39  ;;  %v3295_v17 = vmul.f32 %v3294_v56, %v2672_v57  ;;  %vm4918_vm8 = vweird.f32 %v4911_v39 }
 0x64f   : > { %v10084_v13 = vmax.f32 %v4012_v5, 0.0 }
 0x650   : > { %v3296_v3 = vadd.f32 1e-05, %v3295_v17 }
 0x651   : > { %v4018_v37 = vmul.f32 %v8427_v20, %v10084_v13 }
 0x652   : > { %8440 = vrsqrt.f32 %v3296_v3  ;;  %vm3303_vm12 = vweird.f32 %v3296_v3 }
 0x653   : > { %v4019_v61 = vsel %vm3983_vm10, %v4018_v37, 0.0 }
 0x654   : > { %v8439_v55 = vpop.eup %8438  ;;  %4020 = vadd.xlane.f32.xlu1 %v4019_v61 }
 0x655   : > { %v4913_v23 = vmul.f32 %v8439_v55, %v4911_v39  ;;  %v2678_v33 = vpop.xlane.xlu2 %2677  ;;  %vm4919_vm5 = vweird.f32 %v8439_v55 }
 0x656   : > { %v2679_v50 = vmul.f32 %v2678_v33, %v2672_v57  ;;  %vm4920_vm9 = vmor %vm4918_vm8, %vm4919_vm5 }
 0x657   : > { %v4914_v22 = vmul.f32 %v8439_v55, %v4913_v23 }
 0x658   : > { %v8441_v46 = vpop.eup %8440  ;;  %v2680_v54 = vadd.f32 1e-05, %v2679_v50 }
 0x659   : > { %v4915_v27 = vmul.f32 0.5, %v4914_v22  ;;  %v3298_v6 = vmul.f32 %v8441_v46, %v3296_v3  ;;  %vm3304_vm11 = vweird.f32 %v8441_v46 }
 0x65a   : > { %8442 = vrsqrt.f32 %v2680_v54  ;;  %vm3305_vm13 = vmor %vm3303_vm12, %vm3304_vm11  ;;  %vm2687_vm5 = vweird.f32 %v2680_v54  ;;  %vm5238_vm11 = vcmask 3072  }
 0x65b   : > { %v4916_v16 = vsub.f32 1.5, %v4915_v27  ;;  %v3299_v12 = vmul.f32 %v8441_v46, %v3298_v6 }
 0x65d   : > { %v4917_v1 = vmul.f32 %v8439_v55, %v4916_v16  ;;  %v3300_v10 = vmul.f32 0.5, %v3299_v12 }
 0x65f   : > { %v4921_v53 = vsel %vm4920_vm9, %v8439_v55, %v4917_v1  ;;  %v3301_v31 = vsub.f32 1.5, %v3300_v10  ;;  %vm5310_vm9 = vcmask 1041408  }
 0x660   : > { %v8443_v43 = vpop.eup %8442  ;;  %v4922_v41 = vmul.f32 %v4921_v53, %v10064_v24  ;;  %v4923_v48 = vmul.f32 %v4921_v53, %v10066_v35 }
 0x661   : > { %v3302_v26 = vmul.f32 %v8441_v46, %v3301_v31  ;;  %v2682_v44 = vmul.f32 %v8443_v43, %v2680_v54  ;;  %vm2688_vm3 = vweird.f32 %v8443_v43 }
 0x662   : > { %v10091_v8 = vmax.f32 %v4922_v41, 0.0  ;;  %v4925_v57 = vmax.f32 %v4923_v48, 0.0  ;;  %vm2689_vm8 = vmor %vm2687_vm5, %vm2688_vm3 }
 0x663   : > { %v3306_v47 = vsel %vm3305_vm13, %v8441_v46, %v3302_v26  ;;  %v2683_v29 = vmul.f32 %v8443_v43, %v2682_v44 }
 0x664   : > { %v3307_v18 = vmul.f32 %v3306_v47, %v10073_v58  ;;  %v4932_v4 = vmul.f32 %v4928_v21, %v10091_v8  ;;  %v4933_v45 = vmul.f32 %v4929_v19, %v4925_v57 }
 0x665   : > { %v2684_v24 = vmul.f32 0.5, %v2683_v29 }
 0x666   : > { %v10096_v35 = vmax.f32 %v3307_v18, 0.0  ;;  %v4934_v14 = vsel %vm967_vm0, %v4933_v45, 0.0 }
 0x667   : > { %v2685_v0 = vsub.f32 1.5, %v2684_v24  ;;  %v4935_v38 = vadd.f32 %v4934_v14, %v4932_v4 }
 0x668   : > { %v3313_v42 = vmul.f32 %v8428_v32, %v10096_v35 }
 0x669   : > { %v2686_v28 = vmul.f32 %v8443_v43, %v2685_v0  ;;  %4936 = vadd.xlane.f32.xlu0 %v4935_v38 }
 0x66a   : > { %v3314_v58 = vsel %vm967_vm0, %v3313_v42, 0.0 }
 0x66b   : > { %v2690_v30 = vsel %vm2689_vm8, %v8443_v43, %v2686_v28  ;;  %3315 = vadd.xlane.f32.xlu2 %v3314_v58  ;;  %vm5308_vm8 = vcmask 1040384  }
 0x66c   : > { %v2691_v49 = vmul.f32 %v2690_v30, %v10078_v60  ;;  %v8422_v60 = vpack.i.bf16 %v4925_v57, %v10091_v8 }
 0x66e   : > { %v10103_v11 = vmax.f32 %v2691_v49, 0.0 }
 0x670   : > { %2708 = vrot.lane.b32.xlu1 %v10103_v11, %s8570_s11  ;;  %v2697_v52 = vmul.f32 %v8429_v9, %v10103_v11  ;;  %v2713_v6 = vrot.slane %v10103_v11, 4 }
 0x672   : > { %v2698_v51 = vsel %vm967_vm0, %v2697_v52, 0.0 }
 0x673   : > { %2699 = vadd.xlane.f32.xlu0 %v2698_v51 }
 0x678   : > { %3321 = vrot.lane.b32.xlu1 %v10096_v35, %s8565_s16 }
 0x680   : > { %4026 = vrot.lane.b32.xlu1 %v10084_v13, %s11196_s22 }
 0x683   : > { %2702 = vrot.lane.b32.xlu2 %v10103_v11, %s8571_s5 }
 0x687   : > { %2705 = vrot.lane.b32.xlu0 %v10103_v11, %s8565_s16 }
 0x688   : > { %4038 = vrot.lane.b32.xlu1 %v10084_v13, %s11197_s18 }
 0x68b   : > { %3318 = vrot.lane.b32.xlu2 %v10096_v35, %s8571_s5 }
 0x68f   : > { %3324 = vrot.lane.b32.xlu0 %v10096_v35, %s8570_s11 }
 0x690   : > { %4032 = vrot.lane.b32.xlu1 %v10084_v13, %s11158_s23  ;;  %s11200_s23 = smov 8  }
 0x693   : > { %4029 = vrot.lane.b32.xlu2 %v10084_v13, %s8572_s26 }
 0x697   : > { %4041 = vrot.lane.b32.xlu0 %v10084_v13, %s11198_s3  ;;  %s11201_s3 = smov 56  }
 0x698   : > { %4957 = vrot.lane.b32.xlu1 %v10091_v8, %s8573_s4  ;;  %s11202_s4 = sld [smem:[#allocation20_spill]] }
 0x69b   : > { %4023 = vrot.lane.b32.xlu2 %v10084_v13, %s8565_s16  ;;  %s8576_s16 = smov 68  }
 0x69e   : > { %v5160_v63 = vld [vmem:[%s11202_s4] sm:$0xff]  ;;  %v5161_v56 = vld [vmem:[%s11202_s4 + $0x8] sm:$0xff]  ;;  %v5162_v50 = vld [vmem:[%s11202_s4 + $0x10] sm:$0xff] }
 0x69f   : > { %4035 = vrot.lane.b32.xlu0 %v10084_v13, %s8574_s8  ;;  %s8577_s8 = smov 20   ;;  %v5163_v26 = vld [vmem:[%s11202_s4 + $0x18] sm:$0xff] }
 0x6a0   : > { %4960 = vrot.lane.b32.xlu1 %v10091_v8, %s11199_s9 }
 0x6a3   : > { %4942 = vrot.lane.b32.xlu2 %v10091_v8, %s8572_s26  ;;  %s11203_s26 = sld [smem:[#allocation7_spill]] }
 0x6a7   : > { %8423 = vrot.lane.b32.xlu0 %v8422_v60, %s11200_s23  ;;  %s11206_s23 = sld [smem:[#allocation8_spill]] }
 0x6a8   : > { %4939 = vrot.lane.b32.xlu1 %v10091_v8, %s8570_s11  ;;  %s11207_s11 = sld [smem:[#allocation11_spill]] }
 0x6a9   : > { %v5312_v5 = vld [vmem:[%s11203_s26] sm:$0x3]  ;;  %v5313_v3 = vld [vmem:[%s11203_s26 + $0x2] sm:$0x3]  ;;  %v5318_v37 = vld [vmem:[%s11203_s26 + $0xc] sm:$0x3] }
 0x6aa   : > { %v5324_v20 = vsel %vm5310_vm9, %v5312_v5, 0  ;;  %v5343_v61 = vsel %vm5310_vm9, %v5313_v3, 0  ;;  %v5438_v55 = vsel %vm5310_vm9, %v5318_v37, 0  ;;  %v5315_v27 = vld [vmem:[%s11203_s26 + $0x6] sm:$0x3]  ;;  %v4046_v37 = vrot.slane %v10084_v13, 4 }
 0x6ab   : > { %4954 = vrot.lane.b32.xlu2 %v10091_v8, %s11201_s3  ;;  %5333 = vmatpush.bf16.msrb.mxu2 %v5324_v20  ;;  %v5381_v16 = vsel %vm5310_vm9, %v5315_v27, 0  ;;  %v5316_v18 = vld [vmem:[%s11203_s26 + $0x8] sm:$0x3] }
 0x6ac   : > { %5352 = vmatpush.bf16.msrb.mxu3 %v5343_v61  ;;  %v5400_v32 = vsel %vm5310_vm9, %v5316_v18, 0 }
 0x6ae   : > { %s11208_s3 = smov %s11207_s11 }
 0x6af   : > { %4945 = vrot.lane.b32.xlu0 %v10091_v8, %s8575_s12  ;;  %5390 = vmatpush.bf16.msra.mxu2 %v5381_v16  ;;  %s11205_s12 = sld [smem:[#allocation22_spill]] }
 0x6b0   : > { %5409 = vmatpush.bf16.msra.mxu3 %v5400_v32 }
 0x6b3   : > { %4951 = vrot.lane.b32.xlu2 %v10091_v8, %s8576_s16  ;;  %s7613_s16 = sshll.u32 %s8784_s2, 2  ;;  %s11212_s2 = sld [smem:[#allocation14_spill]] }
 0x6b7   : > { %4973 = vrot.lane.b32.xlu0 %v4925_v57, %s8571_s5  ;;  %s11204_s5 = sld [smem:[#allocation21_spill]] }
 0x6bb   : > { %4963 = vrot.lane.b32.xlu2 %v10091_v8, %s8577_s8  ;;  %s921_s8 = scalar_lea.vmem %s8731_s17, %s7613_s16 }
 0x6bf   : > { %4948 = vrot.lane.b32.xlu0 %v10091_v8, %s11197_s18 }
 0x6c7   : > { %v4021_v15 = vpop.xlane.xlu1 %4020 }
 0x6dc   : > { %v4937_v2 = vpop.xlane.xlu0 %4936 }
 0x6dd   : > { %5192 = vmatpush.msra.mxu0 %v4937_v2 }
 0x6de   : > { %v3316_v34 = vpop.xlane.xlu2 %3315 }
 0x6df   : > { %5193 = vmatpush.msra.mxu0 %v4021_v15 }
 0x6e1   : > { %5194 = vmatpush.msra.mxu0 %v3316_v34 }
 0x6e2   : > { %v2709_v62 = vpop.permute.xlu1 %2708 }
 0x6e3   : > { %v2723_v23 = vrot.slane %v2709_v62, 4 }
 0x6e6   : > { %v2703_v59 = vpop.permute.xlu2 %2702  ;;  %v2700_v40 = vpop.xlane.xlu0 %2699 }
 0x6e7   : > { %5195 = vmatpush.msra.mxu0 %v2700_v40  ;;  %v2724_v22 = vsel %vm1189_vm1, %v2723_v23, %v2703_v59  ;;  %v2725_v46 = vrot.slane %v2703_v59, 4 }
 0x6e8   : > { %7851 = vmatmul.msk.f32.vlgmr.msra.gmra.mxu0 %vm3975_vm4, %v5160_v63  ;;  %v2730_v12 = vperm.slane %v2724_v22, %v8824_v36 }
 0x6e9   : > { %5447 = vmatpush.bf16.msrb.mxu0 %v5438_v55  ;;  %v2726_v10 = vsel %vm1189_vm1, %v2709_v62, %v2725_v46 }
 0x6ea   : > { %v10143_v39 = vpop.permute.xlu1 %3321  ;;  %v2734_v41 = vperm.slane %v2726_v10, %v8824_v36  ;;  %v2735_v48 = vrot.slane %v2730_v12, 4 }
 0x6ec   : > { %v2747_v34 = vrot.slane %v2734_v41, 4 }
 0x6ee   : > { %v10148_v17 = vpop.permute.xlu2 %3318 }
 0x6f0   : > { %7852 = vmatmul.msk.f32.gmra.mxu0 %vm3975_vm4, %v5161_v56 }
 0x6f2   : > { %v10155_v33 = vpop.permute.xlu1 %4026 }
 0x6f3   : > { %v4047_v22 = vsel %vm1189_vm1, %v10155_v33, %v4046_v37 }
 0x6f6   : > { %v4030_v54 = vpop.permute.xlu2 %4029 }
 0x6f7   : > { %v4056_v38 = vrot.slane %v4030_v54, 4 }
 0x6f8   : > { %7853 = vmatmul.msk.f32.gmra.mxu0 %vm3975_vm4, %v5162_v50 }
 0x6f9   : > { %v2706_v1 = vpop.permute.xlu0 %2705 }
 0x6fa   : > { %v2711_v7 = vrot.slane %v2706_v1, 4  ;;  %v2714_v53 = vsel %vm1189_vm1, %v2706_v1, %v2713_v6  ;;  %v4039_v44 = vpop.permute.xlu1 %4038 }
 0x6fb   : > { %v2722_v31 = vperm.slane %v2714_v53, %v8824_v36  ;;  %v4068_v56 = vrot.slane %v4039_v44, 4  ;;  %v4055_v53 = vperm.slane %v4047_v22, %v8824_v36 }
 0x6fc   : > { %v2712_v43 = vsel %vm1189_vm1, %v2711_v7, %v10103_v11  ;;  %v4044_v11 = vrot.slane %v10155_v33, 4 }
 0x6fd   : > { %v2718_v21 = vperm.slane %v2712_v43, %v8824_v36  ;;  %v2749_v19 = vrot.slane %v2722_v31, 4  ;;  %v2748_v5 = vsel %vm1189_vm1, %v2747_v34, %v2722_v31  ;;  %v5319_v43 = vld [vmem:[%s11203_s26 + $0xe] sm:$0x3]  ;;  %v4106_v34 = vrot.slane %v4055_v53, 4 }
 0x6fe   : > { %v4024_v57 = vpop.permute.xlu2 %4023  ;;  %v4045_v63 = vsel %vm1189_vm1, %v4044_v11, %v10084_v13  ;;  %v10207_v23 = vperm.slane %v2748_v5, %v8877_v25  ;;  %v5457_v32 = vsel %vm5310_vm9, %v5319_v43, 0 }
 0x6ff   : > { %v2736_v47 = vsel %vm1189_vm1, %v2735_v48, %v2718_v21  ;;  %v2750_v29 = vsel %vm1189_vm1, %v2734_v41, %v2749_v19  ;;  %v2737_v28 = vrot.slane %v2718_v21, 4  ;;  %v4057_v49 = vsel %vm1189_vm1, %v4056_v38, %v4024_v57 }
 0x700   : > { %v2742_v4 = vperm.slane %v2736_v47, %v8877_v25  ;;  %7854 = vmatmul.msk.f32.gmra.mxu0 %vm3975_vm4, %v5163_v26  ;;  %v10181_v24 = vperm.slane %v2750_v29, %v8877_v25  ;;  %v4058_v9 = vrot.slane %v4024_v57, 4  ;;  %v4063_v15 = vperm.slane %v4057_v49, %v8824_v36 }
 0x701   : > { %v10177_v45 = vpop.permute.xlu0 %3324  ;;  %v2738_v60 = vsel %vm1189_vm1, %v2730_v12, %v2737_v28  ;;  %v4051_v61 = vperm.slane %v4045_v63, %v8824_v36  ;;  %v2771_v33 = vpack.c.bf16 %v10207_v23, %v10207_v23 }
 0x702   : > { %v2759_v14 = vrot.slane %v2742_v4, 4  ;;  %v2767_v0 = vpack.c.bf16 %v2742_v4, %v2742_v4  ;;  %v2773_v30 = vpack.c.bf16 %v10181_v24, %v10181_v24  ;;  %v4033_v52 = vpop.permute.xlu1 %4032  ;;  %v4059_v62 = vsel %vm1189_vm1, %v4030_v54, %v4058_v9 }
 0x703   : > { %v4070_v59 = vrot.slane %v4033_v52, 4  ;;  %v10199_v40 = vperm.slane %v2738_v60, %v8877_v25  ;;  %v4067_v20 = vperm.slane %v4059_v62, %v8824_v36  ;;  %v4092_v3 = vrot.slane %v4063_v15, 4 }
 0x704   : > { %v2760_v42 = vsel %vm1189_vm1, 0.0, %v2759_v14  ;;  %7857 = vmatmul.msk.bf16.vlgmr.msrb.gmra.mxu2 %vm2657_vm15, %v2767_v0  ;;  %v4069_v55 = vsel %vm1189_vm1, %v4068_v56, %v4033_v52  ;;  %v4094_v16 = vrot.slane %v4051_v61, 4 }
 0x705   : > { %v2768_v58 = vpack.c.bf16 %v2760_v42, %v2760_v42  ;;  %v4071_v50 = vsel %vm1189_vm1, %v4039_v44, %v4070_v59  ;;  %v2761_v46 = vrot.slane %v10199_v40, 4  ;;  %v4093_v54 = vsel %vm1189_vm1, %v4092_v3, %v4051_v61  ;;  %5466 = vmatpush.bf16.msrb.mxu2 %v5457_v32 }
 0x706   : > { %v10190_v51 = vpop.permute.xlu2 %4942  ;;  %v4104_v27 = vrot.slane %v4067_v20, 4  ;;  %v4075_v13 = vperm.slane %v4069_v55, %v8824_v36  ;;  %v4079_v12 = vperm.slane %v4071_v50, %v8824_v36  ;;  %v4095_v41 = vsel %vm1189_vm1, %v4063_v15, %v4094_v16 }
 0x707   : > { %7858 = vmatmul.msk.bf16.vlgmr.msrb.gmra.mxu3 %vm2657_vm15, %v2768_v58  ;;  %v10226_v48 = vperm.slane %v4093_v54, %v8877_v25  ;;  %v2762_v19 = vsel %vm1189_vm1, 0.0, %v2761_v46  ;;  %v10243_v58 = vperm.slane %v4095_v41, %v8877_v25  ;;  %v4107_v3 = vsel %vm1189_vm1, %v4067_v20, %v4106_v34 }
 0x708   : > { %7863 = vmatmul.msk.bf16.vlgmr.msrb.gmra.mxu0 %vm2657_vm15, %v2773_v30  ;;  %v4105_v26 = vsel %vm1189_vm1, %v4104_v27, %v4055_v53  ;;  %v4118_v44 = vrot.slane %v4075_v13, 4  ;;  %v4130_v29 = vrot.slane %v4079_v12, 4  ;;  %v2770_v4 = vpack.c.bf16 %v2762_v19, %v2762_v19 }
 0x709   : > { %v4042_v2 = vpop.permute.xlu0 %4041  ;;  %v10246_v30 = vperm.slane %v4105_v26, %v8877_v25  ;;  %v4142_v49 = vrot.slane %v10226_v48, 4  ;;  %v2765_v55 = vrot.slane %v10181_v24, 4  ;;  %v10274_v50 = vperm.slane %v4107_v3, %v8877_v25 }
 0x70a   : > { %v4080_v1 = vrot.slane %v4042_v2, 4  ;;  %v10216_v10 = vpop.permute.xlu1 %4957  ;;  %v4978_v26 = vrot.slane %v10091_v8, 4 }
 0x70b   : > { %v4150_v37 = vrot.slane %v10246_v30, 4  ;;  %v2766_v20 = vsel %vm1189_vm1, 0.0, %v2765_v55 }
 0x70c   : > { %v2774_v24 = vpack.c.bf16 %v2766_v20, %v2766_v20 }
 0x70e   : > { %v10218_v7 = vpop.permute.xlu2 %4954 }
 0x711   : > { %v4036_v6 = vpop.permute.xlu0 %4035 }
 0x712   : > { %v4082_v31 = vrot.slane %v4036_v6, 4  ;;  %v4081_v21 = vsel %vm1189_vm1, %v4080_v1, %v4036_v6  ;;  %v4961_v5 = vpop.permute.xlu1 %4960 }
 0x713   : > { %v4087_v47 = vperm.slane %v4081_v21, %v8824_v36  ;;  %v5090_v43 = vrot.slane %v4961_v5, 4 }
 0x714   : > { %v4083_v57 = vsel %vm1189_vm1, %v4042_v2, %v4082_v31  ;;  %7860 = vmatmul.msk.bf16.vlgmr.msra.gmra.mxu2 %vm2657_vm15, %v2770_v4  ;;  %v4976_v31 = vrot.slane %v10190_v51, 4 }
 0x715   : > { %v4091_v18 = vperm.slane %v4083_v57, %v8824_v36  ;;  %v4116_v14 = vrot.slane %v4087_v47, 4  ;;  %v4119_v0 = vsel %vm1189_vm1, %v4087_v47, %v4118_v44  ;;  %v5012_v44 = vrot.slane %v10216_v10, 4 }
 0x716   : > { %v10238_v38 = vperm.slane %v4119_v0, %v8877_v25  ;;  %v4952_v56 = vpop.permute.xlu2 %4951 }
 0x717   : > { %7861 = vmatmul.msk.bf16.vlgmr.msra.gmra.mxu3 %vm2657_vm15, %v2771_v33  ;;  %v4128_v42 = vrot.slane %v4091_v18, 4  ;;  %v4131_v28 = vsel %vm1189_vm1, %v4091_v18, %v4130_v29  ;;  %v4117_v9 = vsel %vm1189_vm1, %v4116_v14, %v4075_v13  ;;  %v5014_v32 = vrot.slane %v4952_v56, 4 }
 0x718   : > { %v10251_v52 = vperm.slane %v4117_v9, %v8877_v25  ;;  %v10255_v15 = vperm.slane %v4131_v28, %v8877_v25  ;;  %v4144_v2 = vrot.slane %v10238_v38, 4  ;;  %v4977_v28 = vsel %vm1189_vm1, %v4976_v31, %v10091_v8 }
 0x719   : > { %v8424_v11 = vpop.permute.xlu0 %8423  ;;  %v4129_v60 = vsel %vm1189_vm1, %v4128_v42, %v4079_v12 }
 0x71a   : > { %v10259_v62 = vperm.slane %v4129_v60, %v8877_v25  ;;  %v10263_v63 = vsel %vm1189_vm1, %v10251_v52, %v4142_v49  ;;  %v10267_v59 = vsel %vm1189_vm1, %v4144_v2, %v10243_v58  ;;  %v4152_v61 = vrot.slane %v10255_v15, 4  ;;  %v4940_v12 = vpop.permute.xlu1 %4939 }
 0x71b   : > { %v8426_v46 = vunpack.i.h.bf16 %v8424_v11  ;;  %v8425_v54 = vunpack.i.l.bf16 %v8424_v11  ;;  %v4990_v41 = vrot.slane %v4940_v12, 4  ;;  %v4979_v49 = vsel %vm1189_vm1, %v10190_v51, %v4978_v26 }
 0x71c   : > { %v10278_v22 = vsel %vm1189_vm1, %v10259_v62, %v4150_v37  ;;  %v10282_v13 = vsel %vm1189_vm1, %v4152_v61, %v10274_v50  ;;  %v5013_v11 = vsel %vm1189_vm1, %v5012_v44, %v4952_v56  ;;  %v5015_v61 = vsel %vm1189_vm1, %v10216_v10, %v5014_v32 }
 0x71d   : > { %v4971_v16 = vsel %vm2659_vm2, %v8425_v54, %v8426_v46  ;;  %v4983_v51 = vperm.slane %v4977_v28, %v8824_v36  ;;  %v4987_v55 = vperm.slane %v4979_v49, %v8824_v36  ;;  %v5019_v56 = vperm.slane %v5013_v11, %v8824_v36 }
 0x71e   : > { %v4964_v1 = vpop.permute.xlu2 %4963  ;;  %v5088_v53 = vrot.slane %v4971_v16, 4  ;;  %v5091_v47 = vsel %vm1189_vm1, %v4971_v16, %v5090_v43  ;;  %v5023_v16 = vperm.slane %v5015_v61, %v8824_v36 }
 0x71f   : > { %v5102_v21 = vrot.slane %v4964_v1, 4  ;;  %v5099_v60 = vperm.slane %v5091_v47, %v8824_v36 }
 0x720   : > { %v5089_v14 = vsel %vm1189_vm1, %v5088_v53, %v4961_v5  ;;  %v5038_v53 = vrot.slane %v4987_v55, 4  ;;  %v5060_v26 = vrot.slane %v5023_v16, 4 }
 0x721   : > { %v4946_v27 = vpop.permute.xlu0 %4945  ;;  %v5095_v5 = vperm.slane %v5089_v14, %v8824_v36 }
 0x722   : > { %v4988_v6 = vrot.slane %v4946_v27, 4  ;;  %v4991_v29 = vsel %vm1189_vm1, %v4946_v27, %v4990_v41  ;;  %v5000_v27 = vrot.slane %v10218_v7, 4 }
 0x723   : > { %v4999_v2 = vperm.slane %v4991_v29, %v8824_v36  ;;  %v5114_v31 = vrot.slane %v5095_v5, 4  ;;  %v5126_v29 = vrot.slane %v5099_v60, 4 }
 0x724   : > { %v4989_v33 = vsel %vm1189_vm1, %v4988_v6, %v4940_v12  ;;  %7864 = vmatmul.msk.bf16.vlgmr.msrb.gmra.mxu2 %vm2657_vm15, %v2774_v24 }
 0x725   : > { %v4995_v18 = vperm.slane %v4989_v33, %v8824_v36  ;;  %v5036_v20 = vrot.slane %v4999_v2, 4  ;;  %v5048_v33 = vrot.slane %v5019_v56, 4  ;;  %v5039_v32 = vsel %vm1189_vm1, %v4999_v2, %v5038_v53 }
 0x727   : > { %v5024_v3 = vrot.slane %v4995_v18, 4  ;;  %v5037_v41 = vsel %vm1189_vm1, %v5036_v20, %v4987_v55 }
 0x729   : > { %v4974_v19 = vpop.permute.xlu0 %4973  ;;  %v5025_v10 = vsel %vm1189_vm1, %v5024_v3, %v4983_v51 }
 0x72a   : > { %v5100_v57 = vrot.slane %v4974_v19, 4  ;;  %v5103_v4 = vsel %vm1189_vm1, %v4974_v19, %v5102_v21  ;;  %v10325_v43 = vperm.slane %v5025_v10, %v8877_v25 }
 0x72b   : > { %v5111_v42 = vperm.slane %v5103_v4, %v8824_v36 }
 0x72c   : > { %v5101_v0 = vsel %vm1189_vm1, %v5100_v57, %v4964_v1  ;;  %v5026_v1 = vrot.slane %v4983_v51, 4  ;;  %v5074_v11 = vrot.slane %v10325_v43, 4 }
 0x72d   : > { %v5107_v9 = vperm.slane %v5101_v0, %v8824_v36  ;;  %v5124_v34 = vrot.slane %v5111_v42, 4  ;;  %v10337_v0 = vperm.slane %v5037_v41, %v8877_v25  ;;  %v10381_v41 = vperm.slane %v5039_v32, %v8877_v25 }
 0x72e   : > { %v5027_v4 = vsel %vm1189_vm1, %v4995_v18, %v5026_v1 }
 0x72f   : > { %v5112_v37 = vrot.slane %v5107_v9, 4  ;;  %v5125_v8 = vsel %vm1189_vm1, %v5124_v34, %v5099_v60  ;;  %v5115_v44 = vsel %vm1189_vm1, %v5107_v9, %v5114_v31  ;;  %v10362_v55 = vperm.slane %v5027_v4, %v8877_v25 }
 0x730   : > { %v10316_v6 = vperm.slane %v5125_v8, %v8877_v25  ;;  %v10343_v34 = vperm.slane %v5115_v44, %v8877_v25 }
 0x731   : > { %v5113_v46 = vsel %vm1189_vm1, %v5112_v37, %v5095_v5  ;;  %v4949_v54 = vpop.permute.xlu0 %4948  ;;  %v5127_v37 = vsel %vm1189_vm1, %v5111_v42, %v5126_v29 }
 0x732   : > { %v10321_v24 = vperm.slane %v5113_v46, %v8877_v25  ;;  %v5001_v12 = vsel %vm1189_vm1, %v5000_v27, %v4949_v54  ;;  %v5140_v21 = vrot.slane %v10316_v6, 4  ;;  %v5002_v19 = vrot.slane %v4949_v54, 4 }
 0x733   : > { %v5007_v47 = vperm.slane %v5001_v12, %v8824_v36  ;;  %v10371_v12 = vperm.slane %v5127_v37, %v8877_v25  ;;  %v5149_v1 = vpack.c.bf16 %v10343_v34, %v10343_v34  ;;  %v5166_v37 = vld [vmem:[%s11204_s5 + $0x10] sm:$0xff] }
 0x734   : > { %v5136_v57 = vrot.slane %v10321_v24, 4  ;;  %v5003_v14 = vsel %vm1189_vm1, %v10218_v7, %v5002_v19  ;;  %v5141_v18 = vsel %vm1189_vm1, 0.0, %v5140_v21 }
 0x735   : > { %v5011_v28 = vperm.slane %v5003_v14, %v8824_v36  ;;  %v5049_v49 = vsel %vm1189_vm1, %v5048_v33, %v5007_v47  ;;  %v5050_v9 = vrot.slane %v5007_v47, 4  ;;  %v5155_v46 = vpack.c.bf16 %v5141_v18, %v5141_v18 }
 0x736   : > { %v10347_v60 = vperm.slane %v5049_v49, %v8877_v25  ;;  %v5137_v3 = vsel %vm1189_vm1, 0.0, %v5136_v57  ;;  %v5157_v47 = vpack.c.bf16 %v10371_v12, %v10371_v12  ;;  %v10393_v29 = vunpack.c.l.b16 %v5149_v1 }
 0x737   : > { %v5051_v7 = vsel %vm1189_vm1, %v5019_v56, %v5050_v9  ;;  %v5061_v2 = vsel %vm1189_vm1, %v5060_v26, %v5011_v28  ;;  %v5062_v5 = vrot.slane %v5011_v28, 4  ;;  %v5082_v56 = vrot.slane %v10337_v0, 4 }
 0x738   : > { %v10354_v61 = vperm.slane %v5051_v7, %v8877_v25  ;;  %v10357_v8 = vperm.slane %v5061_v2, %v8877_v25  ;;  %v5075_v51 = vsel %vm1189_vm1, %v10347_v60, %v5074_v11  ;;  %v5147_v10 = vpack.c.bf16 %v5137_v3, %v5137_v3 }
 0x739   : > { %v5063_v54 = vsel %vm1189_vm1, %v5023_v16, %v5062_v5  ;;  %v5146_v20 = vpack.c.bf16 %v5075_v51, %v5075_v51  ;;  %v10383_v19 = vunpack.c.l.b16 %v5155_v46  ;;  %v10405_v11 = vunpack.c.l.b16 %v5157_v47  ;;  %v5167_v51 = vld [vmem:[%s11204_s5 + $0x18] sm:$0xff]  ;;  %v5317_v47 = vld [vmem:[%s11203_s26 + $0xa] sm:$0x3] }
 0x73a   : > { %v10367_v27 = vperm.slane %v5063_v54, %v8877_v25  ;;  %v5076_v42 = vrot.slane %v10354_v61, 4  ;;  %v5083_v53 = vsel %vm1189_vm1, %v10357_v8, %v5082_v56  ;;  %v10387_v44 = vunpack.c.l.b16 %v5147_v10  ;;  %v5165_v56 = vld [vmem:[%s11204_s5 + $0x8] sm:$0xff] }
 0x73b   : > { %v5154_v31 = vpack.c.bf16 %v5083_v53, %v5083_v53  ;;  %v10385_v26 = vunpack.c.l.b16 %v5146_v20  ;;  %v5164_v20 = vld [vmem:[%s11204_s5] sm:$0xff]  ;;  %s8472_s5 = scalar_lea.hbm %s8721_s6, 32 }
 0x73c   : > { %v5077_v33 = vsel %vm1189_vm1, %v5076_v42, %v10362_v55  ;;  %v5084_v16 = vrot.slane %v10367_v27, 4 }
 0x73d   : > { %v5148_v21 = vpack.c.bf16 %v5077_v33, %v5077_v33  ;;  %v10389_v57 = vunpack.c.l.b16 %v5154_v31  ;;  %v6624_v14 = vpack.c.b16 %v10387_v44, %v10385_v26  ;;  %v5314_v31 = vld [vmem:[%s11203_s26 + $0x4] sm:$0x3] }
 0x73e   : > { %v5085_v32 = vsel %vm1189_vm1, %v5084_v16, %v10381_v41  ;;  %v5362_v7 = vsel %vm5310_vm9, %v5314_v31, 0 }
 0x73f   : > { %v10395_v4 = vunpack.c.l.b16 %v5148_v21  ;;  %v5156_v9 = vpack.c.bf16 %v5085_v32, %v5085_v32 }
 0x741   : > { %v10407_v18 = vunpack.c.l.b16 %v5156_v9  ;;  %v5213_v9 = vld [vmem:[%s11205_s12] sm:$0x7f]  ;;  %s11209_s12 = sld [smem:[#allocation12_spill]] }
 0x765   : > { %v5197_v2 = vpop.f32.mrf.mxu0 }
 0x766   : > { %v5198_v53 = vadd.f32 %v5197_v2, %v5164_v20 }
 0x768   : > { %v5209_v32 = vmax.f32 %v5198_v53, 0.0  ;;  %v3339_v53 = vrot.slane %v10177_v45, 4 }
 0x76d   : > { %v5200_v5 = vpop.f32.mrf.mxu0 }
 0x76e   : > { %v5201_v10 = vadd.f32 %v5200_v5, %v5165_v56  ;;  %v5419_v5 = vsel %vm5310_vm9, %v5317_v47, 0  ;;  %v8129_v56 = vld [vmem:[%s11206_s23] sm:$0xff] }
 0x770   : > { %v5210_v16 = vmax.f32 %v5201_v10, 0.0 }
 0x775   : > { %v5203_v3 = vpop.f32.mrf.mxu0 }
 0x776   : > { %v5204_v54 = vadd.f32 %v5203_v3, %v5166_v37 }
 0x778   : > { %v5211_v33 = vmax.f32 %v5204_v54, 0.0 }
 0x77d   : > { %v5206_v46 = vpop.f32.mrf.mxu0 }
 0x77e   : > { %v5207_v42 = vadd.f32 %v5206_v46, %v5167_v51 }
 0x780   : > { %v5212_v1 = vmax.f32 %v5207_v42, 0.0  ;;  %v2769_v42 = vpack.c.bf16 %v10199_v40, %v10199_v40 }
 0x782   : > { %5230 = vmatpush.msra.mxu1 %v5212_v1  ;;  %v2763_v1 = vrot.slane %v10207_v23, 4 }
 0x784   : > { %5231 = vmatpush.msra.mxu1 %v5211_v33  ;;  %v5732_v33 = vld [vmem:[%s11207_s11] sm:$0x3]  ;;  %v2764_v40 = vsel %vm1189_vm1, 0.0, %v2763_v1  ;;  %s11210_s11 = sld [smem:[#allocation13_spill]] }
 0x785   : > { %v10416_v21 = vpop.f32.mrf.mxu0 }
 0x786   : > { %5232 = vmatpush.msra.mxu1 %v5210_v16 }
 0x787   : > { %v5335_v3 = vpop.f32.mrf.mxu2 }
 0x788   : > { %5233 = vmatpush.msra.mxu1 %v5209_v32  ;;  %v5488_v37 = vpack.c.bf16 %v5335_v3, %v5335_v3  ;;  %v3340_v3 = vsel %vm1189_vm1, %v3339_v53, %v10148_v17 }
 0x789   : > { %7855 = vmatmul.msk.f32.vlgmr.msra.gmra.mxu1 %vm3975_vm4, %v5213_v9  ;;  %v5744_v9 = vsel %vm5310_vm9, %v5732_v33, 0 }
 0x78a   : > { %v5354_v2 = vpop.f32.mrf.mxu3  ;;  %5371 = vmatpush.bf16.msrb.mxu1 %v5362_v7  ;;  %v5505_v51 = vsel %vm5310_vm9, %v5488_v37, 0  ;;  %v8133_v37 = vld [vmem:[%s11206_s23 + $0x20] sm:$0xff] }
 0x78b   : > { %5514 = vmatpush.bf16.msrb.mxu3 %v5505_v51  ;;  %v5489_v46 = vpack.c.bf16 %v5354_v2, %v5354_v2  ;;  %v8132_v2 = vld [vmem:[%s11206_s23 + $0x18] sm:$0xff]  ;;  %v3327_v51 = vrot.slane %v10143_v39, 4 }
 0x78d   : > { %v5451_v54 = vpop.f32.mrf.mxu0  ;;  %v5530_v10 = vsel %vm5310_vm9, %v5489_v46, 0  ;;  %v3346_v46 = vperm.slane %v3340_v3, %v8824_v36 }
 0x78e   : > { %5428 = vmatpush.bf16.msra.mxu1 %v5419_v5  ;;  %7869 = vmatmul.msk.bf16.vlgmr.msrb.gmra.mxu3 %vm2657_vm15, %v8129_v56  ;;  %v2772_v56 = vpack.c.bf16 %v2764_v40, %v2764_v40 }
 0x78f   : > { %v5337_v20 = vpop.f32.mrf.mxu2  ;;  %v3351_v1 = vrot.slane %v3346_v46, 4 }
 0x790   : > { %v3328_v20 = vsel %vm1189_vm1, %v3327_v51, %v10096_v35 }
 0x791   : > { %7859 = vmatmul.msk.bf16.vlgmr.msrb.gmra.mxu1 %vm2657_vm15, %v2769_v42  ;;  %v5736_v42 = vld [vmem:[%s11208_s3 + $0x8] sm:$0x3]  ;;  %v3334_v53 = vperm.slane %v3328_v20, %v8824_v36 }
 0x792   : > { %5539 = vmatpush.bf16.msrb.mxu1 %v5530_v10  ;;  %v5356_v7 = vpop.f32.mrf.mxu3 }
 0x793   : > { %v5820_v7 = vsel %vm5310_vm9, %v5736_v42, 0  ;;  %v3352_v33 = vsel %vm1189_vm1, %v3351_v1, %v3334_v53  ;;  %v8130_v42 = vld [vmem:[%s11206_s23 + $0x8] sm:$0xff] }
 0x797   : > { %v5392_v31 = vpop.f32.mrf.mxu2 }
 0x798   : > { %v5491_v32 = vpack.c.bf16 %v5392_v31, %v5392_v31  ;;  %v3341_v31 = vrot.slane %v10148_v17, 4  ;;  %v3353_v17 = vrot.slane %v3334_v53, 4 }
 0x79a   : > { %v5411_v16 = vpop.f32.mrf.mxu3  ;;  %v5580_v23 = vsel %vm5310_vm9, %v5491_v32, 0 }
 0x79b   : > { %v5492_v47 = vpack.c.bf16 %v5411_v16, %v5411_v16  ;;  %5589 = vmatpush.bf16.msra.mxu2 %v5580_v23  ;;  %v5735_v16 = vld [vmem:[%s11208_s3 + $0x6] sm:$0x3]  ;;  %v8136_v23 = vld [vmem:[%s11206_s23 + $0x38] sm:$0xff] }
 0x79c   : > { %v5801_v3 = vsel %vm5310_vm9, %v5735_v16, 0 }
 0x79d   : > { %v5605_v5 = vsel %vm5310_vm9, %v5492_v47, 0  ;;  %v10455_v47 = vperm.slane %v3352_v33, %v8877_v25 }
 0x79e   : > { %5614 = vmatpush.bf16.msra.mxu3 %v5605_v5  ;;  %7884 = vmatmul.msk.bf16.vlgmr.msra.gmra.mxu2 %vm2657_vm15, %v8132_v2  ;;  %v5739_v5 = vld [vmem:[%s11208_s3 + $0xe] sm:$0x3] }
 0x79f   : > { %v5394_v10 = vpop.f32.mrf.mxu2  ;;  %v3383_v2 = vpack.c.bf16 %v10455_v47, %v10455_v47 }
 0x7a1   : > { %7862 = vmatmul.msk.bf16.vlgmr.msra.gmra.mxu1 %vm2657_vm15, %v2772_v56  ;;  %7889 = vmatmul.msk.bf16.vlgmr.msra.gmra.mxu3 %vm2657_vm15, %v8133_v37  ;;  %v5877_v56 = vsel %vm5310_vm9, %v5739_v5, 0 }
 0x7a2   : > { %5753 = vmatpush.bf16.msrb.mxu3 %v5744_v9  ;;  %v5413_v54 = vpop.f32.mrf.mxu3  ;;  %v3342_v9 = vsel %vm1189_vm1, %v10177_v45, %v3341_v31  ;;  %v3354_v45 = vsel %vm1189_vm1, %v3346_v46, %v3353_v17 }
 0x7a3   : > { %v3350_v51 = vperm.slane %v3342_v9, %v8824_v36  ;;  %v3329_v54 = vrot.slane %v10096_v35, 4  ;;  %v10476_v1 = vperm.slane %v3354_v45, %v8877_v25 }
 0x7a5   : > { %v3330_v20 = vsel %vm1189_vm1, %v10143_v39, %v3329_v54  ;;  %v3377_v46 = vrot.slane %v10476_v1, 4 }
 0x7a6   : > { %5829 = vmatpush.bf16.msra.mxu3 %v5820_v7  ;;  %v3363_v7 = vrot.slane %v3350_v51, 4  ;;  %v3338_v35 = vperm.slane %v3330_v20, %v8824_v36 }
 0x7a7   : > { %v5468_v40 = vpop.f32.mrf.mxu2  ;;  %v3378_v39 = vsel %vm1189_vm1, 0.0, %v3377_v46 }
 0x7a8   : > { %v5495_v32 = vpack.c.bf16 %v5468_v40, %v5468_v40  ;;  %v3364_v53 = vsel %vm1189_vm1, %v3363_v7, %v3338_v35  ;;  %v3365_v31 = vrot.slane %v3338_v35, 4  ;;  %v3386_v40 = vpack.c.bf16 %v3378_v39, %v3378_v39  ;;  %v8131_v39 = vld [vmem:[%s11206_s23 + $0x10] sm:$0xff] }
 0x7a9   : > { %v10482_v33 = vperm.slane %v3364_v53, %v8877_v25 }
 0x7aa   : > { %v5680_v37 = vsel %vm5310_vm9, %v5495_v32, 0  ;;  %v3366_v32 = vsel %vm1189_vm1, %v3350_v51, %v3365_v31 }
 0x7ab   : > { %5689 = vmatpush.bf16.msrb.mxu2 %v5680_v37  ;;  %v3387_v16 = vpack.c.bf16 %v10482_v33, %v10482_v33  ;;  %v10491_v9 = vperm.slane %v3366_v32, %v8877_v25 }
 0x7ae   : > { %7904 = vmatmul.msk.bf16.vlgmr.msrb.gmra.mxu2 %vm2657_vm15, %v8136_v23  ;;  %v5214_v23 = vld [vmem:[%s8716_s25] sm:$0x7f] }
 0x7af   : > { %5810 = vmatpush.bf16.msra.mxu2 %v5801_v3  ;;  %v5470_v10 = vpop.f32.mrf.mxu2  ;;  %v3381_v3 = vrot.slane %v10491_v9, 4 }
 0x7b1   : > { %7905 = vmatmul.msk.bf16.vlgmr.msrb.gmra.mxu3 %vm2657_vm15, %v3383_v2  ;;  %7874 = vmatmul.msk.bf16.vlgmr.msrb.gmra.mxu1 %vm2657_vm15, %v8130_v42  ;;  %v3382_v5 = vsel %vm1189_vm1, 0.0, %v3381_v3  ;;  %v5494_v42 = vpack.c.bf16 %v10416_v21, %v10416_v21 }
 0x7b2   : > { %v3390_v37 = vpack.c.bf16 %v3382_v5, %v3382_v5 }
 0x7b3   : > { %5886 = vmatpush.bf16.msrb.mxu2 %v5877_v56 }
 0x7be   : > { %7908 = vmatmul.msk.bf16.vlgmr.msra.gmra.mxu2 %vm2657_vm15, %v3386_v40 }
 0x7c1   : > { %7909 = vmatmul.msk.bf16.vlgmr.msra.gmra.mxu3 %vm2657_vm15, %v3387_v16  ;;  %v5655_v16 = vsel %vm5310_vm9, %v5494_v42, 0 }
 0x7ce   : > { %7912 = vmatmul.msk.bf16.vlgmr.msrb.gmra.mxu2 %vm2657_vm15, %v3390_v37 }
 0x806   : > { %v5235_v2 = vpop.f32.mrf.mxu1 }
 0x807   : > { %v5236_v17 = vadd.f32 %v5235_v2, %v5214_v23 }
 0x809   : > { %v5239_v56 = vsel %vm5238_vm11, %v5236_v17, -inf  ;;  %v7856_v51 = vmul.f32 -1.442695, %v5236_v17 }
 0x80a   : > { %v5240_v54 = vrot.slane %v5239_v56, 4 }
 0x80b   : > { %8444 = vpow2.f32 %v7856_v51 }
 0x80c   : > { %v5241_v45 = vmax.f32 %v5239_v56, %v5240_v54 }
 0x80e   : > { %v5242_v20 = vrot.slane %v5241_v45, 2  ;;  %v5373_v10 = vpop.f32.mrf.mxu1 }
 0x80f   : > { %v5490_v7 = vpack.c.bf16 %v5373_v10, %v5373_v10 }
 0x810   : > { %v5243_v35 = vmax.f32 %v5241_v45, %v5242_v20 }
 0x811   : > { %v8445_v53 = vpop.eup %8444  ;;  %v5555_v46 = vsel %vm5310_vm9, %v5490_v7, 0  ;;  %v10503_v32 = vpop.f32.mrf.mxu3 }
 0x812   : > { %v5244_v31 = vrot.slane %v5243_v35, 1  ;;  %v5274_v40 = vadd.f32 1.0, %v8445_v53  ;;  %5564 = vmatpush.bf16.msra.mxu0 %v5555_v46  ;;  %v8134_v46 = vld [vmem:[%s11206_s23 + $0x28] sm:$0xff] }
 0x814   : > { %v5245_v3 = vmax.f32 %v5243_v35, %v5244_v31  ;;  %8446 = vrcp.f32 %v5274_v40  ;;  %v5286_v54 = vand.u32 2147483648, %v5274_v40  ;;  %v5284_v20 = vand.u32 2147483647, %v5274_v40 }
 0x815   : > { %7879 = vmatmul.msk.bf16.vlgmr.msra.gmra.mxu0 %vm2657_vm15, %v8131_v39  ;;  %vm5280_vm13 = vweird.f32 %v5274_v40  ;;  %v8135_v39 = vld [vmem:[%s11206_s23 + $0x30] sm:$0xff] }
 0x816   : > { %5664 = vmatpush.bf16.msrb.mxu0 %v5655_v16  ;;  %v5246_v21 = vsub.f32 %v5236_v17, %v5245_v3  ;;  %v5375_v5 = vpop.f32.mrf.mxu1  ;;  %v5287_v31 = vor.u32 1.1754944e-38, %v5286_v54  ;;  %v5733_v3 = vld [vmem:[%s11208_s3 + $0x2] sm:$0x3]  ;;  %vm5285_vm5 = vcmp.eq.f32.partialorder %v5284_v20, 8.507059e+37 }
 0x818   : > { %v5247_v37 = vmul.f32 1.442695, %v5246_v21  ;;  %v5734_v21 = vld [vmem:[%s11208_s3 + $0x4] sm:$0x3] }
 0x819   : > { %v10506_v2 = vpop.f32.mrf.mxu3 }
 0x81a   : > { %v8447_v23 = vpop.eup %8446  ;;  %8448 = vpow2.f32 %v5247_v37  ;;  %v5763_v37 = vsel %vm5310_vm9, %v5733_v3, 0  ;;  %v5737_v3 = vld [vmem:[%s11208_s3 + $0xa] sm:$0x3] }
 0x81b   : > { %v5276_v56 = vmul.f32 %v8447_v23, %v5274_v40  ;;  %vm5281_vm12 = vweird.f32 %v8447_v23 }
 0x81c   : > { %vm5282_vm3 = vmor %vm5280_vm13, %vm5281_vm12  ;;  %vm7437_vm12 = vcmask 2048  }
 0x81d   : > { %v5277_v51 = vsub.f32 1.0, %v5276_v56  ;;  %v5782_v56 = vsel %vm5310_vm9, %v5734_v21, 0  ;;  %v5738_v21 = vld [vmem:[%s11208_s3 + $0xc] sm:$0x3]  ;;  %s917_s3 = scalar_lea.vmem %s8726_s21, %s7613_s16 }
 0x81e   : > { %v5430_v45 = vpop.f32.mrf.mxu1  ;;  %5791 = vmatpush.bf16.msra.mxu0 %v5782_v56 }
 0x81f   : > { %v5278_v42 = vmul.f32 %v8447_v23, %v5277_v51  ;;  %v5493_v10 = vpack.c.bf16 %v5430_v45, %v5430_v45 }
 0x820   : > { %v10508_v7 = vpop.eup %8448 }
 0x821   : > { %v5249_v17 = vsel %vm5238_vm11, %v10508_v7, 0.0  ;;  %v5279_v35 = vadd.f32 %v8447_v23, %v5278_v42  ;;  %v5630_v53 = vsel %vm5310_vm9, %v5493_v10, 0 }
 0x822   : > { %v5250_v16 = vrot.slane %v5249_v17, 4  ;;  %5639 = vmatpush.bf16.msra.mxu1 %v5630_v53  ;;  %v10521_v53 = vpop.f32.mrf.mxu2 }
 0x823   : > { %v5283_v5 = vsel %vm5282_vm3, %v8447_v23, %v5279_v35 }
 0x824   : > { %v5251_v51 = vadd.f32 %v5250_v16, %v5249_v17  ;;  %v5288_v45 = vsel %vm5285_vm5, %v5287_v31, %v5283_v5  ;;  %v10519_v40 = vpop.f32.mrf.mxu3 }
 0x825   : > { %v5290_v42 = vmul.f32 10.0, %v5288_v45  ;;  %v5292_v54 = vmul.f32 4.8, %v5288_v45  ;;  %v5294_v10 = vmul.f32 1.6, %v5288_v45  ;;  %7894 = vmatmul.msk.bf16.vlgmr.msra.gmra.mxu1 %vm2657_vm15, %v8134_v46  ;;  %7899 = vmatmul.msk.bf16.vlgmr.msrb.gmra.mxu0 %vm2657_vm15, %v8135_v39  ;;  %v5839_v45 = vsel %vm5310_vm9, %v5737_v3, 0 }
 0x826   : > { %5772 = vmatpush.bf16.msrb.mxu1 %v5763_v37  ;;  %v5252_v23 = vrot.slane %v5251_v51, 2  ;;  %v5432_v20 = vpop.f32.mrf.mxu1  ;;  %v5858_v39 = vsel %vm5310_vm9, %v5738_v21, 0 }
 0x827   : > { %v5291_v17 = vadd.f32 5.0, %v5290_v42  ;;  %v5293_v35 = vadd.f32 15.0, %v5292_v54  ;;  %v5296_v16 = vrot.slane %v5294_v10, 1  ;;  %5867 = vmatpush.bf16.msrb.mxu0 %v5858_v39 }
 0x828   : > { %v5253_v31 = vadd.f32 %v5252_v23, %v5251_v51  ;;  %v3375_v51 = vrot.slane %v10455_v47, 4 }
 0x829   : > { %v5298_v5 = vadd.f32 %v5296_v16, %v5293_v35  ;;  %v5300_v37 = vrot.slane %v5291_v17, 4  ;;  %v5303_v56 = vrot.slane %v5293_v35, 4  ;;  %v3385_v16 = vpack.c.bf16 %v10476_v1, %v10476_v1 }
 0x82a   : > { %v5254_v46 = vrot.slane %v5253_v31, 1  ;;  %5848 = vmatpush.bf16.msra.mxu1 %v5839_v45  ;;  %v10537_v17 = vpop.f32.mrf.mxu2  ;;  %v3376_v35 = vsel %vm1189_vm1, 0.0, %v3375_v51  ;;  %v3379_v51 = vrot.slane %v10482_v33, 4 }
 0x82b   : > { %v5306_v20 = vrot.slane %v5298_v5, 3  ;;  %v5309_v42 = vsel %vm5308_vm8, %v5300_v37, %v5303_v56  ;;  %v3384_v3 = vpack.c.bf16 %v3376_v35, %v3376_v35 }
 0x82c   : > { %v5255_v54 = vadd.f32 %v5254_v46, %v5253_v31  ;;  %v10534_v10 = vpop.f32.mrf.mxu3  ;;  %v8137_v46 = vld [vmem:[%s11209_s12] sm:$0xff] }
 0x82d   : > { %v5311_v23 = vsel %vm5310_vm9, %v5309_v42, %v5306_v20 }
 0x82e   : > { %8450 = vrcp.f32 %v5255_v54  ;;  %7438 = vst.msk [vmem:[%s921_s8] sm:$0x7] %vm7437_vm12, %v5311_v23  ;;  %v5267_v39 = vand.u32 2147483648, %v5255_v54  ;;  %v5265_v20 = vand.u32 2147483647, %v5255_v54  ;;  %vm5261_vm3 = vweird.f32 %v5255_v54  ;;  %s11211_s8 = smov %s11210_s11 }
 0x82f   : > { %vm6163_vm12 = vcmask 1043456  }
 0x830   : > { %v5268_v23 = vor.u32 1.1754944e-38, %v5267_v39  ;;  %vm5266_vm8 = vcmp.eq.f32.partialorder %v5265_v20, 8.507059e+37 }
 0x832   : > { %v10542_v47 = vpop.f32.mrf.mxu2 }
 0x834   : > { %v8451_v21 = vpop.eup %8450  ;;  %v5755_v5 = vpop.f32.mrf.mxu3 }
 0x835   : > { %v5257_v37 = vmul.f32 %v8451_v21, %v5255_v54  ;;  %v5908_v31 = vpack.c.bf16 %v5755_v5, %v5755_v5  ;;  %7906 = vmatmul.msk.bf16.vlgmr.msrb.gmra.mxu1 %vm2657_vm15, %v3384_v3  ;;  %7907 = vmatmul.msk.bf16.vlgmr.msra.gmra.mxu0 %vm2657_vm15, %v3385_v16  ;;  %vm5262_vm13 = vweird.f32 %v8451_v21 }
 0x836   : > { %vm5263_vm5 = vmor %vm5261_vm3, %vm5262_vm13 }
 0x837   : > { %v5258_v56 = vsub.f32 1.0, %v5257_v37  ;;  %v5925_v45 = vsel %vm5310_vm9, %v5908_v31, 0  ;;  %v3380_v31 = vsel %vm1189_vm1, 0.0, %v3379_v51  ;;  %v8141_v51 = vld [vmem:[%s11209_s12 + $0x20] sm:$0xff] }
 0x838   : > { %5934 = vmatpush.bf16.msrb.mxu3 %v5925_v45  ;;  %v3388_v45 = vpack.c.bf16 %v3380_v31, %v3380_v31 }
 0x839   : > { %v5259_v1 = vmul.f32 %v8451_v21, %v5258_v56 }
 0x83a   : > { %v10550_v3 = vpop.f32.mrf.mxu2 }
 0x83b   : > { %v5260_v42 = vadd.f32 %v8451_v21, %v5259_v1  ;;  %7917 = vmatmul.msk.bf16.vlgmr.msrb.gmra.mxu3 %vm2657_vm15, %v8137_v46  ;;  %v6152_v46 = vld [vmem:[%s11210_s11] sm:$0xf]  ;;  %s11213_s11 = sld [smem:[#allocation16_spill]] }
 0x83c   : > { %v5757_v35 = vpop.f32.mrf.mxu3 }
 0x83d   : > { %v5264_v16 = vsel %vm5263_vm5, %v8451_v21, %v5260_v42  ;;  %v3389_v21 = vpack.c.bf16 %v10491_v9, %v10491_v9  ;;  %v6165_v42 = vsel %vm6163_vm12, %v6152_v46, 0  ;;  %v8140_v35 = vld [vmem:[%s11209_s12 + $0x18] sm:$0xff] }
 0x83e   : > { %v5269_v5 = vsel %vm5266_vm8, %v5268_v23, %v5264_v16 }
 0x83f   : > { %v5270_v37 = vmul.f32 %v10508_v7, %v5269_v5  ;;  %v6156_v5 = vld [vmem:[%s11211_s8 + $0x10] sm:$0xf] }
 0x840   : > { %v6241_v31 = vsel %vm6163_vm12, %v6156_v5, 0  ;;  %v4154_v5 = vrot.slane %v10274_v50, 4 }
 0x841   : > { %7436 = vst.msk [vmem:[%s917_s3] sm:$0xf] %vm5238_vm11, %v5270_v37  ;;  %v6116_v54 = vrot.slane %v5270_v37, 1  ;;  %v6537_v56 = vrot.slane %v5270_v37, 2  ;;  %v7102_v33 = vrot.slane %v5270_v37, 3  ;;  %s11214_s4 = smov %s11213_s11 }
 0x842   : > { %8170 = vpush %v5270_v37  ;;  %v5812_v7 = vpop.f32.mrf.mxu2 }
 0x843   : > { %8172 = vpush %v6116_v54  ;;  %v5911_v20 = vpack.c.bf16 %v5812_v7, %v5812_v7  ;;  %v4140_v54 = vrot.slane %v10251_v52, 4 }
 0x844   : > { %8174 = vpush %v6537_v56  ;;  %v5831_v39 = vpop.f32.mrf.mxu3  ;;  %v6155_v56 = vld [vmem:[%s11211_s8 + $0xc] sm:$0xf] }
 0x845   : > { %8176 = vpush %v7102_v33  ;;  %v5912_v1 = vpack.c.bf16 %v5831_v39, %v5831_v39  ;;  %7910 = vmatmul.msk.bf16.vlgmr.msra.gmra.mxu1 %vm2657_vm15, %v3388_v45  ;;  %7911 = vmatmul.msk.bf16.vlgmr.msrb.gmra.mxu0 %vm2657_vm15, %v3389_v21  ;;  %v6000_v23 = vsel %vm5310_vm9, %v5911_v20, 0  ;;  %v4141_v45 = vsel %vm1189_vm1, %v4140_v54, %v10226_v48  ;;  %v6222_v46 = vsel %vm6163_vm12, %v6155_v56, 0  ;;  %v6159_v39 = vld [vmem:[%s11211_s8 + $0x1c] sm:$0xf] }
 0x846   : > { %6009 = vmatpush.bf16.msra.mxu2 %v6000_v23  ;;  %v4156_v20 = vpack.c.bf16 %v4141_v45, %v4141_v45  ;;  %v4148_v48 = vrot.slane %v10259_v62, 4 }
 0x847   : > { %v6025_v9 = vsel %vm5310_vm9, %v5912_v1, 0  ;;  %v8144_v1 = vld [vmem:[%s11209_s12 + $0x38] sm:$0xff] }
 0x848   : > { %6034 = vmatpush.bf16.msra.mxu3 %v6025_v9  ;;  %v4146_v9 = vrot.slane %v10243_v58, 4  ;;  %v10595_v58 = vpop.f32.mrf.mxu1 }
 0x849   : > { %7932 = vmatmul.msk.bf16.vlgmr.msra.gmra.mxu2 %vm2657_vm15, %v8140_v35 }
 0x84a   : > { %v5814_v37 = vpop.f32.mrf.mxu2  ;;  %v4147_v23 = vsel %vm1189_vm1, %v10238_v38, %v4146_v9  ;;  %v6153_v9 = vld [vmem:[%s11211_s8 + $0x4] sm:$0xf] }
 0x84b   : > { %7937 = vmatmul.msk.bf16.vlgmr.msra.gmra.mxu3 %vm2657_vm15, %v8141_v51  ;;  %v4149_v51 = vsel %vm1189_vm1, %v4148_v48, %v10246_v30  ;;  %v4155_v37 = vsel %vm1189_vm1, %v10255_v15, %v4154_v5 }
 0x84c   : > { %6174 = vmatpush.bf16.msrb.mxu3 %v6165_v42  ;;  %v5833_v16 = vpop.f32.mrf.mxu3  ;;  %v6298_v42 = vsel %vm6163_vm12, %v6159_v39, 0  ;;  %v4160_v35 = vpack.c.bf16 %v4149_v51, %v4149_v51  ;;  %v4163_v62 = vpack.c.bf16 %v4155_v37, %v4155_v37  ;;  %v6154_v51 = vld [vmem:[%s11211_s8 + $0x8] sm:$0xf]  ;;  %v6184_v37 = vsel %vm6163_vm12, %v6153_v9, 0 }
 0x84d   : > { %v4159_v16 = vpack.c.bf16 %v4147_v23, %v4147_v23 }
 0x850   : > { %6250 = vmatpush.bf16.msra.mxu3 %v6241_v31  ;;  %v10599_v38 = vpop.f32.mrf.mxu1 }
 0x852   : > { %v5888_v33 = vpop.f32.mrf.mxu2 }
 0x853   : > { %v5915_v21 = vpack.c.bf16 %v5888_v33, %v5888_v33 }
 0x855   : > { %v6100_v7 = vsel %vm5310_vm9, %v5915_v21, 0 }
 0x856   : > { %6109 = vmatpush.bf16.msrb.mxu2 %v6100_v7 }
 0x859   : > { %7952 = vmatmul.msk.bf16.vlgmr.msrb.gmra.mxu2 %vm2657_vm15, %v8144_v1  ;;  %v8138_v1 = vld [vmem:[%s11209_s12 + $0x8] sm:$0xff] }
 0x85a   : > { %6231 = vmatpush.bf16.msra.mxu2 %v6222_v46  ;;  %v5890_v52 = vpop.f32.mrf.mxu2 }
 0x85b   : > { %7953 = vmatmul.msk.bf16.vlgmr.msrb.gmra.mxu3 %vm2659_vm2, %v4156_v20  ;;  %v8139_v20 = vld [vmem:[%s11209_s12 + $0x10] sm:$0xff] }
 0x85e   : > { %6307 = vmatpush.bf16.msrb.mxu2 %v6298_v42 }
 0x869   : > { %7956 = vmatmul.msk.bf16.vlgmr.msra.gmra.mxu2 %vm2659_vm2, %v4159_v16 }
 0x86b   : > { %7957 = vmatmul.msk.bf16.vlgmr.msra.gmra.mxu3 %vm2659_vm2, %v4160_v35 }
 0x873   : > { %s8171_s3 = spop %8170 }
 0x874   : > { %s8173_s16 = spop %8172 }
 0x879   : > { %7960 = vmatmul.msk.bf16.vlgmr.msrb.gmra.mxu2 %vm2659_vm2, %v4163_v62  ;;  %v6203_v62 = vsel %vm6163_vm12, %v6154_v51, 0 }
 0x892   : > { %v10597_v30 = vpop.f32.mrf.mxu0 }
 0x89a   : > { %v10601_v31 = vpop.f32.mrf.mxu0 }
 0x8a2   : > { %v10603_v54 = vpop.f32.mrf.mxu1  ;;  %v10605_v56 = vpop.f32.mrf.mxu0 }
 0x8aa   : > { %v10607_v50 = vpop.f32.mrf.mxu1  ;;  %v10609_v15 = vpop.f32.mrf.mxu0 }
 0x8b2   : > { %v5774_v33 = vpop.f32.mrf.mxu1  ;;  %v5793_v45 = vpop.f32.mrf.mxu0 }
 0x8b3   : > { %v5909_v21 = vpack.c.bf16 %v5774_v33, %v5774_v33  ;;  %v5910_v46 = vpack.c.bf16 %v5793_v45, %v5793_v45 }
 0x8b5   : > { %v5950_v39 = vsel %vm5310_vm9, %v5909_v21, 0  ;;  %v5975_v7 = vsel %vm5310_vm9, %v5910_v46, 0  ;;  %v8142_v21 = vld [vmem:[%s11209_s12 + $0x28] sm:$0xff]  ;;  %v8143_v46 = vld [vmem:[%s11209_s12 + $0x30] sm:$0xff] }
 0x8b6   : > { %5959 = vmatpush.bf16.msrb.mxu1 %v5950_v39  ;;  %5984 = vmatpush.bf16.msra.mxu0 %v5975_v7 }
 0x8b9   : > { %7922 = vmatmul.msk.bf16.vlgmr.msrb.gmra.mxu1 %vm2657_vm15, %v8138_v1  ;;  %7927 = vmatmul.msk.bf16.vlgmr.msra.gmra.mxu0 %vm2657_vm15, %v8139_v20  ;;  %v6157_v20 = vld [vmem:[%s11211_s8 + $0x14] sm:$0xf] }
 0x8ba   : > { %v5776_v42 = vpop.f32.mrf.mxu1  ;;  %v5795_v52 = vpop.f32.mrf.mxu0 }
 0x8bb   : > { %v6158_v42 = vld [vmem:[%s11211_s8 + $0x18] sm:$0xf]  ;;  %v6260_v52 = vsel %vm6163_vm12, %v6157_v20, 0 }
 0x8bc   : > { %v6279_v9 = vsel %vm6163_vm12, %v6158_v42, 0 }
 0x8be   : > { %v10617_v48 = vpop.f32.mrf.mxu3 }
 0x8c2   : > { %v5850_v23 = vpop.f32.mrf.mxu1  ;;  %v5869_v35 = vpop.f32.mrf.mxu0 }
 0x8c3   : > { %v5913_v16 = vpack.c.bf16 %v5850_v23, %v5850_v23  ;;  %v5914_v5 = vpack.c.bf16 %v5869_v35, %v5869_v35 }
 0x8c5   : > { %v6050_v33 = vsel %vm5310_vm9, %v5913_v16, 0  ;;  %v6075_v45 = vsel %vm5310_vm9, %v5914_v5, 0  ;;  %v4157_v16 = vpack.c.bf16 %v10263_v63, %v10263_v63  ;;  %v4158_v5 = vpack.c.bf16 %v10267_v59, %v10267_v59 }
 0x8c6   : > { %v10627_v39 = vpop.f32.mrf.mxu3  ;;  %6059 = vmatpush.bf16.msra.mxu1 %v6050_v33  ;;  %6084 = vmatpush.bf16.msrb.mxu0 %v6075_v45  ;;  %v10651_v45 = vstv %s8173_s16  ;;  %s11217_s16 = sld [smem:[#allocation17_spill]] }
 0x8c9   : > { %7942 = vmatmul.msk.bf16.vlgmr.msra.gmra.mxu1 %vm2657_vm15, %v8142_v21  ;;  %7947 = vmatmul.msk.bf16.vlgmr.msrb.gmra.mxu0 %vm2657_vm15, %v8143_v46  ;;  %vm6602_vm15 = vcmask 1045504  }
 0x8ca   : > { %6193 = vmatpush.bf16.msrb.mxu1 %v6184_v37  ;;  %6212 = vmatpush.bf16.msra.mxu0 %v6203_v62  ;;  %v5852_v7 = vpop.f32.mrf.mxu1  ;;  %v5871_v1 = vpop.f32.mrf.mxu0  ;;  %v10649_v62 = vstv %s8171_s3  ;;  %s8175_s3 = spop %8174 }
 0x8cb   : > { %v5714_v59 = vmul.f32 %v10649_v62, %v10542_v47  ;;  %v8145_v1 = vld [vmem:[%s11212_s2] sm:$0xff]  ;;  %v4162_v47 = vpack.c.bf16 %v10282_v13, %v10282_v13 }
 0x8cc   : > { %v10637_v23 = vpop.f32.mrf.mxu2 }
 0x8ce   : > { %6269 = vmatpush.bf16.msra.mxu1 %v6260_v52  ;;  %6288 = vmatpush.bf16.msrb.mxu0 %v6279_v9  ;;  %v10635_v51 = vpop.f32.mrf.mxu3  ;;  %v4161_v9 = vpack.c.bf16 %v10278_v22, %v10278_v22 }
 0x8d4   : > { %v10645_v37 = vpop.f32.mrf.mxu2 }
 0x8d6   : > { %v10639_v35 = vpop.f32.mrf.mxu3 }
 0x8d9   : > { %7954 = vmatmul.msk.bf16.vlgmr.msrb.gmra.mxu1 %vm2659_vm2, %v4157_v16  ;;  %7955 = vmatmul.msk.bf16.vlgmr.msra.gmra.mxu0 %vm2659_vm2, %v4158_v5  ;;  %v8003_v16 = vld [vmem:[%s11213_s11] sm:$0xf]  ;;  %v8153_v5 = vld [vmem:[%s11214_s4] sm:$0x30]  ;;  %s8177_s11 = spop %8176 }
 0x8dc   : > { %v6111_v21 = vpop.f32.mrf.mxu2 }
 0x8dd   : > { %v6134_v46 = vmul.f32 %v10651_v45, %v6111_v21 }
 0x8de   : > { %v6176_v33 = vpop.f32.mrf.mxu3 }
 0x8df   : > { %v6329_v63 = vpack.c.bf16 %v6176_v33, %v6176_v33  ;;  %v10658_v20 = vadd.f32 %v6134_v46, %v5714_v59  ;;  %v8004_v33 = vor.u32 %v8153_v5, %v8003_v16  ;;  %v8023_v16 = vld [vmem:[%s11214_s4 + $0x20] sm:$0xf]  ;;  %v8157_v5 = vld [vmem:[%s11214_s4 + $0x20] sm:$0x30] }
 0x8e1   : > { %v6346_v7 = vsel %vm6163_vm12, %v6329_v63, 0  ;;  %v6604_v22 = vsel %vm6602_vm15, %v8004_v33, 0 }
 0x8e2   : > { %6355 = vmatpush.bf16.msrb.mxu3 %v6346_v7 }
 0x8e4   : > { %v10661_v52 = vpop.f32.mrf.mxu2 }
 0x8e5   : > { %7965 = vmatmul.msk.bf16.vlgmr.msrb.gmra.mxu3 %vm2659_vm2, %v8145_v1  ;;  %v8149_v1 = vld [vmem:[%s11212_s2 + $0x20] sm:$0xff] }
 0x8e6   : > { %v6178_v42 = vpop.f32.mrf.mxu3 }
 0x8e7   : > { %v8148_v42 = vld [vmem:[%s11212_s2 + $0x18] sm:$0xff] }
 0x8e9   : > { %7958 = vmatmul.msk.bf16.vlgmr.msra.gmra.mxu1 %vm2659_vm2, %v4161_v9  ;;  %7959 = vmatmul.msk.bf16.vlgmr.msrb.gmra.mxu0 %vm2659_vm2, %v4162_v47  ;;  %v5072_v9 = vrot.slane %v10347_v60, 4 }
 0x8ec   : > { %v6233_v63 = vpop.f32.mrf.mxu2 }
 0x8ed   : > { %v6332_v46 = vpack.c.bf16 %v6233_v63, %v6233_v63  ;;  %v5073_v63 = vsel %vm1189_vm1, %v5072_v9, %v10325_v43 }
 0x8ee   : > { %v6252_v21 = vpop.f32.mrf.mxu3  ;;  %v5144_v60 = vpack.c.bf16 %v5073_v63, %v5073_v63  ;;  %v5080_v63 = vrot.slane %v10357_v8, 4 }
 0x8ef   : > { %v6333_v59 = vpack.c.bf16 %v6252_v21, %v6252_v21  ;;  %v6421_v13 = vsel %vm6163_vm12, %v6332_v46, 0  ;;  %v8024_v21 = vor.u32 %v8157_v5, %v8023_v16  ;;  %v8018_v46 = vld [vmem:[%s11214_s4 + $0x18] sm:$0xf] }
 0x8f0   : > { %6430 = vmatpush.bf16.msra.mxu2 %v6421_v13  ;;  %v8038_v13 = vld [vmem:[%s11214_s4 + $0x38] sm:$0xf] }
 0x8f1   : > { %v6446_v7 = vsel %vm6163_vm12, %v6333_v59, 0  ;;  %v6724_v59 = vsel %vm6602_vm15, %v8024_v21, 0  ;;  %v8152_v21 = vld [vmem:[%s11212_s2 + $0x38] sm:$0xff] }
 0x8f2   : > { %6455 = vmatpush.bf16.msra.mxu3 %v6446_v7  ;;  %v5145_v7 = vpack.c.bf16 %v10321_v24, %v10321_v24 }
 0x8f3   : > { %7980 = vmatmul.msk.bf16.vlgmr.msra.gmra.mxu2 %vm2659_vm2, %v8148_v42  ;;  %v8160_v42 = vld [vmem:[%s11214_s4 + $0x38] sm:$0x30] }
 0x8f4   : > { %v6235_v33 = vpop.f32.mrf.mxu2  ;;  %v8039_v16 = vor.u32 %v8160_v42, %v8038_v13  ;;  %v6592_v5 = vunpack.c.l.b16 %v5145_v7 }
 0x8f5   : > { %7985 = vmatmul.msk.bf16.vlgmr.msra.gmra.mxu3 %vm2659_vm2, %v8149_v1 }
 0x8f6   : > { %6613 = vmatpush.bf16.msrb.mxu3 %v6604_v22  ;;  %v6254_v47 = vpop.f32.mrf.mxu3  ;;  %v8156_v22 = vld [vmem:[%s11214_s4 + $0x18] sm:$0x30]  ;;  %v6814_v24 = vsel %vm6602_vm15, %v8039_v16, 0 }
 0x8f7   : > { %v8019_v1 = vor.u32 %v8156_v22, %v8018_v46  ;;  %v6591_v47 = vunpack.c.l.b16 %v5144_v60  ;;  %v5081_v22 = vsel %vm1189_vm1, %v5080_v63, %v10337_v0  ;;  %v5086_v0 = vrot.slane %v10381_v41, 4 }
 0x8f8   : > { %v5152_v7 = vpack.c.bf16 %v5081_v22, %v5081_v22 }
 0x8f9   : > { %v6694_v43 = vsel %vm6602_vm15, %v8019_v1, 0  ;;  %v6593_v49 = vpack.c.b16 %v6592_v5, %v6591_v47  ;;  %v5087_v5 = vsel %vm1189_vm1, %v10367_v27, %v5086_v0 }
 0x8fa   : > { %6733 = vmatpush.bf16.msra.mxu3 %v6724_v59  ;;  %v5138_v59 = vrot.slane %v10343_v34, 4  ;;  %v6712_v42 = vunpack.c.l.b16 %v5152_v7 }
 0x8fc   : > { %v6309_v28 = vpop.f32.mrf.mxu2  ;;  %v5139_v8 = vsel %vm1189_vm1, 0.0, %v5138_v59 }
 0x8fd   : > { %v6336_v33 = vpack.c.bf16 %v6309_v28, %v6309_v28  ;;  %v5078_v28 = vrot.slane %v10362_v55, 4  ;;  %v5151_v13 = vpack.c.bf16 %v5139_v8, %v5139_v8 }
 0x8ff   : > { %v6521_v9 = vsel %vm6163_vm12, %v6336_v33, 0  ;;  %v5079_v60 = vsel %vm1189_vm1, %v10354_v61, %v5078_v28  ;;  %v6683_v34 = vunpack.c.l.b16 %v5151_v13  ;;  %v5142_v61 = vrot.slane %v10371_v12, 4 }
 0x900   : > { %6530 = vmatpush.bf16.msrb.mxu2 %v6521_v9  ;;  %v5150_v1 = vpack.c.bf16 %v5079_v60, %v5079_v60  ;;  %v5702_v12 = vmul.f32 %v10649_v62, %v10595_v58  ;;  %v5712_v58 = vmul.f32 %v10649_v62, %v10605_v56 }
 0x902   : > { %v6682_v55 = vunpack.c.l.b16 %v5150_v1 }
 0x903   : > { %8000 = vmatmul.msk.bf16.vlgmr.msrb.gmra.mxu2 %vm2659_vm2, %v8152_v21 }
 0x904   : > { %6703 = vmatpush.bf16.msra.mxu2 %v6694_v43  ;;  %v6311_v46 = vpop.f32.mrf.mxu2  ;;  %v6684_v16 = vpack.c.b16 %v6683_v34, %v6682_v55  ;;  %v5158_v43 = vpack.c.bf16 %v5087_v5, %v5087_v5 }
 0x905   : > { %8005 = vmatmul.msk.bf16.vlgmr.msrb.gmra.mxu3 %vm2661_vm6, %v6593_v49  ;;  %v5153_v49 = vpack.c.bf16 %v10316_v6, %v10316_v6  ;;  %v5143_v6 = vsel %vm1189_vm1, 0.0, %v5142_v61  ;;  %v5704_v46 = vmul.f32 %v10649_v62, %v10597_v30  ;;  %v5710_v30 = vmul.f32 %v10649_v62, %v10603_v54 }
 0x906   : > { %v5159_v9 = vpack.c.bf16 %v5143_v6, %v5143_v6  ;;  %v6802_v21 = vunpack.c.l.b16 %v5158_v43  ;;  %v8146_v6 = vld [vmem:[%s11212_s2 + $0x8] sm:$0xff]  ;;  %v8147_v43 = vld [vmem:[%s11212_s2 + $0x10] sm:$0xff] }
 0x907   : > { %v6713_v47 = vunpack.c.l.b16 %v5153_v49 }
 0x908   : > { %6823 = vmatpush.bf16.msrb.mxu2 %v6814_v24  ;;  %v6803_v63 = vunpack.c.l.b16 %v5159_v9 }
 0x909   : > { %v6714_v33 = vpack.c.b16 %v6713_v47, %v6712_v42 }
 0x90a   : > { %v6804_v24 = vpack.c.b16 %v6803_v63, %v6802_v21  ;;  %v8008_v63 = vld [vmem:[%s11214_s4 + $0x8] sm:$0xf] }
 0x913   : > { %8020 = vmatmul.msk.bf16.vlgmr.msra.gmra.mxu2 %vm2661_vm6, %v6684_v16 }
 0x915   : > { %8025 = vmatmul.msk.bf16.vlgmr.msra.gmra.mxu3 %vm2661_vm6, %v6714_v33 }
 0x923   : > { %8040 = vmatmul.msk.bf16.vlgmr.msrb.gmra.mxu2 %vm2661_vm6, %v6804_v24  ;;  %v8154_v24 = vld [vmem:[%s11214_s4 + $0x8] sm:$0x30] }
 0x936   : > { %v5961_v28 = vpop.f32.mrf.mxu1  ;;  %v5986_v59 = vpop.f32.mrf.mxu0 }
 0x937   : > { %v6122_v41 = vmul.f32 %v10651_v45, %v5961_v28  ;;  %v6124_v27 = vmul.f32 %v10651_v45, %v5986_v59  ;;  %v8013_v28 = vld [vmem:[%s11214_s4 + $0x10] sm:$0xf]  ;;  %v8155_v59 = vld [vmem:[%s11214_s4 + $0x10] sm:$0x30] }
 0x939   : > { %v10720_v22 = vadd.f32 %v6122_v41, %v5702_v12  ;;  %v10722_v60 = vadd.f32 %v6124_v27, %v5704_v46  ;;  %v8009_v46 = vor.u32 %v8154_v24, %v8008_v63  ;;  %v8014_v12 = vor.u32 %v8155_v59, %v8013_v28  ;;  %v8159_v28 = vld [vmem:[%s11214_s4 + $0x30] sm:$0x30] }
 0x93a   : > { %v6120_v41 = vmul.f32 %v10651_v45, %v10617_v48  ;;  %v6121_v63 = vmul.f32 %v10651_v45, %v10627_v39 }
 0x93e   : > { %v10724_v8 = vpop.f32.mrf.mxu1  ;;  %v10726_v7 = vpop.f32.mrf.mxu0 }
 0x946   : > { %v6061_v1 = vpop.f32.mrf.mxu1  ;;  %v6086_v49 = vpop.f32.mrf.mxu0 }
 0x947   : > { %v6130_v13 = vmul.f32 %v10651_v45, %v6061_v1  ;;  %v6132_v42 = vmul.f32 %v10651_v45, %v6086_v49  ;;  %v5700_v49 = vmul.f32 %v10649_v62, %v10503_v32 }
 0x949   : > { %v10734_v55 = vadd.f32 %v6130_v13, %v5710_v30  ;;  %v10736_v47 = vadd.f32 %v6132_v42, %v5712_v58  ;;  %v10756_v13 = vstv %s8175_s3  ;;  %s11219_s3 = smov 16  }
 0x94e   : > { %v10738_v34 = vpop.f32.mrf.mxu1  ;;  %v10740_v33 = vpop.f32.mrf.mxu0 }
 0x956   : > { %v6195_v16 = vpop.f32.mrf.mxu1  ;;  %v6214_v54 = vpop.f32.mrf.mxu0 }
 0x957   : > { %v6330_v0 = vpack.c.bf16 %v6195_v16, %v6195_v16  ;;  %v6331_v56 = vpack.c.bf16 %v6214_v54, %v6214_v54  ;;  %v6634_v16 = vsel %vm6602_vm15, %v8009_v46, 0  ;;  %v6664_v54 = vsel %vm6602_vm15, %v8014_v12, 0 }
 0x959   : > { %v6371_v61 = vsel %vm6163_vm12, %v6330_v0, 0  ;;  %v6396_v5 = vsel %vm6163_vm12, %v6331_v56, 0  ;;  %v6136_v0 = vadd.f32 %v6120_v41, %v5700_v49  ;;  %v5701_v41 = vmul.f32 %v10649_v62, %v10506_v2 }
 0x95a   : > { %6380 = vmatpush.bf16.msrb.mxu1 %v6371_v61  ;;  %6405 = vmatpush.bf16.msra.mxu0 %v6396_v5  ;;  %v8150_v61 = vld [vmem:[%s11212_s2 + $0x28] sm:$0xff]  ;;  %v8151_v5 = vld [vmem:[%s11212_s2 + $0x30] sm:$0xff]  ;;  %v5708_v2 = vmul.f32 %v10649_v62, %v10519_v40  ;;  %v11215_v40 = vpack.c.b16 %v10393_v29, %v10395_v4  ;;  %s11221_s2 = smov 96  }
 0x95d   : > { %7970 = vmatmul.msk.bf16.vlgmr.msrb.gmra.mxu1 %vm2659_vm2, %v8146_v6  ;;  %7975 = vmatmul.msk.bf16.vlgmr.msra.gmra.mxu0 %vm2659_vm2, %v8147_v43  ;;  %v8028_v43 = vld [vmem:[%s11214_s4 + $0x28] sm:$0xf] }
 0x95e   : > { %v6197_v9 = vpop.f32.mrf.mxu1  ;;  %v6216_v21 = vpop.f32.mrf.mxu0 }
 0x95f   : > { %v8158_v9 = vld [vmem:[%s11214_s4 + $0x28] sm:$0x30]  ;;  %v8033_v21 = vld [vmem:[%s11214_s4 + $0x30] sm:$0xf]  ;;  %s11222_s4 = smov 64  }
 0x960   : > { %v8029_v24 = vor.u32 %v8158_v9, %v8028_v43  ;;  %v8034_v12 = vor.u32 %v8159_v28, %v8033_v21  ;;  %v5709_v9 = vmul.f32 %v10649_v62, %v10534_v10  ;;  %v5707_v21 = vmul.f32 %v10649_v62, %v10537_v17 }
 0x961   : > { %v11216_v17 = vpack.c.b16 %v10383_v19, %v10389_v57 }
 0x962   : > { %v6784_v49 = vsel %vm6602_vm15, %v8034_v12, 0  ;;  %v6135_v12 = vmul.f32 %v10651_v45, %v10661_v52 }
 0x966   : > { %v6271_v27 = vpop.f32.mrf.mxu1  ;;  %v6290_v1 = vpop.f32.mrf.mxu0 }
 0x967   : > { %v6334_v30 = vpack.c.bf16 %v6271_v27, %v6271_v27  ;;  %v6335_v58 = vpack.c.bf16 %v6290_v1, %v6290_v1  ;;  %v6754_v27 = vsel %vm6602_vm15, %v8029_v24, 0 }
 0x968   : > { %v6357_v42 = vpop.f32.mrf.mxu3 }
 0x969   : > { %v6471_v48 = vsel %vm6163_vm12, %v6334_v30, 0  ;;  %v6496_v56 = vsel %vm6163_vm12, %v6335_v58, 0  ;;  %v6541_v32 = vmul.f32 %v10756_v13, %v6357_v42  ;;  %v6137_v30 = vadd.f32 %v6121_v63, %v5701_v41 }
 0x96a   : > { %6480 = vmatpush.bf16.msra.mxu1 %v6471_v48  ;;  %6505 = vmatpush.bf16.msrb.mxu0 %v6496_v56  ;;  %v6128_v42 = vmul.f32 %v10651_v45, %v10635_v51 }
 0x96b   : > { %v10765_v6 = vadd.f32 %v6541_v32, %v6136_v0 }
 0x96c   : > { %v6144_v48 = vadd.f32 %v6128_v42, %v5708_v2 }
 0x96d   : > { %7990 = vmatmul.msk.bf16.vlgmr.msra.gmra.mxu1 %vm2659_vm2, %v8150_v61  ;;  %7995 = vmatmul.msk.bf16.vlgmr.msrb.gmra.mxu0 %vm2659_vm2, %v8151_v5  ;;  %vm7425_vm2 = vcmask 916480  }
 0x96e   : > { %6643 = vmatpush.bf16.msrb.mxu1 %v6634_v16  ;;  %6673 = vmatpush.bf16.msra.mxu0 %v6664_v54  ;;  %v6273_v59 = vpop.f32.mrf.mxu1  ;;  %v6292_v46 = vpop.f32.mrf.mxu0  ;;  %v6126_v16 = vmul.f32 %v10651_v45, %v10637_v23  ;;  %v5706_v54 = vmul.f32 %v10649_v62, %v10521_v53  ;;  %v6129_v23 = vmul.f32 %v10651_v45, %v10639_v35 }
 0x96f   : > { %v6127_v53 = vmul.f32 %v10651_v45, %v10645_v37  ;;  %v11218_v46 = vpack.c.b16 %v10405_v11, %v10407_v18 }
 0x970   : > { %v6359_v1 = vpop.f32.mrf.mxu3  ;;  %v6142_v61 = vadd.f32 %v6126_v16, %v5706_v54  ;;  %v6145_v63 = vadd.f32 %v6129_v23, %v5709_v9  ;;  %v8161_v16 = vld [vmem:[%s11217_s16] sm:$0xff] }
 0x971   : > { %v6542_v39 = vmul.f32 %v10756_v13, %v6359_v1  ;;  %v6143_v44 = vadd.f32 %v6127_v53, %v5707_v21 }
 0x972   : > { %6763 = vmatpush.bf16.msra.mxu1 %v6754_v27  ;;  %6793 = vmatpush.bf16.msrb.mxu0 %v6784_v49  ;;  %v5715_v27 = vmul.f32 %v10649_v62, %v10550_v3 }
 0x973   : > { %v10780_v58 = vadd.f32 %v6542_v39, %v6137_v30 }
 0x974   : > { %v6151_v30 = vadd.f32 %v6135_v12, %v5715_v27  ;;  %v8168_v12 = vld [vmem:[%s11217_s16 + $0x38] sm:$0xff] }
 0x976   : > { %v6432_v56 = vpop.f32.mrf.mxu2 }
 0x977   : > { %v6547_v5 = vmul.f32 %v10756_v13, %v6432_v56 }
 0x978   : > { %v6457_v0 = vpop.f32.mrf.mxu3 }
 0x979   : > { %v6549_v32 = vmul.f32 %v10756_v13, %v6457_v0  ;;  %v10794_v51 = vadd.f32 %v6547_v5, %v6142_v61 }
 0x97b   : > { %v10792_v43 = vadd.f32 %v6549_v32, %v6144_v48 }
 0x97d   : > { %8010 = vmatmul.msk.bf16.vlgmr.msrb.gmra.mxu1 %vm2661_vm6, %v6624_v14  ;;  %8015 = vmatmul.msk.bf16.vlgmr.msra.gmra.mxu0 %vm2661_vm6, %v11215_v40 }
 0x97e   : > { %v6434_v24 = vpop.f32.mrf.mxu2 }
 0x97f   : > { %v6548_v14 = vmul.f32 %v10756_v13, %v6434_v24  ;;  %v8164_v24 = vld [vmem:[%s11217_s16 + $0x18] sm:$0xff] }
 0x980   : > { %v6459_v35 = vpop.f32.mrf.mxu3 }
 0x981   : > { %v6550_v26 = vmul.f32 %v10756_v13, %v6459_v35  ;;  %v10816_v4 = vadd.f32 %v6548_v14, %v6143_v44  ;;  %v8165_v35 = vld [vmem:[%s11217_s16 + $0x20] sm:$0xff] }
 0x983   : > { %v10814_v29 = vadd.f32 %v6550_v26, %v6145_v63 }
 0x986   : > { %v6532_v37 = vpop.f32.mrf.mxu2 }
 0x987   : > { %v6555_v59 = vmul.f32 %v10756_v13, %v6532_v37 }
 0x988   : > { %v6615_v28 = vpop.f32.mrf.mxu3 }
 0x989   : > { %v10820_v10 = vadd.f32 %v6555_v59, %v10658_v20  ;;  %v6846_v41 = vpack.c.bf16 %v6615_v28, %v6615_v28 }
 0x98b   : > { %v6869_v57 = vunpack.c.l.b16 %v6846_v41 }
 0x98d   : > { %8030 = vmatmul.msk.bf16.vlgmr.msra.gmra.mxu1 %vm2661_vm6, %v11216_v17  ;;  %8035 = vmatmul.msk.bf16.vlgmr.msrb.gmra.mxu0 %vm2661_vm6, %v11218_v46 }
 0x98e   : > { %v6534_v1 = vpop.f32.mrf.mxu2 }
 0x98f   : > { %v6556_v19 = vmul.f32 %v10756_v13, %v6534_v1 }
 0x990   : > { %v6617_v20 = vpop.f32.mrf.mxu3 }
 0x991   : > { %v6847_v49 = vpack.c.bf16 %v6617_v20, %v6617_v20  ;;  %v10835_v42 = vadd.f32 %v6556_v19, %v6151_v30  ;;  %v6123_v19 = vmul.f32 %v10651_v45, %v10724_v8 }
 0x993   : > { %v6870_v39 = vunpack.c.l.b16 %v6847_v49 }
 0x995   : > { %v6871_v11 = vpack.c.b16 %v6870_v39, %v6869_v57  ;;  %v6125_v57 = vmul.f32 %v10651_v45, %v10726_v7  ;;  %v5703_v39 = vmul.f32 %v10649_v62, %v10599_v38 }
 0x996   : > { %v6705_v52 = vpop.f32.mrf.mxu2 }
 0x997   : > { %v6876_v18 = vsel %vm6602_vm15, %v6871_v11, 0  ;;  %v6852_v54 = vpack.c.bf16 %v6705_v52, %v6705_v52  ;;  %v5705_v11 = vmul.f32 %v10649_v62, %v10601_v31 }
 0x998   : > { %v6735_v2 = vpop.f32.mrf.mxu3  ;;  %6885 = vmatpush.bf16.msrb.mxu3 %v6876_v18 }
 0x999   : > { %v6854_v3 = vpack.c.bf16 %v6735_v2, %v6735_v2  ;;  %v6959_v23 = vunpack.c.l.b16 %v6852_v54  ;;  %v6139_v2 = vadd.f32 %v6123_v19, %v5703_v39 }
 0x99b   : > { %8045 = vmatmul.msk.bf16.vlgmr.msrb.gmra.mxu3 %vm2661_vm6, %v8161_v16  ;;  %v6989_v61 = vunpack.c.l.b16 %v6854_v3 }
 0x99e   : > { %v6707_v48 = vpop.f32.mrf.mxu2 }
 0x99f   : > { %v6853_v32 = vpack.c.bf16 %v6707_v48, %v6707_v48 }
 0x9a0   : > { %v6737_v0 = vpop.f32.mrf.mxu3 }
 0x9a1   : > { %v6855_v56 = vpack.c.bf16 %v6737_v0, %v6737_v0  ;;  %v6960_v40 = vunpack.c.l.b16 %v6853_v32  ;;  %v6133_v32 = vmul.f32 %v10651_v45, %v10740_v33 }
 0x9a3   : > { %v6990_v5 = vunpack.c.l.b16 %v6855_v56  ;;  %v6961_v9 = vpack.c.b16 %v6960_v40, %v6959_v23  ;;  %v6131_v56 = vmul.f32 %v10651_v45, %v10738_v34 }
 0x9a5   : > { %v6991_v53 = vpack.c.b16 %v6990_v5, %v6989_v61  ;;  %v6966_v63 = vsel %vm6602_vm15, %v6961_v9, 0  ;;  %v5711_v61 = vmul.f32 %v10649_v62, %v10607_v50  ;;  %v5713_v5 = vmul.f32 %v10649_v62, %v10609_v15 }
 0x9a6   : > { %v6825_v26 = vpop.f32.mrf.mxu2  ;;  %6975 = vmatpush.bf16.msra.mxu2 %v6966_v63 }
 0x9a7   : > { %v6996_v21 = vsel %vm6602_vm15, %v6991_v53, 0  ;;  %v6860_v44 = vpack.c.bf16 %v6825_v26, %v6825_v26  ;;  %v6147_v53 = vadd.f32 %v6131_v56, %v5711_v61 }
 0x9a8   : > { %7005 = vmatpush.bf16.msra.mxu3 %v6996_v21 }
 0x9a9   : > { %8060 = vmatmul.msk.bf16.vlgmr.msra.gmra.mxu2 %vm2661_vm6, %v8164_v24  ;;  %v7079_v37 = vunpack.c.l.b16 %v6860_v44 }
 0x9ab   : > { %8065 = vmatmul.msk.bf16.vlgmr.msra.gmra.mxu3 %vm2661_vm6, %v8165_v35 }
 0x9ae   : > { %v6827_v14 = vpop.f32.mrf.mxu2 }
 0x9af   : > { %v6861_v28 = vpack.c.bf16 %v6827_v14, %v6827_v14 }
 0x9b1   : > { %v7080_v59 = vunpack.c.l.b16 %v6861_v28 }
 0x9b3   : > { %v7081_v17 = vpack.c.b16 %v7080_v59, %v7079_v37 }
 0x9b5   : > { %v7086_v46 = vsel %vm6602_vm15, %v7081_v17, 0 }
 0x9b6   : > { %7095 = vmatpush.bf16.msrb.mxu2 %v7086_v46  ;;  %v8162_v46 = vld [vmem:[%s11217_s16 + $0x8] sm:$0xff] }
 0x9b9   : > { %8080 = vmatmul.msk.bf16.vlgmr.msrb.gmra.mxu2 %vm2661_vm6, %v8168_v12  ;;  %v8163_v12 = vld [vmem:[%s11217_s16 + $0x10] sm:$0xff] }
 0x9da   : > { %v6382_v41 = vpop.f32.mrf.mxu1  ;;  %v6407_v27 = vpop.f32.mrf.mxu0 }
 0x9db   : > { %v6543_v20 = vmul.f32 %v10756_v13, %v6382_v41  ;;  %v6545_v1 = vmul.f32 %v10756_v13, %v6407_v27 }
 0x9dd   : > { %v10852_v49 = vadd.f32 %v6543_v20, %v10720_v22  ;;  %v10855_v30 = vadd.f32 %v6545_v1, %v10722_v60  ;;  %v6141_v22 = vadd.f32 %v6125_v57, %v5705_v11 }
 0x9e2   : > { %v6384_v18 = vpop.f32.mrf.mxu1  ;;  %v6409_v16 = vpop.f32.mrf.mxu0 }
 0x9e3   : > { %v6544_v52 = vmul.f32 %v10756_v13, %v6384_v18  ;;  %v6546_v60 = vmul.f32 %v10756_v13, %v6409_v16 }
 0x9e5   : > { %v10867_v3 = vadd.f32 %v6544_v52, %v6139_v2  ;;  %v10869_v8 = vadd.f32 %v6546_v60, %v6141_v22 }
 0x9ea   : > { %v6482_v54 = vpop.f32.mrf.mxu1  ;;  %v6507_v7 = vpop.f32.mrf.mxu0 }
 0x9eb   : > { %v6551_v0 = vmul.f32 %v10756_v13, %v6482_v54  ;;  %v6553_v38 = vmul.f32 %v10756_v13, %v6507_v7 }
 0x9ed   : > { %v10874_v31 = vadd.f32 %v6551_v0, %v10734_v55  ;;  %v10877_v48 = vadd.f32 %v6553_v38, %v10736_v47  ;;  %v6149_v55 = vadd.f32 %v6133_v32, %v5713_v5  ;;  %v8166_v0 = vld [vmem:[%s11217_s16 + $0x28] sm:$0xff]  ;;  %v8167_v38 = vld [vmem:[%s11217_s16 + $0x30] sm:$0xff] }
 0x9f2   : > { %v6484_v23 = vpop.f32.mrf.mxu1  ;;  %v6509_v40 = vpop.f32.mrf.mxu0 }
 0x9f3   : > { %v6552_v9 = vmul.f32 %v10756_v13, %v6484_v23  ;;  %v6554_v47 = vmul.f32 %v10756_v13, %v6509_v40 }
 0x9f5   : > { %v10889_v21 = vadd.f32 %v6552_v9, %v6147_v53  ;;  %v10891_v34 = vadd.f32 %v6554_v47, %v6149_v55  ;;  %v10905_v53 = vstv %s8177_s11  ;;  %s11220_s11 = smov 48  }
 0x9fa   : > { %v6645_v35 = vpop.f32.mrf.mxu1  ;;  %v6675_v45 = vpop.f32.mrf.mxu0 }
 0x9fb   : > { %v6848_v50 = vpack.c.bf16 %v6645_v35, %v6645_v35  ;;  %v6850_v33 = vpack.c.bf16 %v6675_v45, %v6675_v45 }
 0x9fd   : > { %v6899_v26 = vunpack.c.l.b16 %v6848_v50  ;;  %v6929_v44 = vunpack.c.l.b16 %v6850_v33 }
 0xa02   : > { %v6647_v63 = vpop.f32.mrf.mxu1  ;;  %v6677_v15 = vpop.f32.mrf.mxu0 }
 0xa03   : > { %v6849_v62 = vpack.c.bf16 %v6647_v63, %v6647_v63  ;;  %v6851_v24 = vpack.c.bf16 %v6677_v15, %v6677_v15 }
 0xa05   : > { %v6900_v14 = vunpack.c.l.b16 %v6849_v62  ;;  %v6930_v28 = vunpack.c.l.b16 %v6851_v24 }
 0xa07   : > { %v6901_v37 = vpack.c.b16 %v6900_v14, %v6899_v26  ;;  %v6931_v13 = vpack.c.b16 %v6930_v28, %v6929_v44 }
 0xa09   : > { %v6906_v59 = vsel %vm6602_vm15, %v6901_v37, 0  ;;  %v6936_v17 = vsel %vm6602_vm15, %v6931_v13, 0 }
 0xa0a   : > { %v6765_v41 = vpop.f32.mrf.mxu1  ;;  %v6795_v27 = vpop.f32.mrf.mxu0  ;;  %6915 = vmatpush.bf16.msrb.mxu1 %v6906_v59  ;;  %6945 = vmatpush.bf16.msra.mxu0 %v6936_v17 }
 0xa0b   : > { %v6856_v20 = vpack.c.bf16 %v6765_v41, %v6765_v41  ;;  %v6858_v1 = vpack.c.bf16 %v6795_v27, %v6795_v27 }
 0xa0d   : > { %8050 = vmatmul.msk.bf16.vlgmr.msrb.gmra.mxu1 %vm2661_vm6, %v8162_v46  ;;  %8055 = vmatmul.msk.bf16.vlgmr.msra.gmra.mxu0 %vm2661_vm6, %v8163_v12  ;;  %v7019_v18 = vunpack.c.l.b16 %v6856_v20  ;;  %v7049_v16 = vunpack.c.l.b16 %v6858_v1 }
 0xa12   : > { %v6767_v19 = vpop.f32.mrf.mxu1  ;;  %v6797_v57 = vpop.f32.mrf.mxu0 }
 0xa13   : > { %v6857_v39 = vpack.c.bf16 %v6767_v19, %v6767_v19  ;;  %v6859_v11 = vpack.c.bf16 %v6797_v57, %v6797_v57 }
 0xa15   : > { %v7020_v2 = vunpack.c.l.b16 %v6857_v39  ;;  %v7050_v22 = vunpack.c.l.b16 %v6859_v11 }
 0xa17   : > { %v7021_v52 = vpack.c.b16 %v7020_v2, %v7019_v18  ;;  %v7051_v60 = vpack.c.b16 %v7050_v22, %v7049_v16 }
 0xa19   : > { %v7026_v54 = vsel %vm6602_vm15, %v7021_v52, 0  ;;  %v7056_v7 = vsel %vm6602_vm15, %v7051_v60, 0 }
 0xa1a   : > { %7035 = vmatpush.bf16.msra.mxu1 %v7026_v54  ;;  %7065 = vmatpush.bf16.msrb.mxu0 %v7056_v7 }
 0xa1d   : > { %8070 = vmatmul.msk.bf16.vlgmr.msra.gmra.mxu1 %vm2661_vm6, %v8166_v0  ;;  %8075 = vmatmul.msk.bf16.vlgmr.msrb.gmra.mxu0 %vm2661_vm6, %v8167_v38 }
 0xa1e   : > { %v6887_v56 = vpop.f32.mrf.mxu3 }
 0xa1f   : > { %v7106_v55 = vmul.f32 %v10905_v53, %v6887_v56 }
 0xa21   : > { %v7122_v47 = vadd.f32 %v7106_v55, %v10765_v6 }
 0xa23   : > { %v7140_v24 = vrot.slane %v7122_v47, 4 }
 0xa26   : > { %v6889_v61 = vpop.f32.mrf.mxu3 }
 0xa27   : > { %v7107_v26 = vmul.f32 %v10905_v53, %v6889_v61 }
 0xa29   : > { %v7123_v27 = vadd.f32 %v7107_v26, %v10780_v58 }
 0xa2b   : > { %v7252_v38 = vrot.slane %v7123_v27, 4 }
 0xa2c   : > { %v6977_v32 = vpop.f32.mrf.mxu2 }
 0xa2d   : > { %v7112_v9 = vmul.f32 %v10905_v53, %v6977_v32 }
 0xa2e   : > { %v7007_v23 = vpop.f32.mrf.mxu3 }
 0xa2f   : > { %v7128_v35 = vadd.f32 %v7112_v9, %v10794_v51  ;;  %v7114_v14 = vmul.f32 %v10905_v53, %v7007_v23 }
 0xa31   : > { %v7150_v44 = vrot.slane %v7128_v35, 4  ;;  %v10925_v20 = vadd.f32 %v7114_v14, %v10792_v43 }
 0xa34   : > { %v6979_v5 = vpop.f32.mrf.mxu2 }
 0xa35   : > { %v7113_v28 = vmul.f32 %v10905_v53, %v6979_v5 }
 0xa36   : > { %v7009_v45 = vpop.f32.mrf.mxu3 }
 0xa37   : > { %v7115_v6 = vmul.f32 %v10905_v53, %v7009_v45 }
 0xa39   : > { %v10931_v19 = vadd.f32 %v7115_v6, %v10814_v29 }
 0xa3c   : > { %v7097_v40 = vpop.f32.mrf.mxu2 }
 0xa3d   : > { %v7120_v13 = vmul.f32 %v10905_v53, %v7097_v40 }
 0xa3f   : > { %v7136_v22 = vadd.f32 %v7120_v13, %v10820_v10  ;;  %v7164_v10 = vrot.slane %v10925_v20, 4 }
 0xa44   : > { %v7099_v63 = vpop.f32.mrf.mxu2 }
 0xa45   : > { %v7121_v59 = vmul.f32 %v10905_v53, %v7099_v63 }
 0xa47   : > { %v10939_v52 = vadd.f32 %v7121_v59, %v10835_v42  ;;  %v7276_v42 = vrot.slane %v10931_v19, 4 }
 0xa49   : > { %v7286_v45 = vrot.slane %v10939_v52, 4 }
 0xa8a   : > { %v6917_v50 = vpop.f32.mrf.mxu1  ;;  %v6947_v33 = vpop.f32.mrf.mxu0 }
 0xa8b   : > { %v7108_v15 = vmul.f32 %v10905_v53, %v6917_v50  ;;  %v7110_v62 = vmul.f32 %v10905_v53, %v6947_v33 }
 0xa8d   : > { %v7124_v51 = vadd.f32 %v7108_v15, %v10852_v49  ;;  %v7126_v37 = vadd.f32 %v7110_v62, %v10855_v30  ;;  %v7129_v30 = vadd.f32 %v7113_v28, %v10816_v4 }
 0xa8f   : > { %v7151_v17 = vsel %vm1189_vm1, %v7150_v44, %v7124_v51  ;;  %v7152_v46 = vrot.slane %v7124_v51, 4  ;;  %v7138_v12 = vrot.slane %v7126_v37, 4  ;;  %v7141_v41 = vsel %vm1189_vm1, %v7126_v37, %v7140_v24 }
 0xa90   : > { %v7157_v1 = vperm.slane %v7151_v17, %v8824_v36  ;;  %v7149_v49 = vperm.slane %v7141_v41, %v8824_v36  ;;  %v7262_v56 = vrot.slane %v7129_v30, 4 }
 0xa91   : > { %v7153_v57 = vsel %vm1189_vm1, %v7128_v35, %v7152_v46  ;;  %v7139_v39 = vsel %vm1189_vm1, %v7138_v12, %v7122_v47  ;;  %v7174_v35 = vrot.slane %v7136_v22, 4 }
 0xa92   : > { %v7161_v11 = vperm.slane %v7153_v57, %v8824_v36  ;;  %v7186_v18 = vrot.slane %v7157_v1, 4  ;;  %v7145_v58 = vperm.slane %v7139_v39, %v8824_v36  ;;  %v7200_v43 = vrot.slane %v7149_v49, 4  ;;  %v6919_v16 = vpop.f32.mrf.mxu1  ;;  %v6949_v2 = vpop.f32.mrf.mxu0 }
 0xa93   : > { %v7109_v29 = vmul.f32 %v10905_v53, %v6919_v16  ;;  %v7111_v4 = vmul.f32 %v10905_v53, %v6949_v2 }
 0xa94   : > { %v7198_v60 = vrot.slane %v7161_v11, 4  ;;  %v7188_v54 = vrot.slane %v7145_v58, 4  ;;  %v7187_v7 = vsel %vm1189_vm1, %v7186_v18, %v7145_v58  ;;  %v7201_v0 = vsel %vm1189_vm1, %v7161_v11, %v7200_v43 }
 0xa95   : > { %v7125_v32 = vadd.f32 %v7109_v29, %v10867_v3  ;;  %v7127_v61 = vadd.f32 %v7111_v4, %v10869_v8  ;;  %v10959_v63 = vperm.slane %v7187_v7, %v8877_v25  ;;  %v10962_v15 = vperm.slane %v7201_v0, %v8877_v25 }
 0xa96   : > { %v7199_v5 = vsel %vm1189_vm1, %v7198_v60, %v7149_v49  ;;  %v7189_v23 = vsel %vm1189_vm1, %v7157_v1, %v7188_v54 }
 0xa97   : > { %v7263_v40 = vsel %vm1189_vm1, %v7262_v56, %v7125_v32  ;;  %v7264_v55 = vrot.slane %v7125_v32, 4  ;;  %v7250_v9 = vrot.slane %v7127_v61, 4  ;;  %v7253_v47 = vsel %vm1189_vm1, %v7127_v61, %v7252_v38 }
 0xa98   : > { %v7269_v3 = vperm.slane %v7263_v40, %v8824_v36  ;;  %v7261_v8 = vperm.slane %v7253_v47, %v8824_v36  ;;  %v10969_v37 = vperm.slane %v7199_v5, %v8877_v25  ;;  %v10972_v13 = vperm.slane %v7189_v23, %v8877_v25 }
 0xa99   : > { %v7265_v50 = vsel %vm1189_vm1, %v7129_v30, %v7264_v55  ;;  %v7251_v33 = vsel %vm1189_vm1, %v7250_v9, %v7123_v27  ;;  %v7236_v1 = vrot.slane %v10959_v63, 4  ;;  %v7248_v49 = vrot.slane %v10962_v15, 4 }
 0xa9a   : > { %v7273_v62 = vperm.slane %v7265_v50, %v8824_v36  ;;  %v7298_v24 = vrot.slane %v7269_v3, 4  ;;  %v7257_v26 = vperm.slane %v7251_v33, %v8824_v36  ;;  %v7312_v44 = vrot.slane %v7261_v8, 4  ;;  %v7037_v14 = vpop.f32.mrf.mxu1  ;;  %v7067_v28 = vpop.f32.mrf.mxu0 }
 0xa9b   : > { %v7116_v6 = vmul.f32 %v10905_v53, %v7037_v14  ;;  %v7118_v51 = vmul.f32 %v10905_v53, %v7067_v28  ;;  %v7244_v2 = vrot.slane %v10969_v37, 4  ;;  %v7240_v29 = vrot.slane %v10972_v13, 4 }
 0xa9c   : > { %v7310_v59 = vrot.slane %v7273_v62, 4  ;;  %v7300_v17 = vrot.slane %v7257_v26, 4  ;;  %v7299_v46 = vsel %vm1189_vm1, %v7298_v24, %v7257_v26  ;;  %v7313_v12 = vsel %vm1189_vm1, %v7273_v62, %v7312_v44 }
 0xa9d   : > { %v7132_v41 = vadd.f32 %v7116_v6, %v10874_v31  ;;  %v7134_v27 = vadd.f32 %v7118_v51, %v10877_v48  ;;  %v10982_v57 = vperm.slane %v7299_v46, %v8877_v25  ;;  %v10986_v11 = vperm.slane %v7313_v12, %v8877_v25 }
 0xa9e   : > { %v7301_v30 = vsel %vm1189_vm1, %v7269_v3, %v7300_v17  ;;  %v7311_v39 = vsel %vm1189_vm1, %v7310_v59, %v7261_v8 }
 0xa9f   : > { %v7175_v18 = vsel %vm1189_vm1, %v7174_v35, %v7132_v41  ;;  %v7176_v58 = vrot.slane %v7132_v41, 4  ;;  %v7162_v31 = vrot.slane %v7134_v27, 4  ;;  %v7165_v48 = vsel %vm1189_vm1, %v7134_v27, %v7164_v10 }
 0xaa0   : > { %v7181_v43 = vperm.slane %v7175_v18, %v8824_v36  ;;  %v7173_v16 = vperm.slane %v7165_v48, %v8824_v36  ;;  %v10998_v54 = vperm.slane %v7301_v30, %v8877_v25  ;;  %v11001_v7 = vperm.slane %v7311_v39, %v8877_v25 }
 0xaa1   : > { %v7177_v4 = vsel %vm1189_vm1, %v7136_v22, %v7176_v58  ;;  %v7163_v60 = vsel %vm1189_vm1, %v7162_v31, %v10925_v20  ;;  %v7348_v20 = vrot.slane %v10982_v57, 4  ;;  %v7360_v23 = vrot.slane %v10986_v11, 4 }
 0xaa2   : > { %v7185_v0 = vperm.slane %v7177_v4, %v8824_v36  ;;  %v7210_v38 = vrot.slane %v7181_v43, 4  ;;  %v7169_v56 = vperm.slane %v7163_v60, %v8824_v36  ;;  %v7224_v32 = vrot.slane %v7173_v16, 4  ;;  %v7039_v61 = vpop.f32.mrf.mxu1  ;;  %v7069_v10 = vpop.f32.mrf.mxu0 }
 0xaa3   : > { %v7117_v5 = vmul.f32 %v10905_v53, %v7039_v61  ;;  %v7119_v22 = vmul.f32 %v10905_v53, %v7069_v10  ;;  %v7352_v50 = vrot.slane %v10998_v54, 4  ;;  %v7356_v24 = vrot.slane %v11001_v7, 4 }
 0xaa4   : > { %v7211_v40 = vsel %vm1189_vm1, %v7210_v38, %v7169_v56  ;;  %v7222_v55 = vrot.slane %v7185_v0, 4  ;;  %v7212_v9 = vrot.slane %v7169_v56, 4  ;;  %v7225_v47 = vsel %vm1189_vm1, %v7185_v0, %v7224_v32 }
 0xaa5   : > { %v7133_v35 = vadd.f32 %v7117_v5, %v10889_v21  ;;  %v7135_v3 = vadd.f32 %v7119_v22, %v10891_v34  ;;  %v7217_v8 = vperm.slane %v7211_v40, %v8877_v25  ;;  %v7233_v62 = vperm.slane %v7225_v47, %v8877_v25 }
 0xaa6   : > { %v7223_v53 = vsel %vm1189_vm1, %v7222_v55, %v7173_v16  ;;  %v7213_v33 = vsel %vm1189_vm1, %v7181_v43, %v7212_v9 }
 0xaa7   : > { %v7287_v26 = vsel %vm1189_vm1, %v7286_v45, %v7133_v35  ;;  %v7288_v44 = vrot.slane %v7133_v35, 4  ;;  %v7274_v21 = vrot.slane %v7135_v3, 4  ;;  %v7277_v34 = vsel %vm1189_vm1, %v7135_v3, %v7276_v42 }
 0xaa8   : > { %v7293_v14 = vperm.slane %v7287_v26, %v8824_v36  ;;  %v7285_v28 = vperm.slane %v7277_v34, %v8824_v36  ;;  %v7237_v6 = vsel %vm1189_vm1, %v7217_v8, %v7236_v1  ;;  %v7234_v51 = vrot.slane %v7217_v8, 4 }
 0xaa9   : > { %v7289_v59 = vsel %vm1189_vm1, %v10939_v52, %v7288_v44  ;;  %v7275_v17 = vsel %vm1189_vm1, %v7274_v21, %v10931_v19  ;;  %7363 = vrot.lane.b32.xlu1 %v7237_v6, %s11219_s3  ;;  %v7229_v45 = vperm.slane %v7223_v53, %v8877_v25  ;;  %v7221_v46 = vperm.slane %v7213_v33, %v8877_v25 }
 0xaaa   : > { %v7297_v42 = vperm.slane %v7289_v59, %v8824_v36  ;;  %v7322_v12 = vrot.slane %v7293_v14, 4  ;;  %v7281_v41 = vperm.slane %v7275_v17, %v8824_v36  ;;  %v7336_v27 = vrot.slane %v7285_v28, 4 }
 0xaab   : > { %v7245_v1 = vsel %vm1189_vm1, %v7229_v45, %v7244_v2  ;;  %v7241_v30 = vsel %vm1189_vm1, %v7221_v46, %v7240_v29  ;;  %v7249_v52 = vsel %vm1189_vm1, %v7233_v62, %v7248_v49  ;;  %v7246_v39 = vrot.slane %v7233_v62, 4 }
 0xaac   : > { %v7324_v19 = vrot.slane %v7281_v41, 4  ;;  %7379 = vrot.lane.b32.xlu0 %v7245_v1, %s11197_s18  ;;  %7371 = vrot.lane.b32.xlu2 %v7241_v30, %s11220_s11  ;;  %v7238_v18 = vrot.slane %v7221_v46, 4  ;;  %v7242_v58 = vrot.slane %v7229_v45, 4  ;;  %v7323_v31 = vsel %vm1189_vm1, %v7322_v12, %v7281_v41 }
 0xaad   : > { %v7247_v36 = vsel %vm1189_vm1, %v7246_v39, %v10962_v15  ;;  %v7329_v48 = vperm.slane %v7323_v31, %v8877_v25  ;;  %v7334_v43 = vrot.slane %v7297_v42, 4  ;;  %v7337_v16 = vsel %vm1189_vm1, %v7297_v42, %v7336_v27 }
 0xaae   : > { %v7239_v49 = vsel %vm1189_vm1, %v7238_v18, %v10972_v13  ;;  %v7243_v2 = vsel %vm1189_vm1, %v7242_v58, %v10969_v37  ;;  %v7325_v29 = vsel %vm1189_vm1, %v7293_v14, %v7324_v19  ;;  %v7345_v4 = vperm.slane %v7337_v16, %v8877_v25 }
 0xaaf   : > { %v7333_v60 = vperm.slane %v7325_v29, %v8877_v25  ;;  %v7349_v0 = vsel %vm1189_vm1, %v7329_v48, %v7348_v20  ;;  %v7346_v15 = vrot.slane %v7329_v48, 4  ;;  %v7335_v38 = vsel %vm1189_vm1, %v7334_v43, %v7285_v28 }
 0xab0   : > { %v7341_v56 = vperm.slane %v7335_v38, %v8877_v25  ;;  %v7358_v32 = vrot.slane %v7345_v4, 4  ;;  %v7361_v61 = vsel %vm1189_vm1, %v7345_v4, %v7360_v23  ;;  %v7235_v13 = vsel %vm1189_vm1, %v7234_v51, %v10959_v63 }
 0xab1   : > { %7387 = vrot.lane.b32.xlu1 %v7249_v52, %s11196_s22  ;;  %v7350_v37 = vrot.slane %v7333_v60, 4  ;;  %v7353_v10 = vsel %vm1189_vm1, %v7333_v60, %v7352_v50  ;;  %v7347_v5 = vsel %vm1189_vm1, %v7346_v15, %v10982_v57 }
 0xab2   : > { %v7357_v22 = vsel %vm1189_vm1, %v7341_v56, %v7356_v24  ;;  %v7354_v20 = vrot.slane %v7341_v56, 4  ;;  %v7359_v25 = vsel %vm1189_vm1, %v7358_v32, %v10986_v11 }
 0xab3   : > { %v7351_v23 = vsel %vm1189_vm1, %v7350_v37, %v10998_v54 }
 0xab4   : > { %7383 = vrot.lane.b32.xlu2 %v7247_v36, %s11221_s2  ;;  %7367 = vrot.lane.b32.xlu0 %v7239_v49, %s11199_s9  ;;  %v7355_v63 = vsel %vm1189_vm1, %v7354_v20, %v11001_v7  ;;  %vm7422_vm1 = vcmask 654336  }
 0xab9   : > { %7375 = vrot.lane.b32.xlu1 %v7243_v2, %s11222_s4 }
 0xabc   : > { %7395 = vrot.lane.b32.xlu2 %v7351_v23, %s11199_s9  ;;  %7391 = vrot.lane.b32.xlu0 %v7349_v0, %s11219_s3  ;;  %s894_s9 = sand.u32 1, %s8506_s10  }
 0xac1   : > { %7399 = vrot.lane.b32.xlu1 %v7353_v10, %s11220_s11 }
 0xac4   : > { %7407 = vrot.lane.b32.xlu2 %v7357_v22, %s11197_s18  ;;  %7403 = vrot.lane.b32.xlu0 %v7355_v63, %s11222_s4  ;;  %s7610_s18 = sshll.u32 %s894_s9, 4  ;;  %s8169_s4 = sshll.u32 %s8754_s0, 4 }
 0xac5   : > { %s7440_s0 = scalar_lea.sflag [#allocation3], %s894_s9 }
 0xac9   : > { %7411 = vrot.lane.b32.xlu1 %v7359_v25, %s11221_s2  ;;  %s7459_s2 = scalar_lea.hbm %s8721_s6, %s8169_s4 }
 0xaca   : > { %s7463_s11 = sshll.u32 %s7459_s2, 4  ;;  %s7464_s11 = int_to_ptr.hbm [resolvable:$true] %s7463_s11 }
 0xacc   : > { %7415 = vrot.lane.b32.xlu0 %v7361_v61, %s11196_s22  ;;  %s896_s22 = scalar_lea.vmem [#allocation2], %s7610_s18  ;;  %s8466_s18 = sshra.s32 %s7464_s11, 4  ;;  %s8467_s18 = int_to_ptr.hbm [resolvable:$true] %s8466_s18 }
 0xacd   : > { %s7461_s3 = sshll.u32 %s896_s22, 4  ;;  %s8468_s4 = scalar_lea.hbm %s8467_s18, 16  ;;  %s7462_s3 = int_to_ptr.vmem [resolvable:$true] %s7461_s3 }
 0xace   : > { %p8469_p11 = scmp.ne.s32.totalorder %s8467_s18, %s8468_s4  ;;  %p8473_p0 = scmp.lt.s32.totalorder %s8467_s18, %s8721_s6 }
 0xacf   : > { %p8474_p1 = scmp.lt.s32.totalorder %s8472_s5, %s8468_s4 }
 0xad0   : > { %p8470_p12 = pnand %p8469_p11, %p8771_p5 }
 0xad1   : > { %p8475_p2 = por %p8474_p1, %p8473_p0 }
 0xad2   : > { %p8471_p13 = pneg %p8470_p12 }
 0xad4   : > { %p8476_p3 = pnand %p8475_p2, %p8471_p13 }
 0xb06   : > { %v7372_v11 = vpop.permute.xlu2 %7371 }
 0xb0e   : > { %v7384_v40 = vpop.permute.xlu2 %7383 }
 0xb16   : > { %v7396_v24 = vpop.permute.xlu2 %7395 }
 0xb1b   : > { %v7364_v57 = vpop.permute.xlu1 %7363 }
 0xb1c   : > { %v7418_v9 = vsel %vm967_vm0, %v7235_v13, %v7364_v57 }
 0xb1e   : > { %v7380_v54 = vpop.permute.xlu0 %7379  ;;  %v7408_v6 = vpop.permute.xlu2 %7407 }
 0xb23   : > { %v7388_v7 = vpop.permute.xlu1 %7387 }
 0xb26   : > { %v7368_v55 = vpop.permute.xlu0 %7367 }
 0xb27   : > { %v7419_v47 = vsel %vm3975_vm4, %v7418_v9, %v7368_v55 }
 0xb28   : > { %v7420_v3 = vsel %vm3979_vm7, %v7419_v47, %v7372_v11 }
 0xb2b   : > { %v7376_v35 = vpop.permute.xlu1 %7375 }
 0xb2c   : > { %v7421_v8 = vsel %vm3983_vm10, %v7420_v3, %v7376_v35 }
 0xb2d   : > { %v7423_v50 = vsel %vm7422_vm1, %v7421_v8, %v7380_v54 }
 0xb2e   : > { %v7424_v53 = vsel %vm4883_vm14, %v7423_v50, %v7384_v40  ;;  %v7392_v33 = vpop.permute.xlu0 %7391 }
 0xb2f   : > { %v7426_v62 = vsel %vm7425_vm2, %v7424_v53, %v7388_v7  ;;  %v7427_v26 = vsel %vm967_vm0, %v7347_v5, %v7392_v33 }
 0xb30   : > { %7434 = vst [vmem:[%s896_s22] sm:$0xff] %v7426_v62  ;;  %v7428_v21 = vsel %vm3975_vm4, %v7427_v26, %v7396_v24 }
 0xb33   : > { %v7400_v44 = vpop.permute.xlu1 %7399 }
 0xb34   : > { %v7429_v34 = vsel %vm3979_vm7, %v7428_v21, %v7400_v44 }
 0xb36   : > { %v7404_v14 = vpop.permute.xlu0 %7403 }
 0xb37   : > { %v7430_v28 = vsel %vm3983_vm10, %v7429_v34, %v7404_v14 }
 0xb38   : > { %v7431_v59 = vsel %vm7422_vm1, %v7430_v28, %v7408_v6 }
 0xb3b   : > { %v7412_v51 = vpop.permute.xlu1 %7411 }
 0xb3c   : > { %v7432_v17 = vsel %vm4883_vm14, %v7431_v59, %v7412_v51 }
 0xb3e   : > { %v7416_v45 = vpop.permute.xlu0 %7415 }
 0xb3f   : > { %v7433_v46 = vsel %vm7425_vm2, %v7432_v17, %v7416_v45 }
 0xb40   : > { %7435 = vst [vmem:[%s896_s22 + $0x8] sm:$0xff] %v7433_v46 }
 0xb41   : > { %8479 = shalt.err (!%p8476_p3)
}
 0xb42   : > { %8178 = dma.vmem_to_hbm [thread:$0]  (%p8771_p5), %s7462_s3, 256, %s7464_s11, %s7440_s0  }
 0xb43 PF: > { %p8184_p4 = scmp.ge.s32.totalorder %s8514_s15, 2  ;;  %s7481_s9 = sand.u32 1, %s8502_s7  }
 0xb44   : > { %s7482_s22 = scalar_lea.sflag [#allocation3], %s7481_s9 }
 0xb45   : > { %p8181_p7 = pnand %p8184_p4, %p8775_p6 }
 0xb47   : > { %p8182_p8 = pneg %p8181_p7 }
 0xb49   : > { %8497 = dma.done.wait (%p8182_p8), %s7482_s22, 256  }
 0xb4a   : > { %8499 = vsyncadd (%p8182_p8), %s7482_s22, 4294967040  ;;  %s11223_s15 = sld [smem:[#allocation24_spill]]  ;;  %s11226_s7 = smov %s8506_s10 }
 0xb4b   : > { %s11224_s5 = sld [smem:[#allocation23_spill]] }
 0xb4c   : > { %s11225_s11 = sld [smem:[#allocation25_spill]] }
 0xb50   : > { %p70_p9 = scmp.ge.s32.totalorder %s11223_s15, 4  }
 0xb51   : > { %s11227_s10 = smov %s11224_s5 }
 0xb52   :  { %72 = sbr.rel (!%p70_p9) target bundleno = 52 (0x34), region = 216 }
 0xb57   :  { %7502 = vsyncpa [#allocation3], 1 }
 0xb58   :  { %7504 = vsyncpa [#allocation3 + $0x1], 1 }

</bundles_post_ra>
